<compile_context>
chip_gen: v7x
topology: tpu7x:2x2x1
jax: 0.10.0
libtpu: 0.0.40
codegen_flags: <defaults>
</compile_context>

<pallas_src>
import functools

import jax
import jax.numpy as jnp
from jax import lax
from jax.experimental import pallas as pl
from jax.experimental.pallas import tpu as pltpu


# ----------------------------- configuration ------------------------------- #
NEAR = 0.0            # present in cfg; unused by the forward pass (as in PyTorch)
FAR = 10.0
MAX_ITERS = 16

LANES = 128           # vreg lane width
SUB_ROWS = 32         # sublane rows per in-kernel sub-block (4 f32 vregs / coord)
CHUNK_RAYS = 131072   # rays per grid step (1024 rows x 128 lanes); ~9 MiB of
                      # double-buffered VMEM -> fits every generation's scoped limit


# ------------------------------- kernel ------------------------------------ #
def sphere_trace_kernel(center_ref, radius_ref, w_ref, b_ref,
                        o_ref, d_ref, color_ref,
                        *, max_iters, far, sub_rows):
    """One grid tile of rays.

    center_ref : SMEM f32[3]          sphere center
    radius_ref : SMEM f32[1]          sphere radius
    w_ref      : SMEM f32[3, 3]       color-head weight
    b_ref      : SMEM f32[3]          color-head bias
    o_ref      : VMEM f32[3, R, 128]  ray origins   (per-coordinate planes)
    d_ref      : VMEM f32[3, R, 128]  ray directions
    color_ref  : VMEM f32[3, R, 128]  output colors (per-channel planes)
    """
    rows = o_ref.shape[1]
    n_sub = rows // sub_rows

    cx = center_ref[0]
    cy = center_ref[1]
    cz = center_ref[2]
    radius = radius_ref[0]
    w = [[w_ref[i, j] for j in range(3)] for i in range(3)]
    # Fold the center into the color-head bias (scalar math only):
    #   sigmoid(W @ (q + c) + b) == sigmoid(W @ q + (W @ c + b))
    b_eff = [w[i][0] * cx + w[i][1] * cy + w[i][2] * cz + b_ref[i]
             for i in range(3)]

    # Hoisted constants: JAX does not CSE broadcast_in_dim, so keep these out
    # of the per-sub-block loop body.
    neg_inf = jnp.full((sub_rows, LANES), -jnp.inf, jnp.float32)
    zero = jnp.zeros((sub_rows, LANES), jnp.float32)

    @pl.loop(0, n_sub)
    def _(s):
        r0 = pl.multiple_of(s * sub_rows, sub_rows)
        sl = pl.ds(r0, sub_rows)

        # Carry q = p - center through the trace loop: the SDF needs only q,
        # and q updates with the same dist*d step as p.
        qx = o_ref[0, sl, :] - cx
        qy = o_ref[1, sl, :] - cy
        qz = o_ref[2, sl, :] - cz
        dx = d_ref[0, sl, :]
        dy = d_ref[1, sl, :]
        dz = d_ref[2, sl, :]

        def trace_iter(_, carry):
            qx, qy, qz, dmax = carry
            dist = jnp.sqrt(qx * qx + qy * qy + qz * qz) - radius  # sphere SDF
            qx = qx + dist * dx                                    # dist is a full
            qy = qy + dist * dy                                    # (R,128) plane:
            qz = qz + dist * dz                                    # no broadcasts
            dmax = jnp.maximum(dmax, dist)   # running max replaces cmp+and/iter
            return qx, qy, qz, dmax

        qx, qy, qz, dmax = lax.fori_loop(0, max_iters, trace_iter,
                                         (qx, qy, qz, neg_inf), unroll=True)
        m = dmax < far   # mask == AND over iterations of (dist < far)

        # get_color: sigmoid(W @ p + b).  The 3x3 head stays on the VPU (scalar
        # SMEM weights x vector planes); the sigmoid is lowered via tanh so the
        # divide stays off the binding VALU slot.  Each channel goes to its own
        # lane-dense output plane (unmasked vst, no sublane concat).
        for c in range(3):
            acc = w[c][0] * qx + w[c][1] * qy + w[c][2] * qz + b_eff[c]
            col = 0.5 * jnp.tanh(0.5 * acc) + 0.5      # == sigmoid(acc), EUP tanh
            color_ref[c, sl, :] = jnp.where(m, col, zero)   # color[~mask] = 0


# ------------------------------ host wrappers ------------------------------- #
def sphere_tracing_render_cm(origins_cm, directions_cm, center, radius, w, b,
                             *, chunk_rays=CHUNK_RAYS, max_iters=MAX_ITERS,
                             far=FAR):
    """Coordinate-major entry point.

    origins_cm, directions_cm: (3, N) float32 (SoA).  Returns color: (3, N).
    No AoS<->SoA transpose is performed; the (3, N) -> (3, rows, 128) reshape
    is a pure view.
    """
    n = origins_cm.shape[1]
    min_rays = SUB_ROWS * LANES
    assert chunk_rays % min_rays == 0

    # Tile sizing: cap at chunk_rays, but aim for >= 4 grid tiles so v7x's two
    # TensorCores each get >= 2 tiles via the "parallel" grid axis.
    tiles_wanted = max(4, pl.cdiv(n, chunk_rays))
    tile = pl.cdiv(pl.cdiv(n, tiles_wanted), min_rays) * min_rays
    tile = max(min(tile, chunk_rays), min_rays)
    n_pad = pl.cdiv(n, tile) * tile
    rows = n_pad // LANES
    r_block = tile // LANES

    def to_planes(x):
        x = x.astype(jnp.float32)
        if n_pad != n:
            x = jnp.pad(x, ((0, 0), (0, n_pad - n)))   # padded dirs are 0: benign
        return x.reshape(3, rows, LANES)                # view, no data movement

    o_t = to_planes(origins_cm)
    d_t = to_planes(directions_cm)

    kernel = functools.partial(sphere_trace_kernel, max_iters=max_iters,
                               far=far, sub_rows=SUB_ROWS)

    smem_spec = pl.BlockSpec(memory_space=pltpu.MemorySpace.SMEM)
    ray_spec = pl.BlockSpec((3, r_block, LANES), lambda i: (0, i, 0))

    # Advisory cost estimate so XLA schedules surrounding ops sensibly.
    cost = pl.CostEstimate(
        flops=int(n_pad * (13 * max_iters + 24)),
        transcendentals=int(n_pad * (max_iters + 3)),    # sqrt per iter + tanh x3
        bytes_accessed=int(3 * 3 * n_pad * 4))           # o + d + color planes

    # VMEM budget: o, d, color tiles double-buffered = 6 * (3 * tile * 4) bytes
    # (~9 MiB at the default chunk).  Cap the scoped limit so the same tiling
    # also fits v5e (16 MiB default) and v7x (32 MiB scoped / 64 MiB physical).
    tile_bytes = 3 * tile * 4
    vmem_limit = min(max(8 * tile_bytes, 16 * 1024 * 1024), 32 * 1024 * 1024)

    color_t = pl.pallas_call(
        kernel,
        out_shape=jax.ShapeDtypeStruct((3, rows, LANES), jnp.float32),
        grid=(n_pad // tile,),
        in_specs=[smem_spec, smem_spec, smem_spec, smem_spec,
                  ray_spec, ray_spec],
        out_specs=ray_spec,
        compiler_params=pltpu.CompilerParams(
            dimension_semantics=("parallel",),   # shards ray tiles over v7x's 2 TCs
            vmem_limit_bytes=vmem_limit),
        cost_estimate=cost,
    )(center, radius, w, b, o_t, d_t)

    out = color_t.reshape(3, n_pad)
    if n_pad != n:
        out = out[:, :n]
    return out  # (3, N)


def sphere_tracing_render(origins, directions, center, radius, w, b,
                          *, chunk_rays=CHUNK_RAYS, max_iters=MAX_ITERS,
                          far=FAR):
    """(N, 3) compatibility wrapper matching the PyTorch module interface.

    TODO(synk): keep rays coordinate-major upstream and call
    sphere_tracing_render_cm directly; these boundary transposes add HBM
    traffic comparable to the kernel's entire runtime on v5e/v6e.
    """
    color_cm = sphere_tracing_render_cm(
        origins.T, directions.T, center, radius, w, b,
        chunk_rays=chunk_rays, max_iters=max_iters, far=far)
    return color_cm.T


# ----------------------------- pure-JAX reference --------------------------- #
def reference_render(origins, directions, center, radius, w, b,
                     *, max_iters=MAX_ITERS, far=FAR):
    """(N, 3) reference.  Returns (color, min |dist - far| margin per ray)."""
    p = origins
    m = jnp.ones((origins.shape[0], 1), dtype=bool)
    margin = jnp.full((origins.shape[0], 1), jnp.inf)
    for _ in range(max_iters):
        dist = jnp.linalg.norm(p - center[None, :], axis=-1,
                               keepdims=True) - radius[0]
        p = p + dist * directions
        m = jnp.logical_and(m, dist < far)
        margin = jnp.minimum(margin, jnp.abs(dist - far))
    col = jax.nn.sigmoid(p @ w.T + b[None, :])
    return jnp.where(m, col, jnp.zeros_like(col)), margin


# ---------------------------------- main ------------------------------------ #
if __name__ == "__main__":
    key = jax.random.PRNGKey(0)
    k_xy, k_jit = jax.random.split(key)

    n_rays = 5000          # -> 2 grid tiles of 4096 rays (padded)

    # Rays, generated directly coordinate-major (3, N): origins on the z=0
    # plane, directions ~ +z (some hit the sphere, some miss / diverge and
    # fail the `dist < far` test).
    xy = jax.random.uniform(k_xy, (2, n_rays), minval=-1.5, maxval=1.5)
    origins_cm = jnp.concatenate([xy, jnp.zeros((1, n_rays))], axis=0)
    dirs = jnp.concatenate(
        [0.05 * jax.random.normal(k_jit, (2, n_rays)),
         jnp.ones((1, n_rays))], axis=0)
    directions_cm = dirs / jnp.linalg.norm(dirs, axis=0, keepdims=True)
    origins_cm = origins_cm.astype(jnp.float32)
    directions_cm = directions_cm.astype(jnp.float32)

    # Deterministic "implicit_fn" parameters (sphere SDF + linear color head).
    center = jnp.array([0.0, 0.0, 2.0], jnp.float32)
    radius = jnp.array([0.7], jnp.float32)
    w = (jnp.arange(9, dtype=jnp.float32).reshape(3, 3) * 0.1 - 0.4)
    b = jnp.array([0.1, -0.2, 0.3], jnp.float32)

    color_cm = sphere_tracing_render_cm(origins_cm, directions_cm,
                                        center, radius, w, b)
    color_cm = jax.block_until_ready(color_cm)
    assert color_cm.shape == (3, n_rays)
    color = color_cm.T                                  # (N, 3) for comparison

    ref, margin = reference_render(origins_cm.T, directions_cm.T,
                                   center, radius, w, b)
    # Rays whose dist trajectory grazes the `far` threshold can legitimately
    # flip the mask under tiny rounding differences (q-carry vs p-carry);
    # exclude those from the elementwise comparison (must be a tiny fraction).
    stable = margin > 1e-3                       # (N, 1) broadcast over channels
    err = jnp.where(stable, jnp.abs(color - ref), 0.0)
    assert float(jnp.mean(stable)) > 0.99, "too many threshold-grazing rays"
    assert float(jnp.max(err)) < 1e-4, f"max abs err {float(jnp.max(err))}"

    print("KERNEL_OK")
</pallas_src>

<mosaic_0001>
module attributes {stable_mosaic.version = 11 : i64} {
  func.func @sphere_trace_kernel(%arg0: i32, %arg1: memref<3xf32, #tpu.memory_space<smem>>, %arg2: memref<1xf32, #tpu.memory_space<smem>>, %arg3: memref<3x3xf32, #tpu.memory_space<smem>>, %arg4: memref<3xf32, #tpu.memory_space<smem>>, %arg5: memref<3x32x128xf32, #tpu.memory_space<vmem>>, %arg6: memref<3x32x128xf32, #tpu.memory_space<vmem>>, %arg7: memref<3x32x128xf32, #tpu.memory_space<vmem>>) attributes {dimension_semantics = [#tpu.dimension_semantics<parallel>], iteration_bounds = array<i64: 2>, scalar_prefetch = 0 : i64, scratch_operands = 0 : i64, tpu.core_type = #tpu.core_type<tc>, window_params = [{transform_indices = @transform_0, window_bounds = array<i64: 3>}, {transform_indices = @transform_1, window_bounds = array<i64: 1>}, {transform_indices = @transform_2, window_bounds = array<i64: 3, 3>}, {transform_indices = @transform_3, window_bounds = array<i64: 3>}, {transform_indices = @transform_4, window_bounds = array<i64: 3, 32, 128>}, {transform_indices = @transform_5, window_bounds = array<i64: 3, 32, 128>}, {transform_indices = @transform_6, window_bounds = array<i64: 3, 32, 128>}]} {
    %c0 = arith.constant 0 : index
    %0 = memref.load %arg1[%c0] : memref<3xf32, #tpu.memory_space<smem>>
    %c1 = arith.constant 1 : index
    %1 = memref.load %arg1[%c1] : memref<3xf32, #tpu.memory_space<smem>>
    %c2 = arith.constant 2 : index
    %2 = memref.load %arg1[%c2] : memref<3xf32, #tpu.memory_space<smem>>
    %c0_0 = arith.constant 0 : index
    %3 = memref.load %arg2[%c0_0] : memref<1xf32, #tpu.memory_space<smem>>
    %c0_1 = arith.constant 0 : index
    %c0_2 = arith.constant 0 : index
    %4 = memref.load %arg3[%c0_1, %c0_2] : memref<3x3xf32, #tpu.memory_space<smem>>
    %c0_3 = arith.constant 0 : index
    %c1_4 = arith.constant 1 : index
    %5 = memref.load %arg3[%c0_3, %c1_4] : memref<3x3xf32, #tpu.memory_space<smem>>
    %c0_5 = arith.constant 0 : index
    %c2_6 = arith.constant 2 : index
    %6 = memref.load %arg3[%c0_5, %c2_6] : memref<3x3xf32, #tpu.memory_space<smem>>
    %c1_7 = arith.constant 1 : index
    %c0_8 = arith.constant 0 : index
    %7 = memref.load %arg3[%c1_7, %c0_8] : memref<3x3xf32, #tpu.memory_space<smem>>
    %c1_9 = arith.constant 1 : index
    %c1_10 = arith.constant 1 : index
    %8 = memref.load %arg3[%c1_9, %c1_10] : memref<3x3xf32, #tpu.memory_space<smem>>
    %c1_11 = arith.constant 1 : index
    %c2_12 = arith.constant 2 : index
    %9 = memref.load %arg3[%c1_11, %c2_12] : memref<3x3xf32, #tpu.memory_space<smem>>
    %c2_13 = arith.constant 2 : index
    %c0_14 = arith.constant 0 : index
    %10 = memref.load %arg3[%c2_13, %c0_14] : memref<3x3xf32, #tpu.memory_space<smem>>
    %c2_15 = arith.constant 2 : index
    %c1_16 = arith.constant 1 : index
    %11 = memref.load %arg3[%c2_15, %c1_16] : memref<3x3xf32, #tpu.memory_space<smem>>
    %c2_17 = arith.constant 2 : index
    %c2_18 = arith.constant 2 : index
    %12 = memref.load %arg3[%c2_17, %c2_18] : memref<3x3xf32, #tpu.memory_space<smem>>
    %13 = arith.mulf %4, %0 : f32
    %14 = arith.mulf %5, %1 : f32
    %15 = arith.addf %13, %14 : f32
    %16 = arith.mulf %6, %2 : f32
    %17 = arith.addf %15, %16 : f32
    %c0_19 = arith.constant 0 : index
    %18 = memref.load %arg4[%c0_19] : memref<3xf32, #tpu.memory_space<smem>>
    %19 = arith.addf %17, %18 : f32
    %20 = arith.mulf %7, %0 : f32
    %21 = arith.mulf %8, %1 : f32
    %22 = arith.addf %20, %21 : f32
    %23 = arith.mulf %9, %2 : f32
    %24 = arith.addf %22, %23 : f32
    %c1_20 = arith.constant 1 : index
    %25 = memref.load %arg4[%c1_20] : memref<3xf32, #tpu.memory_space<smem>>
    %26 = arith.addf %24, %25 : f32
    %27 = arith.mulf %10, %0 : f32
    %28 = arith.mulf %11, %1 : f32
    %29 = arith.addf %27, %28 : f32
    %30 = arith.mulf %12, %2 : f32
    %31 = arith.addf %29, %30 : f32
    %c2_21 = arith.constant 2 : index
    %32 = memref.load %arg4[%c2_21] : memref<3xf32, #tpu.memory_space<smem>>
    %33 = arith.addf %31, %32 : f32
    %cst = arith.constant 0xFF800000 : f32
    %34 = vector.broadcast %cst : f32 to vector<32x128xf32>
    %cst_22 = arith.constant 0.000000e+00 : f32
    %35 = vector.broadcast %cst_22 : f32 to vector<32x128xf32>
    %c0_i32 = arith.constant 0 : i32
    %c1_i32 = arith.constant 1 : i32
    %36 = arith.muli %c0_i32, %c1_i32 : i32
    %c0_i32_23 = arith.constant 0 : i32
    %37 = arith.addi %c0_i32_23, %36 : i32
    %c32_i32 = arith.constant 32 : i32
    %38 = arith.muli %37, %c32_i32 : i32
    %39 = tpu.assume_multiple %38, 32 : i32
    %c0_24 = arith.constant 0 : index
    %40 = arith.index_cast %39 : i32 to index
    %c0_25 = arith.constant 0 : index
    %41 = vector.load %arg5[%c0_24, %40, %c0_25] : memref<3x32x128xf32, #tpu.memory_space<vmem>>, vector<1x32x128xf32>
    %42 = vector.shape_cast %41 : vector<1x32x128xf32> to vector<32x128xf32>
    %43 = vector.broadcast %0 : f32 to vector<32x128xf32>
    %44 = arith.subf %42, %43 : vector<32x128xf32>
    %c1_26 = arith.constant 1 : index
    %45 = arith.index_cast %39 : i32 to index
    %c0_27 = arith.constant 0 : index
    %46 = vector.load %arg5[%c1_26, %45, %c0_27] : memref<3x32x128xf32, #tpu.memory_space<vmem>>, vector<1x32x128xf32>
    %47 = vector.shape_cast %46 : vector<1x32x128xf32> to vector<32x128xf32>
    %48 = vector.broadcast %1 : f32 to vector<32x128xf32>
    %49 = arith.subf %47, %48 : vector<32x128xf32>
    %c2_28 = arith.constant 2 : index
    %50 = arith.index_cast %39 : i32 to index
    %c0_29 = arith.constant 0 : index
    %51 = vector.load %arg5[%c2_28, %50, %c0_29] : memref<3x32x128xf32, #tpu.memory_space<vmem>>, vector<1x32x128xf32>
    %52 = vector.shape_cast %51 : vector<1x32x128xf32> to vector<32x128xf32>
    %53 = vector.broadcast %2 : f32 to vector<32x128xf32>
    %54 = arith.subf %52, %53 : vector<32x128xf32>
    %c0_30 = arith.constant 0 : index
    %55 = arith.index_cast %39 : i32 to index
    %c0_31 = arith.constant 0 : index
    %56 = vector.load %arg6[%c0_30, %55, %c0_31] : memref<3x32x128xf32, #tpu.memory_space<vmem>>, vector<1x32x128xf32>
    %57 = vector.shape_cast %56 : vector<1x32x128xf32> to vector<32x128xf32>
    %c1_32 = arith.constant 1 : index
    %58 = arith.index_cast %39 : i32 to index
    %c0_33 = arith.constant 0 : index
    %59 = vector.load %arg6[%c1_32, %58, %c0_33] : memref<3x32x128xf32, #tpu.memory_space<vmem>>, vector<1x32x128xf32>
    %60 = vector.shape_cast %59 : vector<1x32x128xf32> to vector<32x128xf32>
    %c2_34 = arith.constant 2 : index
    %61 = arith.index_cast %39 : i32 to index
    %c0_35 = arith.constant 0 : index
    %62 = vector.load %arg6[%c2_34, %61, %c0_35] : memref<3x32x128xf32, #tpu.memory_space<vmem>>, vector<1x32x128xf32>
    %63 = vector.shape_cast %62 : vector<1x32x128xf32> to vector<32x128xf32>
    %c0_i32_36 = arith.constant 0 : i32
    %64 = arith.mulf %44, %44 : vector<32x128xf32>
    %65 = arith.mulf %49, %49 : vector<32x128xf32>
    %66 = arith.addf %64, %65 : vector<32x128xf32>
    %67 = arith.mulf %54, %54 : vector<32x128xf32>
    %68 = arith.addf %66, %67 : vector<32x128xf32>
    %69 = math.sqrt %68 : vector<32x128xf32>
    %70 = vector.broadcast %3 : f32 to vector<32x128xf32>
    %71 = arith.subf %69, %70 : vector<32x128xf32>
    %72 = arith.mulf %71, %57 : vector<32x128xf32>
    %73 = arith.addf %44, %72 : vector<32x128xf32>
    %74 = arith.mulf %71, %60 : vector<32x128xf32>
    %75 = arith.addf %49, %74 : vector<32x128xf32>
    %76 = arith.mulf %71, %63 : vector<32x128xf32>
    %77 = arith.addf %54, %76 : vector<32x128xf32>
    %78 = arith.maximumf %34, %71 : vector<32x128xf32>
    %c1_i32_37 = arith.constant 1 : i32
    %79 = arith.mulf %73, %73 : vector<32x128xf32>
    %80 = arith.mulf %75, %75 : vector<32x128xf32>
    %81 = arith.addf %79, %80 : vector<32x128xf32>
    %82 = arith.mulf %77, %77 : vector<32x128xf32>
    %83 = arith.addf %81, %82 : vector<32x128xf32>
    %84 = math.sqrt %83 : vector<32x128xf32>
    %85 = vector.broadcast %3 : f32 to vector<32x128xf32>
    %86 = arith.subf %84, %85 : vector<32x128xf32>
    %87 = arith.mulf %86, %57 : vector<32x128xf32>
    %88 = arith.addf %73, %87 : vector<32x128xf32>
    %89 = arith.mulf %86, %60 : vector<32x128xf32>
    %90 = arith.addf %75, %89 : vector<32x128xf32>
    %91 = arith.mulf %86, %63 : vector<32x128xf32>
    %92 = arith.addf %77, %91 : vector<32x128xf32>
    %93 = arith.maximumf %78, %86 : vector<32x128xf32>
    %c2_i32 = arith.constant 2 : i32
    %94 = arith.mulf %88, %88 : vector<32x128xf32>
    %95 = arith.mulf %90, %90 : vector<32x128xf32>
    %96 = arith.addf %94, %95 : vector<32x128xf32>
    %97 = arith.mulf %92, %92 : vector<32x128xf32>
    %98 = arith.addf %96, %97 : vector<32x128xf32>
    %99 = math.sqrt %98 : vector<32x128xf32>
    %100 = vector.broadcast %3 : f32 to vector<32x128xf32>
    %101 = arith.subf %99, %100 : vector<32x128xf32>
    %102 = arith.mulf %101, %57 : vector<32x128xf32>
    %103 = arith.addf %88, %102 : vector<32x128xf32>
    %104 = arith.mulf %101, %60 : vector<32x128xf32>
    %105 = arith.addf %90, %104 : vector<32x128xf32>
    %106 = arith.mulf %101, %63 : vector<32x128xf32>
    %107 = arith.addf %92, %106 : vector<32x128xf32>
    %108 = arith.maximumf %93, %101 : vector<32x128xf32>
    %c3_i32 = arith.constant 3 : i32
    %109 = arith.mulf %103, %103 : vector<32x128xf32>
    %110 = arith.mulf %105, %105 : vector<32x128xf32>
    %111 = arith.addf %109, %110 : vector<32x128xf32>
    %112 = arith.mulf %107, %107 : vector<32x128xf32>
    %113 = arith.addf %111, %112 : vector<32x128xf32>
    %114 = math.sqrt %113 : vector<32x128xf32>
    %115 = vector.broadcast %3 : f32 to vector<32x128xf32>
    %116 = arith.subf %114, %115 : vector<32x128xf32>
    %117 = arith.mulf %116, %57 : vector<32x128xf32>
    %118 = arith.addf %103, %117 : vector<32x128xf32>
    %119 = arith.mulf %116, %60 : vector<32x128xf32>
    %120 = arith.addf %105, %119 : vector<32x128xf32>
    %121 = arith.mulf %116, %63 : vector<32x128xf32>
    %122 = arith.addf %107, %121 : vector<32x128xf32>
    %123 = arith.maximumf %108, %116 : vector<32x128xf32>
    %c4_i32 = arith.constant 4 : i32
    %124 = arith.mulf %118, %118 : vector<32x128xf32>
    %125 = arith.mulf %120, %120 : vector<32x128xf32>
    %126 = arith.addf %124, %125 : vector<32x128xf32>
    %127 = arith.mulf %122, %122 : vector<32x128xf32>
    %128 = arith.addf %126, %127 : vector<32x128xf32>
    %129 = math.sqrt %128 : vector<32x128xf32>
    %130 = vector.broadcast %3 : f32 to vector<32x128xf32>
    %131 = arith.subf %129, %130 : vector<32x128xf32>
    %132 = arith.mulf %131, %57 : vector<32x128xf32>
    %133 = arith.addf %118, %132 : vector<32x128xf32>
    %134 = arith.mulf %131, %60 : vector<32x128xf32>
    %135 = arith.addf %120, %134 : vector<32x128xf32>
    %136 = arith.mulf %131, %63 : vector<32x128xf32>
    %137 = arith.addf %122, %136 : vector<32x128xf32>
    %138 = arith.maximumf %123, %131 : vector<32x128xf32>
    %c5_i32 = arith.constant 5 : i32
    %139 = arith.mulf %133, %133 : vector<32x128xf32>
    %140 = arith.mulf %135, %135 : vector<32x128xf32>
    %141 = arith.addf %139, %140 : vector<32x128xf32>
    %142 = arith.mulf %137, %137 : vector<32x128xf32>
    %143 = arith.addf %141, %142 : vector<32x128xf32>
    %144 = math.sqrt %143 : vector<32x128xf32>
    %145 = vector.broadcast %3 : f32 to vector<32x128xf32>
    %146 = arith.subf %144, %145 : vector<32x128xf32>
    %147 = arith.mulf %146, %57 : vector<32x128xf32>
    %148 = arith.addf %133, %147 : vector<32x128xf32>
    %149 = arith.mulf %146, %60 : vector<32x128xf32>
    %150 = arith.addf %135, %149 : vector<32x128xf32>
    %151 = arith.mulf %146, %63 : vector<32x128xf32>
    %152 = arith.addf %137, %151 : vector<32x128xf32>
    %153 = arith.maximumf %138, %146 : vector<32x128xf32>
    %c6_i32 = arith.constant 6 : i32
    %154 = arith.mulf %148, %148 : vector<32x128xf32>
    %155 = arith.mulf %150, %150 : vector<32x128xf32>
    %156 = arith.addf %154, %155 : vector<32x128xf32>
    %157 = arith.mulf %152, %152 : vector<32x128xf32>
    %158 = arith.addf %156, %157 : vector<32x128xf32>
    %159 = math.sqrt %158 : vector<32x128xf32>
    %160 = vector.broadcast %3 : f32 to vector<32x128xf32>
    %161 = arith.subf %159, %160 : vector<32x128xf32>
    %162 = arith.mulf %161, %57 : vector<32x128xf32>
    %163 = arith.addf %148, %162 : vector<32x128xf32>
    %164 = arith.mulf %161, %60 : vector<32x128xf32>
    %165 = arith.addf %150, %164 : vector<32x128xf32>
    %166 = arith.mulf %161, %63 : vector<32x128xf32>
    %167 = arith.addf %152, %166 : vector<32x128xf32>
    %168 = arith.maximumf %153, %161 : vector<32x128xf32>
    %c7_i32 = arith.constant 7 : i32
    %169 = arith.mulf %163, %163 : vector<32x128xf32>
    %170 = arith.mulf %165, %165 : vector<32x128xf32>
    %171 = arith.addf %169, %170 : vector<32x128xf32>
    %172 = arith.mulf %167, %167 : vector<32x128xf32>
    %173 = arith.addf %171, %172 : vector<32x128xf32>
    %174 = math.sqrt %173 : vector<32x128xf32>
    %175 = vector.broadcast %3 : f32 to vector<32x128xf32>
    %176 = arith.subf %174, %175 : vector<32x128xf32>
    %177 = arith.mulf %176, %57 : vector<32x128xf32>
    %178 = arith.addf %163, %177 : vector<32x128xf32>
    %179 = arith.mulf %176, %60 : vector<32x128xf32>
    %180 = arith.addf %165, %179 : vector<32x128xf32>
    %181 = arith.mulf %176, %63 : vector<32x128xf32>
    %182 = arith.addf %167, %181 : vector<32x128xf32>
    %183 = arith.maximumf %168, %176 : vector<32x128xf32>
    %c8_i32 = arith.constant 8 : i32
    %184 = arith.mulf %178, %178 : vector<32x128xf32>
    %185 = arith.mulf %180, %180 : vector<32x128xf32>
    %186 = arith.addf %184, %185 : vector<32x128xf32>
    %187 = arith.mulf %182, %182 : vector<32x128xf32>
    %188 = arith.addf %186, %187 : vector<32x128xf32>
    %189 = math.sqrt %188 : vector<32x128xf32>
    %190 = vector.broadcast %3 : f32 to vector<32x128xf32>
    %191 = arith.subf %189, %190 : vector<32x128xf32>
    %192 = arith.mulf %191, %57 : vector<32x128xf32>
    %193 = arith.addf %178, %192 : vector<32x128xf32>
    %194 = arith.mulf %191, %60 : vector<32x128xf32>
    %195 = arith.addf %180, %194 : vector<32x128xf32>
    %196 = arith.mulf %191, %63 : vector<32x128xf32>
    %197 = arith.addf %182, %196 : vector<32x128xf32>
    %198 = arith.maximumf %183, %191 : vector<32x128xf32>
    %c9_i32 = arith.constant 9 : i32
    %199 = arith.mulf %193, %193 : vector<32x128xf32>
    %200 = arith.mulf %195, %195 : vector<32x128xf32>
    %201 = arith.addf %199, %200 : vector<32x128xf32>
    %202 = arith.mulf %197, %197 : vector<32x128xf32>
    %203 = arith.addf %201, %202 : vector<32x128xf32>
    %204 = math.sqrt %203 : vector<32x128xf32>
    %205 = vector.broadcast %3 : f32 to vector<32x128xf32>
    %206 = arith.subf %204, %205 : vector<32x128xf32>
    %207 = arith.mulf %206, %57 : vector<32x128xf32>
    %208 = arith.addf %193, %207 : vector<32x128xf32>
    %209 = arith.mulf %206, %60 : vector<32x128xf32>
    %210 = arith.addf %195, %209 : vector<32x128xf32>
    %211 = arith.mulf %206, %63 : vector<32x128xf32>
    %212 = arith.addf %197, %211 : vector<32x128xf32>
    %213 = arith.maximumf %198, %206 : vector<32x128xf32>
    %c10_i32 = arith.constant 10 : i32
    %214 = arith.mulf %208, %208 : vector<32x128xf32>
    %215 = arith.mulf %210, %210 : vector<32x128xf32>
    %216 = arith.addf %214, %215 : vector<32x128xf32>
    %217 = arith.mulf %212, %212 : vector<32x128xf32>
    %218 = arith.addf %216, %217 : vector<32x128xf32>
    %219 = math.sqrt %218 : vector<32x128xf32>
    %220 = vector.broadcast %3 : f32 to vector<32x128xf32>
    %221 = arith.subf %219, %220 : vector<32x128xf32>
    %222 = arith.mulf %221, %57 : vector<32x128xf32>
    %223 = arith.addf %208, %222 : vector<32x128xf32>
    %224 = arith.mulf %221, %60 : vector<32x128xf32>
    %225 = arith.addf %210, %224 : vector<32x128xf32>
    %226 = arith.mulf %221, %63 : vector<32x128xf32>
    %227 = arith.addf %212, %226 : vector<32x128xf32>
    %228 = arith.maximumf %213, %221 : vector<32x128xf32>
    %c11_i32 = arith.constant 11 : i32
    %229 = arith.mulf %223, %223 : vector<32x128xf32>
    %230 = arith.mulf %225, %225 : vector<32x128xf32>
    %231 = arith.addf %229, %230 : vector<32x128xf32>
    %232 = arith.mulf %227, %227 : vector<32x128xf32>
    %233 = arith.addf %231, %232 : vector<32x128xf32>
    %234 = math.sqrt %233 : vector<32x128xf32>
    %235 = vector.broadcast %3 : f32 to vector<32x128xf32>
    %236 = arith.subf %234, %235 : vector<32x128xf32>
    %237 = arith.mulf %236, %57 : vector<32x128xf32>
    %238 = arith.addf %223, %237 : vector<32x128xf32>
    %239 = arith.mulf %236, %60 : vector<32x128xf32>
    %240 = arith.addf %225, %239 : vector<32x128xf32>
    %241 = arith.mulf %236, %63 : vector<32x128xf32>
    %242 = arith.addf %227, %241 : vector<32x128xf32>
    %243 = arith.maximumf %228, %236 : vector<32x128xf32>
    %c12_i32 = arith.constant 12 : i32
    %244 = arith.mulf %238, %238 : vector<32x128xf32>
    %245 = arith.mulf %240, %240 : vector<32x128xf32>
    %246 = arith.addf %244, %245 : vector<32x128xf32>
    %247 = arith.mulf %242, %242 : vector<32x128xf32>
    %248 = arith.addf %246, %247 : vector<32x128xf32>
    %249 = math.sqrt %248 : vector<32x128xf32>
    %250 = vector.broadcast %3 : f32 to vector<32x128xf32>
    %251 = arith.subf %249, %250 : vector<32x128xf32>
    %252 = arith.mulf %251, %57 : vector<32x128xf32>
    %253 = arith.addf %238, %252 : vector<32x128xf32>
    %254 = arith.mulf %251, %60 : vector<32x128xf32>
    %255 = arith.addf %240, %254 : vector<32x128xf32>
    %256 = arith.mulf %251, %63 : vector<32x128xf32>
    %257 = arith.addf %242, %256 : vector<32x128xf32>
    %258 = arith.maximumf %243, %251 : vector<32x128xf32>
    %c13_i32 = arith.constant 13 : i32
    %259 = arith.mulf %253, %253 : vector<32x128xf32>
    %260 = arith.mulf %255, %255 : vector<32x128xf32>
    %261 = arith.addf %259, %260 : vector<32x128xf32>
    %262 = arith.mulf %257, %257 : vector<32x128xf32>
    %263 = arith.addf %261, %262 : vector<32x128xf32>
    %264 = math.sqrt %263 : vector<32x128xf32>
    %265 = vector.broadcast %3 : f32 to vector<32x128xf32>
    %266 = arith.subf %264, %265 : vector<32x128xf32>
    %267 = arith.mulf %266, %57 : vector<32x128xf32>
    %268 = arith.addf %253, %267 : vector<32x128xf32>
    %269 = arith.mulf %266, %60 : vector<32x128xf32>
    %270 = arith.addf %255, %269 : vector<32x128xf32>
    %271 = arith.mulf %266, %63 : vector<32x128xf32>
    %272 = arith.addf %257, %271 : vector<32x128xf32>
    %273 = arith.maximumf %258, %266 : vector<32x128xf32>
    %c14_i32 = arith.constant 14 : i32
    %274 = arith.mulf %268, %268 : vector<32x128xf32>
    %275 = arith.mulf %270, %270 : vector<32x128xf32>
    %276 = arith.addf %274, %275 : vector<32x128xf32>
    %277 = arith.mulf %272, %272 : vector<32x128xf32>
    %278 = arith.addf %276, %277 : vector<32x128xf32>
    %279 = math.sqrt %278 : vector<32x128xf32>
    %280 = vector.broadcast %3 : f32 to vector<32x128xf32>
    %281 = arith.subf %279, %280 : vector<32x128xf32>
    %282 = arith.mulf %281, %57 : vector<32x128xf32>
    %283 = arith.addf %268, %282 : vector<32x128xf32>
    %284 = arith.mulf %281, %60 : vector<32x128xf32>
    %285 = arith.addf %270, %284 : vector<32x128xf32>
    %286 = arith.mulf %281, %63 : vector<32x128xf32>
    %287 = arith.addf %272, %286 : vector<32x128xf32>
    %288 = arith.maximumf %273, %281 : vector<32x128xf32>
    %c15_i32 = arith.constant 15 : i32
    %289 = arith.mulf %283, %283 : vector<32x128xf32>
    %290 = arith.mulf %285, %285 : vector<32x128xf32>
    %291 = arith.addf %289, %290 : vector<32x128xf32>
    %292 = arith.mulf %287, %287 : vector<32x128xf32>
    %293 = arith.addf %291, %292 : vector<32x128xf32>
    %294 = math.sqrt %293 : vector<32x128xf32>
    %295 = vector.broadcast %3 : f32 to vector<32x128xf32>
    %296 = arith.subf %294, %295 : vector<32x128xf32>
    %297 = arith.mulf %296, %57 : vector<32x128xf32>
    %298 = arith.addf %283, %297 : vector<32x128xf32>
    %299 = arith.mulf %296, %60 : vector<32x128xf32>
    %300 = arith.addf %285, %299 : vector<32x128xf32>
    %301 = arith.mulf %296, %63 : vector<32x128xf32>
    %302 = arith.addf %287, %301 : vector<32x128xf32>
    %303 = arith.maximumf %288, %296 : vector<32x128xf32>
    %cst_38 = arith.constant 1.000000e+01 : f32
    %304 = vector.broadcast %cst_38 : f32 to vector<32x128xf32>
    %305 = arith.cmpf olt, %303, %304 : vector<32x128xf32>
    %306 = vector.broadcast %4 : f32 to vector<32x128xf32>
    %307 = arith.mulf %306, %298 : vector<32x128xf32>
    %308 = vector.broadcast %5 : f32 to vector<32x128xf32>
    %309 = arith.mulf %308, %300 : vector<32x128xf32>
    %310 = arith.addf %307, %309 : vector<32x128xf32>
    %311 = vector.broadcast %6 : f32 to vector<32x128xf32>
    %312 = arith.mulf %311, %302 : vector<32x128xf32>
    %313 = arith.addf %310, %312 : vector<32x128xf32>
    %314 = vector.broadcast %19 : f32 to vector<32x128xf32>
    %315 = arith.addf %313, %314 : vector<32x128xf32>
    %cst_39 = arith.constant 5.000000e-01 : f32
    %316 = vector.broadcast %cst_39 : f32 to vector<32x128xf32>
    %317 = arith.mulf %316, %315 : vector<32x128xf32>
    %318 = math.tanh %317 : vector<32x128xf32>
    %cst_40 = arith.constant 5.000000e-01 : f32
    %319 = vector.broadcast %cst_40 : f32 to vector<32x128xf32>
    %320 = arith.mulf %319, %318 : vector<32x128xf32>
    %cst_41 = arith.constant 5.000000e-01 : f32
    %321 = vector.broadcast %cst_41 : f32 to vector<32x128xf32>
    %322 = arith.addf %320, %321 : vector<32x128xf32>
    %323 = arith.select %305, %322, %35 : vector<32x128xi1>, vector<32x128xf32>
    %c0_42 = arith.constant 0 : index
    %324 = arith.index_cast %39 : i32 to index
    %c0_43 = arith.constant 0 : index
    %325 = vector.load %arg7[%c0_42, %324, %c0_43] : memref<3x32x128xf32, #tpu.memory_space<vmem>>, vector<1x32x128xf32>
    %326 = vector.shape_cast %325 : vector<1x32x128xf32> to vector<32x128xf32>
    %327 = vector.shape_cast %323 : vector<32x128xf32> to vector<1x32x128xf32>
    tpu.vector_store %arg7[%c0_42, %324, %c0_43], %327 {strides = array<i32>} : memref<3x32x128xf32, #tpu.memory_space<vmem>>, vector<1x32x128xf32>,
    %328 = vector.broadcast %7 : f32 to vector<32x128xf32>
    %329 = arith.mulf %328, %298 : vector<32x128xf32>
    %330 = vector.broadcast %8 : f32 to vector<32x128xf32>
    %331 = arith.mulf %330, %300 : vector<32x128xf32>
    %332 = arith.addf %329, %331 : vector<32x128xf32>
    %333 = vector.broadcast %9 : f32 to vector<32x128xf32>
    %334 = arith.mulf %333, %302 : vector<32x128xf32>
    %335 = arith.addf %332, %334 : vector<32x128xf32>
    %336 = vector.broadcast %26 : f32 to vector<32x128xf32>
    %337 = arith.addf %335, %336 : vector<32x128xf32>
    %cst_44 = arith.constant 5.000000e-01 : f32
    %338 = vector.broadcast %cst_44 : f32 to vector<32x128xf32>
    %339 = arith.mulf %338, %337 : vector<32x128xf32>
    %340 = math.tanh %339 : vector<32x128xf32>
    %cst_45 = arith.constant 5.000000e-01 : f32
    %341 = vector.broadcast %cst_45 : f32 to vector<32x128xf32>
    %342 = arith.mulf %341, %340 : vector<32x128xf32>
    %cst_46 = arith.constant 5.000000e-01 : f32
    %343 = vector.broadcast %cst_46 : f32 to vector<32x128xf32>
    %344 = arith.addf %342, %343 : vector<32x128xf32>
    %345 = arith.select %305, %344, %35 : vector<32x128xi1>, vector<32x128xf32>
    %c1_47 = arith.constant 1 : index
    %346 = arith.index_cast %39 : i32 to index
    %c0_48 = arith.constant 0 : index
    %347 = vector.load %arg7[%c1_47, %346, %c0_48] : memref<3x32x128xf32, #tpu.memory_space<vmem>>, vector<1x32x128xf32>
    %348 = vector.shape_cast %347 : vector<1x32x128xf32> to vector<32x128xf32>
    %349 = vector.shape_cast %345 : vector<32x128xf32> to vector<1x32x128xf32>
    tpu.vector_store %arg7[%c1_47, %346, %c0_48], %349 {strides = array<i32>} : memref<3x32x128xf32, #tpu.memory_space<vmem>>, vector<1x32x128xf32>,
    %350 = vector.broadcast %10 : f32 to vector<32x128xf32>
    %351 = arith.mulf %350, %298 : vector<32x128xf32>
    %352 = vector.broadcast %11 : f32 to vector<32x128xf32>
    %353 = arith.mulf %352, %300 : vector<32x128xf32>
    %354 = arith.addf %351, %353 : vector<32x128xf32>
    %355 = vector.broadcast %12 : f32 to vector<32x128xf32>
    %356 = arith.mulf %355, %302 : vector<32x128xf32>
    %357 = arith.addf %354, %356 : vector<32x128xf32>
    %358 = vector.broadcast %33 : f32 to vector<32x128xf32>
    %359 = arith.addf %357, %358 : vector<32x128xf32>
    %cst_49 = arith.constant 5.000000e-01 : f32
    %360 = vector.broadcast %cst_49 : f32 to vector<32x128xf32>
    %361 = arith.mulf %360, %359 : vector<32x128xf32>
    %362 = math.tanh %361 : vector<32x128xf32>
    %cst_50 = arith.constant 5.000000e-01 : f32
    %363 = vector.broadcast %cst_50 : f32 to vector<32x128xf32>
    %364 = arith.mulf %363, %362 : vector<32x128xf32>
    %cst_51 = arith.constant 5.000000e-01 : f32
    %365 = vector.broadcast %cst_51 : f32 to vector<32x128xf32>
    %366 = arith.addf %364, %365 : vector<32x128xf32>
    %367 = arith.select %305, %366, %35 : vector<32x128xi1>, vector<32x128xf32>
    %c2_52 = arith.constant 2 : index
    %368 = arith.index_cast %39 : i32 to index
    %c0_53 = arith.constant 0 : index
    %369 = vector.load %arg7[%c2_52, %368, %c0_53] : memref<3x32x128xf32, #tpu.memory_space<vmem>>, vector<1x32x128xf32>
    %370 = vector.shape_cast %369 : vector<1x32x128xf32> to vector<32x128xf32>
    %371 = vector.shape_cast %367 : vector<32x128xf32> to vector<1x32x128xf32>
    tpu.vector_store %arg7[%c2_52, %368, %c0_53], %371 {strides = array<i32>} : memref<3x32x128xf32, #tpu.memory_space<vmem>>, vector<1x32x128xf32>,
    %c1_i32_54 = arith.constant 1 : i32
    return
  }
  func.func @transform_0(%arg0: i32) -> i32 {
    %c0_i32 = arith.constant 0 : i32
    %c0_i32_0 = arith.constant 0 : i32
    return %c0_i32 : i32
  }
  func.func @transform_1(%arg0: i32) -> i32 {
    %c0_i32 = arith.constant 0 : i32
    %c0_i32_0 = arith.constant 0 : i32
    return %c0_i32 : i32
  }
  func.func @transform_2(%arg0: i32) -> (i32, i32) {
    %c0_i32 = arith.constant 0 : i32
    %c0_i32_0 = arith.constant 0 : i32
    %c0_i32_1 = arith.constant 0 : i32
    return %c0_i32, %c0_i32_0 : i32, i32
  }
  func.func @transform_3(%arg0: i32) -> i32 {
    %c0_i32 = arith.constant 0 : i32
    %c0_i32_0 = arith.constant 0 : i32
    return %c0_i32 : i32
  }
  func.func @transform_4(%arg0: i32) -> (i32, i32, i32) {
    %c0_i32 = arith.constant 0 : i32
    %c0_i32_0 = arith.constant 0 : i32
    %c0_i32_1 = arith.constant 0 : i32
    return %c0_i32, %arg0, %c0_i32_0 : i32, i32, i32
  }
  func.func @transform_5(%arg0: i32) -> (i32, i32, i32) {
    %c0_i32 = arith.constant 0 : i32
    %c0_i32_0 = arith.constant 0 : i32
    %c0_i32_1 = arith.constant 0 : i32
    return %c0_i32, %arg0, %c0_i32_0 : i32, i32, i32
  }
  func.func @transform_6(%arg0: i32) -> (i32, i32, i32) {
    %c0_i32 = arith.constant 0 : i32
    %c0_i32_0 = arith.constant 0 : i32
    %c0_i32_1 = arith.constant 0 : i32
    return %c0_i32, %arg0, %c0_i32_0 : i32, i32, i32
  }
}

</mosaic_0001>

<bundles_post_ra>
// kernel: tpu_custom_call.1
= control target key start
LH: loop header
LB: loop body
LE: loop exit
PB: predicated region body
PF: predicated region fallthrough
CT: control target
= control target key end

     0   :  { %s4876_s0 = inlined_call_operand.vmem [shape: f32[3], index: 0, kind: input, shape index: {}]   ;;  %s4877_s1 = inlined_call_operand.<no memory space> [shape: f32[1], index: 1, kind: input, shape index: {}]   ;;  %s4878_s2 = inlined_call_operand.vmem [shape: f32[3,3], index: 2, kind: input, shape index: {}]   ;;  %s4879_s3 = inlined_call_operand.vmem [shape: f32[3], index: 3, kind: input, shape index: {}]   ;;  %s4880_s4 = inlined_call_operand.hbm [shape: f32[3,64,128], index: 4, kind: input, shape index: {}]   ;;  %s4881_s5 = inlined_call_operand.hbm [shape: f32[3,64,128], index: 5, kind: input, shape index: {}]   ;;  %s4882_s6 = inlined_call_operand.hbm [shape: f32[3,64,128], index: 6, kind: output, shape index: {}]  }
   0x1   :  { %4899 = sst [smem:[#allocation38_spill]] %s4876_s0 }
   0x2   :  { %4900 = sst [smem:[#allocation39_spill]] %s4878_s2 }
   0x3   :  { %4901 = sst [smem:[#allocation40_spill]] %s4879_s3 }
   0x4   :  { %4902 = sst [smem:[#allocation41_spill]] %s4880_s4 }
   0x5   :  { %4903 = sst [smem:[#allocation42_spill]] %s4881_s5 }
   0x6   :  { %11 = sst [smem:[#allocation2]] %s4877_s1 }
   0x7   :  { %12 = vsyncpa [#allocation6], 0 }
   0x8   :  { %13 = vsyncpa [#allocation8], 0 }
   0x9   :  { %14 = vsyncpa [#allocation4], 0 }
   0xa   :  { %16 = vsyncpa [#allocation4 + $0x1], 0 }
   0xb   :  { %17 = vsyncpa [#allocation12], 0 }
   0xc   :  { %19 = vsyncpa [#allocation12 + $0x1], 0 }
   0xd   :  { %20 = vsyncpa [#allocation5], 0 }
   0xe   :  { %22 = vsyncpa [#allocation5 + $0x1], 0  ;;  %s2607_s23 = smov 0   ;;  %s2609_s24 = smov 0  }
   0xf   :  { %s2611_s25 = smov 0   ;;  %s2613_s26 = smov 0  }
  0x10 LB: > { %4904 = sst [smem:[#allocation27_spill]] %s2537_s24  ;;  %s2628_s1 = sadd.s32 4294967295, %s2545_s26   ;;  %s2545_s26 = sphi %s2613_s26, %s4954_s26   ;;  %s2541_s25 = sphi %s2611_s25, %s4957_s25   ;;  %s2537_s24 = sphi %s2609_s24, %s4956_s24   ;;  %s2533_s23 = sphi %s2607_s23, %s4955_s23  }
  0x11   : > { %4905 = sst [smem:[#allocation28_spill]] %s2541_s25  ;;  %s2097_s27 = sadd.s32 4294967294, %s2545_s26  }
  0x12   : > { %4906 = sst [smem:[#allocation29_spill]] %s2545_s26  ;;  %s2632_s28 = sadd.s32 1, %s2545_s26  }
  0x13   : > { %4907 = sst [smem:[#allocation30_spill]] %s2632_s28  ;;  %s119_s29 = sadd.s32 1, %s2541_s25 }
  0x14   : > { %s116_s30 = ssub.s32 %s2545_s26, %s2632_s28  ;;  %p126_p0 = scmp.ne.s32.totalorder %s2541_s25, %s2537_s24 }
  0x15   : > { %p117_p1 = scmp.eq.s32.totalorder %s116_s30, 0  ;;  %p127_p2 = scmp.eq.s32.totalorder %s2545_s26, 0 }
  0x16   : > { %p132_p3 = scmp.ne.s32.totalorder %s2537_s24, %s2533_s23  ;;  %p4883_p4 = scmp.eq.s32.totalorder %s2628_s1, 0 }
  0x17   : > { %s2644_s7 = scalar_select %p117_p1, %s2541_s25, %s119_s29  }
  0x18   : > { %p2646_p5 = por %p127_p2, %p126_p0  ;;  %p2652_p6 = por %p4883_p4, %p132_p3 }
  0x19   : > { %4908 = sst [smem:[#allocation31_spill]] %s2644_s7  ;;  %p182_p7 = scmp.eq.s32.totalorder %s2628_s1, 1 }
  0x1a   : > { %s4909_s8 = scalar_select %p2646_p5, 1, 0 }
  0x1b   : > { %s4910_s9 = scalar_select %p2652_p6, 1, 0 }
  0x1c   : > { %p188_p8 = scmp.eq.s32.totalorder %s2097_s27, 1  ;;  %p2098_p9 = scmp.ge.s32.totalorder %s2545_s26, 1 }
  0x1d   : > { %p195_p10 = scmp.lt.s32.totalorder %s2545_s26, 3  ;;  %p2659_p11 = por %p182_p7, %p126_p0 }
  0x1e   : > { %p2663_p12 = por %p188_p8, %p132_p3  ;;  %s4915_s2 = sld [smem:[#allocation39_spill]] }
  0x1f   : > { %s4911_s10 = scalar_select %p2659_p11, 1, 0 }
  0x20   : > { %s4912_s11 = scalar_select %p2663_p12, 1, 0 }
  0x21   : > { %p2667_p13 = pnand %p2098_p9, %p195_p10  ;;  %s4916_s0 = sld [smem:[#allocation38_spill]] }
  0x22   : > { %4913 = sst [smem:[#allocation32_spill]] %s4912_s11 }
  0x23   : > { %s4914_s12 = scalar_select %p2667_p13, 1, 0 }
  0x24   : > { %s222_s15 = sshll.u32 %s4915_s2, 4  ;;  %p2199_p1 = pneg %p2667_p13  ;;  %s223_s15 = int_to_ptr.vmem [resolvable:$true] %s222_s15 }
  0x25   : > { %s4918_s3 = sld [smem:[#allocation40_spill]]  ;;  %s2450_s27 = scalar_lea.vmem %s223_s15, 64 }
  0x26   : > { %p2681_p0 = pnand %p2199_p1, %p4883_p4  ;;  %p2451_p2 = scmp.ne.s32.totalorder %s223_s15, %s2450_s27 }
  0x27   : > { %s208_s18 = sshll.u32 %s4916_s0, 4  ;;  %p2458_p9 = scmp.lt.s32.totalorder %s223_s15, %s223_s15  ;;  %s209_s18 = int_to_ptr.vmem [resolvable:$true] %s208_s18 }
  0x28   : > { %p2452_p3 = pneg %p2681_p0  ;;  %p2459_p10 = scmp.lt.s32.totalorder %s2450_s27, %s2450_s27 }
  0x2a   : > { %p2453_p7 = pnand %p2452_p3, %p2451_p2  ;;  %p2460_p1 = por %p2459_p10, %p2458_p9 }
  0x2b   : > { %s233_s22 = sshll.u32 %s4918_s3, 4  ;;  %s2688_s22 = int_to_ptr.vmem [resolvable:$true] %s233_s22 }
  0x2c   : > { %p2454_p8 = pneg %p2453_p7 }
  0x2e   : > { %p2461_p4 = pnand %p2460_p1, %p2454_p8 }
  0x30   : > { %2464 = shalt.err (!%p2461_p4)
}
  0x31   : > { %s2547_s29 = smov [#allocation7]   ;;  %s2465_s30 = scalar_lea.vmem %s209_s18, 16 }
  0x32   : > { %2205 = dma.vmem_to_smem (!%p2681_p0), %s223_s15, 64, %s2547_s29, [#allocation8]  }
  0x33   : > { %p2466_p12 = scmp.ne.s32.totalorder %s209_s18, %s2465_s30  ;;  %p2473_p13 = scmp.lt.s32.totalorder %s209_s18, %s209_s18 }
  0x34   : > { %p2474_p5 = scmp.lt.s32.totalorder %s2465_s30, %s2465_s30 }
  0x35   : > { %p2468_p11 = pnand %p2466_p12, %p2452_p3 }
  0x36   : > { %p2475_p2 = por %p2474_p5, %p2473_p13 }
  0x37   : > { %p2469_p6 = pneg %p2468_p11 }
  0x39   : > { %p2476_p7 = pnand %p2475_p2, %p2469_p6 }
  0x3b   : > { %2479 = shalt.err (!%p2476_p7)
}
  0x3c   : > { %s2548_s13 = smov [#allocation3]   ;;  %s2480_s14 = scalar_lea.vmem %s2688_s22, 16 }
  0x3d   : > { %2202 = dma.vmem_to_smem (!%p2681_p0), %s209_s18, 16, %s2548_s13, [#allocation6]  }
  0x3e   : > { %p2481_p4 = scmp.ne.s32.totalorder %s2688_s22, %s2480_s14  ;;  %p2488_p11 = scmp.lt.s32.totalorder %s2688_s22, %s2688_s22 }
  0x3f   : > { %p2489_p9 = scmp.lt.s32.totalorder %s2480_s14, %s2480_s14 }
  0x40   : > { %p2483_p8 = pnand %p2481_p4, %p2452_p3 }
  0x41   : > { %p2490_p5 = por %p2489_p9, %p2488_p11 }
  0x42   : > { %p2484_p12 = pneg %p2483_p8 }
  0x44   : > { %p2491_p6 = pnand %p2490_p5, %p2484_p12 }
  0x46   : > { %2494 = shalt.err (!%p2491_p6)
}
  0x47   : > { %s2549_s15 = smov [#allocation9]   ;;  %p2102_p13 = scmp.ge.s32.totalorder %s2545_s26, 2 }
  0x48   : > { %2208 = dma.vmem_to_smem (!%p2681_p0), %s2688_s22, 16, %s2549_s15, [#allocation8]  }
  0x49   : > { %240 = sbr.rel (%p2102_p13) target bundleno = 108 (0x6c), region = 32 }
  0x50   : > { %s2716_s16 = sand.u32 1, %s2541_s25   ;;  %s2155_s18 = sshll.u32 %s2545_s26, 9 }
  0x51   : > { %s2158_s17 = smul.u32 96, %s2716_s16  ;;  %s2550_s19 = smov 1024  }
  0x52   : > { %p4919_p0 = scmp.ne.s32.totalorder %s4909_s8, 0  ;;  %s4920_s4 = sld [smem:[#allocation41_spill]] }
  0x53   : > { %s248_s30 = scalar_lea.vmem [#allocation10], %s2158_s17  ;;  %s2551_s14 = smov 512  }
  0x54   : > { %2168 = sst [smem:[#allocation15]] (%p4919_p0), %s2550_s19  ;;  %s267_s13 = sshll.u32 %s248_s30, 4  ;;  %s268_s13 = int_to_ptr.vmem [resolvable:$true] %s267_s13 }
  0x55   : > { %s2167_s20 = scalar_select %p4919_p0, [#allocation0], [#allocation20] }
  0x56   : > { %2169 = sst [smem:[#allocation15 + $0x1]] (%p4919_p0), %s2551_s14  ;;  %s2552_s15 = smov 4  }
  0x57   : > { %s259_s29 = sld [smem:[%s2167_s20]]   ;;  %s2553_s0 = smov 128  }
  0x58   : > { %s254_s27 = scalar_lea.hbm %s4920_s4, %s2155_s18  ;;  %2170 = sst [smem:[#allocation15 + $0x2]] (%p4919_p0), %s2552_s15 }
  0x59   : > { %2171 = sst [smem:[#allocation15 + $0x3]] (%p4919_p0), %s2553_s0  ;;  %s2554_s19 = smov 8  }
  0x5a   : > { %2172 = sst [smem:[#allocation15 + $0x4]] (%p4919_p0), %s2553_s0  ;;  %s245_s22 = scalar_lea.sflag [#allocation4], %s2716_s16 }
  0x5b   : > { %2173 = sst [smem:[#allocation15 + $0x5]] (%p4919_p0), %s2554_s19  ;;  %s2555_s2 = smov [#allocation14]  }
  0x5d   : > { %s2105_s21 = sshll.u32 %s259_s29, 26 }
  0x5e   : > { %s2106_s20 = sadd.s32 134217728, %s2105_s21 }
  0x5f   : > { %2174 = dma.general (%p4919_p0), %s254_s27, 1536, %s268_s13, %s245_s22, %s2555_s2, [#allocation15], %s2106_s20, 0  }
  0x60   : > { %s4921_s5 = sld [smem:[#allocation42_spill]]  ;;  %s294_s19 = scalar_lea.vmem [#allocation11], %s2158_s17 }
  0x61   : > { %s2175_s0 = scalar_select %p4919_p0, [#allocation0], [#allocation21] }
  0x62   : > { %s313_s29 = sshll.u32 %s294_s19, 4  ;;  %s2556_s3 = smov 1024   ;;  %s314_s29 = int_to_ptr.vmem [resolvable:$true] %s313_s29 }
  0x63   : > { %s305_s21 = sld [smem:[%s2175_s0]]   ;;  %s2557_s2 = smov 512  }
  0x64   : > { %2176 = sst [smem:[#allocation17]] (%p4919_p0), %s2556_s3  ;;  %s2558_s27 = smov 4  }
  0x65   : > { %2177 = sst [smem:[#allocation17 + $0x1]] (%p4919_p0), %s2557_s2  ;;  %s2559_s13 = smov 128  }
  0x66   : > { %s300_s15 = scalar_lea.hbm %s4921_s5, %s2155_s18  ;;  %2178 = sst [smem:[#allocation17 + $0x2]] (%p4919_p0), %s2558_s27 }
  0x67   : > { %2179 = sst [smem:[#allocation17 + $0x3]] (%p4919_p0), %s2559_s13  ;;  %s2560_s18 = smov 8  }
  0x68   : > { %2180 = sst [smem:[#allocation17 + $0x4]] (%p4919_p0), %s2559_s13  ;;  %s291_s22 = scalar_lea.sflag [#allocation12], %s2716_s16 }
  0x69   : > { %s2109_s17 = sshll.u32 %s305_s21, 26  ;;  %2181 = sst [smem:[#allocation17 + $0x5]] (%p4919_p0), %s2560_s18 }
  0x6a   : > { %s2110_s20 = sadd.s32 134217728, %s2109_s17  ;;  %s2561_s30 = smov [#allocation16]  }
  0x6b   : > { %2182 = dma.general (%p4919_p0), %s300_s15, 1536, %s314_s29, %s291_s22, %s2561_s30, [#allocation17], %s2110_s20, 0  }
  0x6c PF: > { %p4922_p3 = scmp.ne.s32.totalorder %s4914_s12, 0 }
  0x6e   : > { %338 = sbr.rel (%p4922_p3) target bundleno = 695 (0x2b7), region = 44 }
  0x75   : > { %p4923_p10 = scmp.eq.s32.totalorder %s2628_s1, 0 }
  0x77   : > { %2512 = dma.done.wait (%p4923_p10), [#allocation6], 16   ;;  %p4924_p1 = pmov %p4923_p10 }
  0x79   : > { %2514 = vsyncadd (%p4924_p1), [#allocation6], 4294967280  ;;  %p4925_p2 = pmov %p4924_p1 }
  0x7a   : > { %p4926_p7 = pmov %p4924_p1 }
  0x7b   : > { %2516 = dma.done.wait (%p4925_p2), [#allocation8], 80  }
  0x7c   : > { %2518 = vsyncadd (%p4926_p7), [#allocation8], 4294967216  ;;  %s2771_s3 = sand.u32 1, %s2537_s24   ;;  %p4927_p4 = scmp.ne.s32.totalorder %s4910_s9, 0 }
  0x7d   : > { %s2774_s8 = smul.u32 96, %s2771_s3  ;;  %s353_s12 = scalar_lea.sflag [#allocation4], %s2771_s3 }
  0x7f   : > { %s2778_s16 = scalar_lea.vmem [#allocation10], %s2774_s8 }
  0x80   : > { %2520 = dma.done.wait (%p4927_p4), %s353_s12, 1536  }
  0x81   : > { %2522 = vsyncadd (%p4927_p4), %s353_s12, 4294965760  ;;  %s362_s14 = scalar_lea.sflag [#allocation12], %s2771_s3  ;;  %s2786_s15 = scalar_lea.vmem [#allocation11], %s2774_s8 }
  0x82   : > { %2524 = dma.done.wait (%p4927_p4), %s362_s14, 1536  }
  0x83   : > { %2526 = vsyncadd (%p4927_p4), %s362_s14, 4294965760 }
  0x84   : > { %370 = sfence }
  0x85   : > { %s2792_s0 = sld [smem:[#allocation3]]  ;;  %s2794_s19 = sld [smem:[#allocation3 + $0x1]]  ;;  %v437_v0 = vld [vmem:[%s2778_s16] sm:$0xff]  ;;  %v438_v1 = vld [vmem:[%s2778_s16 + $0x8] sm:$0xff]  ;;  %v439_v2 = vld [vmem:[%s2778_s16 + $0x10] sm:$0xff] }
  0x86   : > { %s2796_s29 = sld [smem:[#allocation3 + $0x2]]  ;;  %s2798_s21 = sld [smem:[#allocation7]]  ;;  %v440_v3 = vld [vmem:[%s2778_s16 + $0x18] sm:$0xff]  ;;  %v2127_v4 = vld [vmem:[%s2778_s16 + $0x20] sm:$0xff]  ;;  %v2128_v5 = vld [vmem:[%s2778_s16 + $0x28] sm:$0xff] }
  0x87   : > { %s2800_s9 = sld [smem:[#allocation7 + $0x1]]  ;;  %s2802_s2 = sld [smem:[#allocation7 + $0x2]]  ;;  %v2129_v7 = vld [vmem:[%s2778_s16 + $0x30] sm:$0xff]  ;;  %v2130_v8 = vld [vmem:[%s2778_s16 + $0x38] sm:$0xff]  ;;  %v2131_v9 = vld [vmem:[%s2778_s16 + $0x40] sm:$0xff] }
  0x88   : > { %s2806_s27 = sld [smem:[#allocation7 + $0x80]]  ;;  %s2808_s13 = sld [smem:[#allocation7 + $0x81]]  ;;  %v2132_v14 = vld [vmem:[%s2778_s16 + $0x48] sm:$0xff]  ;;  %v2133_v15 = vld [vmem:[%s2778_s16 + $0x50] sm:$0xff]  ;;  %v2134_v16 = vld [vmem:[%s2778_s16 + $0x58] sm:$0xff] }
  0x89   : > { %s2812_s17 = sld [smem:[#allocation7 + $0x82]]  ;;  %s2816_s18 = sld [smem:[#allocation7 + $0x100]]  ;;  %v2906_v60 = vld [vmem:[%s2786_s15] sm:$0xff] }
  0x8a   : > { %s2822_s20 = sld [smem:[#allocation7 + $0x101]]  ;;  %s2835_s22 = sld [smem:[#allocation7 + $0x102]]  ;;  %v2909_v61 = vld [vmem:[%s2786_s15 + $0x20] sm:$0xff] }
  0x8b   : > { %v441_v6 = vstv %s2792_s0  ;;  %v452_v17 = vstv %s2794_s19  ;;  %s406_s11 = sld [smem:[#allocation2]] }
  0x8c   : > { %v2824_v10 = vsub.f32 %v437_v0, %v441_v6  ;;  %v2826_v11 = vsub.f32 %v438_v1, %v441_v6  ;;  %v2828_v12 = vsub.f32 %v439_v2, %v441_v6  ;;  %v2830_v13 = vsub.f32 %v440_v3, %v441_v6  ;;  %s416_s30 = smul.f32 %s2798_s21, %s2792_s0  ;;  %v2914_v1 = vld [vmem:[%s2786_s15 + $0x8] sm:$0xff]  ;;  %v2920_v3 = vld [vmem:[%s2786_s15 + $0x40] sm:$0xff] }
  0x8d   : > { %v463_v18 = vstv %s2796_s29  ;;  %s417_s12 = smul.f32 %s2800_s9, %s2794_s19  ;;  %v2843_v19 = vsub.f32 %v2127_v4, %v452_v17  ;;  %v2845_v20 = vsub.f32 %v2128_v5, %v452_v17  ;;  %v2847_v21 = vsub.f32 %v2129_v7, %v452_v17  ;;  %v2917_v2 = vld [vmem:[%s2786_s15 + $0x28] sm:$0xff]  ;;  %v2928_v7 = vld [vmem:[%s2786_s15 + $0x10] sm:$0xff] }
  0x8e   : > { %v2849_v22 = vsub.f32 %v2130_v8, %v452_v17  ;;  %s419_s14 = smul.f32 %s2802_s2, %s2796_s29  ;;  %v2853_v23 = vsub.f32 %v2131_v9, %v463_v18  ;;  %v2855_v24 = vsub.f32 %v2132_v14, %v463_v18  ;;  %v2857_v25 = vsub.f32 %v2133_v15, %v463_v18  ;;  %v2931_v8 = vld [vmem:[%s2786_s15 + $0x30] sm:$0xff]  ;;  %v2942_v17 = vld [vmem:[%s2786_s15 + $0x38] sm:$0xff] }
  0x8f   : > { %v2859_v26 = vsub.f32 %v2134_v16, %v463_v18  ;;  %s418_s16 = sadd.f32 %s417_s12, %s416_s30  ;;  %s423_s4 = smul.f32 %s2806_s27, %s2792_s0  ;;  %v482_v27 = vmul.f32 %v2824_v10, %v2824_v10  ;;  %v483_v28 = vmul.f32 %v2826_v11, %v2826_v11  ;;  %v484_v29 = vmul.f32 %v2828_v12, %v2828_v12  ;;  %v2939_v16 = vld [vmem:[%s2786_s15 + $0x18] sm:$0xff] }
  0x90   : > { %v485_v30 = vmul.f32 %v2830_v13, %v2830_v13  ;;  %s424_s5 = smul.f32 %s2808_s13, %s2794_s19  ;;  %v486_v31 = vmul.f32 %v2843_v19, %v2843_v19  ;;  %v487_v32 = vmul.f32 %v2845_v20, %v2845_v20  ;;  %v488_v33 = vmul.f32 %v2847_v21, %v2847_v21 }
  0x91   : > { %v489_v34 = vmul.f32 %v2849_v22, %v2849_v22  ;;  %s2881_s30 = sadd.f32 %s419_s14, %s418_s16  ;;  %s426_s12 = smul.f32 %s2812_s17, %s2796_s29  ;;  %v494_v35 = vmul.f32 %v2853_v23, %v2853_v23  ;;  %v495_v36 = vmul.f32 %v2855_v24, %v2855_v24  ;;  %v496_v37 = vmul.f32 %v2857_v25, %v2857_v25 }
  0x92   : > { %v497_v38 = vmul.f32 %v2859_v26, %v2859_v26  ;;  %s425_s7 = sadd.f32 %s424_s5, %s423_s4  ;;  %s430_s25 = smul.f32 %s2816_s18, %s2792_s0  ;;  %v490_v39 = vadd.f32 %v486_v31, %v482_v27  ;;  %v491_v40 = vadd.f32 %v487_v32, %v483_v28  ;;  %v492_v41 = vadd.f32 %v488_v33, %v484_v29  ;;  %v2955_v31 = vld [vmem:[%s2786_s15 + $0x50] sm:$0xff] }
  0x93   : > { %v493_v42 = vadd.f32 %v489_v34, %v485_v30  ;;  %s431_s14 = smul.f32 %s2822_s20, %s2794_s19  ;;  %v2903_v49 = vstv %s406_s11  ;;  %v2952_v30 = vld [vmem:[%s2786_s15 + $0x48] sm:$0xff]  ;;  %s421_s4 = sld [smem:[#allocation9]] }
  0x94   : > { %s2897_s16 = sadd.f32 %s426_s12, %s425_s7  ;;  %s433_s24 = smul.f32 %s2835_s22, %s2796_s29  ;;  %v498_v43 = vadd.f32 %v494_v35, %v490_v39  ;;  %v499_v44 = vadd.f32 %v495_v36, %v491_v40  ;;  %v500_v45 = vadd.f32 %v496_v37, %v492_v41  ;;  %v2967_v36 = vld [vmem:[%s2786_s15 + $0x58] sm:$0xff] }
  0x95   : > { %s432_s28 = sadd.f32 %s431_s14, %s430_s25  ;;  %v501_v46 = vadd.f32 %v497_v38, %v493_v42  ;;  %s2125_s5 = sld [smem:[#allocation9 + $0x1]] }
  0x96   : > { %2274 = vrsqrt.f32 %v498_v43  ;;  %vm504_vm0 = vcmp.eq.f32.partialorder %v498_v43, inf  ;;  %vm506_vm1 = vcmp.eq.f32.partialorder %v498_v43, 0.0  ;;  %v507_v48 = vand.u32 2147483648, %v498_v43  ;;  %s1922_s11 = scalar_lea.sflag [#allocation5], %s2771_s3 }
  0x97   : > { %s2901_s26 = sadd.f32 %s433_s24, %s432_s28  ;;  %2276 = vrsqrt.f32 %v499_v44  ;;  %vm511_vm2 = vcmp.eq.f32.partialorder %v499_v44, inf  ;;  %vm513_vm3 = vcmp.eq.f32.partialorder %v499_v44, 0.0  ;;  %v514_v52 = vand.u32 2147483648, %v499_v44  ;;  %s4545_s28 = sld [smem:[#allocation9 + $0x2]] }
  0x98   : > { %2278 = vrsqrt.f32 %v500_v45  ;;  %vm518_vm4 = vcmp.eq.f32.partialorder %v500_v45, inf  ;;  %vm520_vm5 = vcmp.eq.f32.partialorder %v500_v45, 0.0  ;;  %v521_v55 = vand.u32 2147483648, %v500_v45 }
  0x99   : > { %2280 = vrsqrt.f32 %v501_v46  ;;  %vm525_vm6 = vcmp.eq.f32.partialorder %v501_v46, inf  ;;  %v528_v59 = vand.u32 2147483648, %v501_v46  ;;  %vm527_vm7 = vcmp.eq.f32.partialorder %v501_v46, 0.0  ;;  %s422_s24 = sadd.f32 %s421_s4, %s2881_s30 }
  0x9b   : > { %s429_s25 = sadd.f32 %s2125_s5, %s2897_s16 }
  0x9d   : > { %s436_s7 = sadd.f32 %s4545_s28, %s2901_s26  ;;  %s4804_s26 = scalar_lea.vmem [#allocation13], %s2774_s8 }
  0xa0   : > { %v2275_v47 = vpop.eup %2274 }
  0xa1   : > { %v2277_v50 = vpop.eup %2276  ;;  %v503_v51 = vmul.f32 %v2275_v47, %v498_v43 }
  0xa2   : > { %v2279_v53 = vpop.eup %2278  ;;  %v510_v54 = vmul.f32 %v2277_v50, %v499_v44 }
  0xa3   : > { %v2281_v56 = vpop.eup %2280  ;;  %v505_v57 = vsel %vm504_vm0, %v498_v43, %v503_v51  ;;  %v517_v58 = vmul.f32 %v2279_v53, %v500_v45 }
  0xa4   : > { %v508_v62 = vsel %vm506_vm1, %v507_v48, %v505_v57  ;;  %v512_v63 = vsel %vm511_vm2, %v499_v44, %v510_v54  ;;  %v524_v0 = vmul.f32 %v2281_v56, %v501_v46 }
  0xa5   : > { %v515_v4 = vsel %vm513_vm3, %v514_v52, %v512_v63  ;;  %v519_v5 = vsel %vm518_vm4, %v500_v45, %v517_v58  ;;  %v2925_v6 = vsub.f32 %v508_v62, %v2903_v49 }
  0xa6   : > { %v522_v9 = vsel %vm520_vm5, %v521_v55, %v519_v5  ;;  %v526_v14 = vsel %vm525_vm6, %v501_v46, %v524_v0  ;;  %v2936_v15 = vsub.f32 %v515_v4, %v2903_v49 }
  0xa7   : > { %v529_v18 = vsel %vm527_vm7, %v528_v59, %v526_v14  ;;  %v2945_v27 = vsub.f32 %v522_v9, %v2903_v49  ;;  %v535_v28 = vmul.f32 %v2925_v6, %v2906_v60  ;;  %v543_v29 = vmul.f32 %v2909_v61, %v2925_v6 }
  0xa8   : > { %v2958_v32 = vsub.f32 %v529_v18, %v2903_v49  ;;  %v536_v33 = vmul.f32 %v2936_v15, %v2914_v1  ;;  %v544_v34 = vmul.f32 %v2917_v2, %v2936_v15  ;;  %v551_v35 = vmul.f32 %v2920_v3, %v2925_v6 }
  0xa9   : > { %v537_v37 = vmul.f32 %v2945_v27, %v2928_v7  ;;  %v2972_v38 = vadd.f32 %v535_v28, %v2824_v10  ;;  %v545_v39 = vmul.f32 %v2931_v8, %v2945_v27  ;;  %v2977_v40 = vadd.f32 %v543_v29, %v2843_v19 }
  0xaa   : > { %v538_v41 = vmul.f32 %v2958_v32, %v2939_v16  ;;  %v2982_v42 = vadd.f32 %v536_v33, %v2826_v11  ;;  %v546_v43 = vmul.f32 %v2942_v17, %v2958_v32  ;;  %v2987_v44 = vadd.f32 %v544_v34, %v2845_v20 }
  0xab   : > { %v2990_v10 = vadd.f32 %v537_v37, %v2828_v12  ;;  %v2993_v45 = vadd.f32 %v545_v39, %v2847_v21  ;;  %v552_v19 = vmul.f32 %v2952_v30, %v2936_v15  ;;  %v553_v46 = vmul.f32 %v2955_v31, %v2945_v27 }
  0xac   : > { %v3000_v11 = vadd.f32 %v538_v41, %v2830_v13  ;;  %v3003_v47 = vadd.f32 %v546_v43, %v2849_v22  ;;  %v554_v20 = vmul.f32 %v2967_v36, %v2958_v32  ;;  %v3008_v12 = vadd.f32 %v551_v35, %v2853_v23 }
  0xad   : > { %v3011_v21 = vadd.f32 %v552_v19, %v2855_v24  ;;  %v3014_v48 = vadd.f32 %v553_v46, %v2857_v25  ;;  %v559_v50 = vmul.f32 %v2972_v38, %v2972_v38  ;;  %v560_v13 = vmul.f32 %v2982_v42, %v2982_v42 }
  0xae   : > { %v3021_v22 = vadd.f32 %v554_v20, %v2859_v26  ;;  %v561_v51 = vmul.f32 %v2990_v10, %v2990_v10  ;;  %v562_v23 = vmul.f32 %v3000_v11, %v3000_v11  ;;  %v563_v24 = vmul.f32 %v2977_v40, %v2977_v40 }
  0xaf   : > { %v564_v25 = vmul.f32 %v2987_v44, %v2987_v44  ;;  %v565_v52 = vmul.f32 %v2993_v45, %v2993_v45  ;;  %v566_v53 = vmul.f32 %v3003_v47, %v3003_v47  ;;  %v571_v26 = vmul.f32 %v3008_v12, %v3008_v12 }
  0xb0   : > { %v567_v54 = vadd.f32 %v563_v24, %v559_v50  ;;  %v572_v55 = vmul.f32 %v3011_v21, %v3011_v21  ;;  %v573_v56 = vmul.f32 %v3014_v48, %v3014_v48  ;;  %v574_v57 = vmul.f32 %v3021_v22, %v3021_v22 }
  0xb1   : > { %v568_v58 = vadd.f32 %v564_v25, %v560_v13  ;;  %v569_v59 = vadd.f32 %v565_v52, %v561_v51  ;;  %v570_v62 = vadd.f32 %v566_v53, %v562_v23 }
  0xb2   : > { %v575_v63 = vadd.f32 %v571_v26, %v567_v54 }
  0xb3   : > { %v576_v0 = vadd.f32 %v572_v55, %v568_v58  ;;  %v577_v4 = vadd.f32 %v573_v56, %v569_v59  ;;  %v578_v5 = vadd.f32 %v574_v57, %v570_v62 }
  0xb4   : > { %2282 = vrsqrt.f32 %v575_v63  ;;  %vm581_vm8 = vcmp.eq.f32.partialorder %v575_v63, inf  ;;  %vm583_vm9 = vcmp.eq.f32.partialorder %v575_v63, 0.0  ;;  %v584_v14 = vand.u32 2147483648, %v575_v63 }
  0xb5   : > { %2284 = vrsqrt.f32 %v576_v0  ;;  %vm588_vm10 = vcmp.eq.f32.partialorder %v576_v0, inf  ;;  %vm590_vm11 = vcmp.eq.f32.partialorder %v576_v0, 0.0  ;;  %v591_v29 = vand.u32 2147483648, %v576_v0 }
  0xb6   : > { %2286 = vrsqrt.f32 %v577_v4  ;;  %vm595_vm12 = vcmp.eq.f32.partialorder %v577_v4, inf  ;;  %vm597_vm13 = vcmp.eq.f32.partialorder %v577_v4, 0.0  ;;  %v598_v35 = vand.u32 2147483648, %v577_v4 }
  0xb7   : > { %2288 = vrsqrt.f32 %v578_v5  ;;  %vm602_vm14 = vcmp.eq.f32.partialorder %v578_v5, inf  ;;  %v605_v43 = vand.u32 2147483648, %v578_v5  ;;  %vm604_vm15 = vcmp.eq.f32.partialorder %v578_v5, 0.0 }
  0xbe   : > { %v2283_v9 = vpop.eup %2282 }
  0xbf   : > { %v2285_v18 = vpop.eup %2284  ;;  %v580_v28 = vmul.f32 %v2283_v9, %v575_v63 }
  0xc0   : > { %v2287_v33 = vpop.eup %2286  ;;  %v587_v34 = vmul.f32 %v2285_v18, %v576_v0 }
  0xc1   : > { %v2289_v37 = vpop.eup %2288  ;;  %v582_v39 = vsel %vm581_vm8, %v575_v63, %v580_v28  ;;  %v594_v41 = vmul.f32 %v2287_v33, %v577_v4 }
  0xc2   : > { %v585_v19 = vsel %vm583_vm9, %v584_v14, %v582_v39  ;;  %v589_v46 = vsel %vm588_vm10, %v576_v0, %v587_v34  ;;  %v601_v20 = vmul.f32 %v2289_v37, %v578_v5 }
  0xc3   : > { %v592_v50 = vsel %vm590_vm11, %v591_v29, %v589_v46  ;;  %v596_v13 = vsel %vm595_vm12, %v577_v4, %v594_v41  ;;  %v3046_v51 = vsub.f32 %v585_v19, %v2903_v49 }
  0xc4   : > { %v599_v23 = vsel %vm597_vm13, %v598_v35, %v596_v13  ;;  %v603_v24 = vsel %vm602_vm14, %v578_v5, %v601_v20  ;;  %v3049_v25 = vsub.f32 %v592_v50, %v2903_v49 }
  0xc5   : > { %v606_v52 = vsel %vm604_vm15, %v605_v43, %v603_v24  ;;  %v3052_v53 = vsub.f32 %v599_v23, %v2903_v49  ;;  %v611_v26 = vmul.f32 %v3046_v51, %v2906_v60  ;;  %v619_v54 = vmul.f32 %v2909_v61, %v3046_v51 }
  0xc6   : > { %v3059_v55 = vsub.f32 %v606_v52, %v2903_v49  ;;  %v612_v56 = vmul.f32 %v3049_v25, %v2914_v1  ;;  %v620_v57 = vmul.f32 %v2917_v2, %v3049_v25  ;;  %v627_v58 = vmul.f32 %v2920_v3, %v3046_v51 }
  0xc7   : > { %v613_v59 = vmul.f32 %v3052_v53, %v2928_v7  ;;  %v3070_v62 = vadd.f32 %v611_v26, %v2972_v38  ;;  %v621_v63 = vmul.f32 %v2931_v8, %v3052_v53  ;;  %v3075_v0 = vadd.f32 %v619_v54, %v2977_v40 }
  0xc8   : > { %v614_v4 = vmul.f32 %v3059_v55, %v2939_v16  ;;  %v3080_v5 = vadd.f32 %v612_v56, %v2982_v42  ;;  %v622_v9 = vmul.f32 %v2942_v17, %v3059_v55  ;;  %v3085_v14 = vadd.f32 %v620_v57, %v2987_v44 }
  0xc9   : > { %v3088_v38 = vadd.f32 %v613_v59, %v2990_v10  ;;  %v3091_v18 = vadd.f32 %v621_v63, %v2993_v45  ;;  %v628_v40 = vmul.f32 %v2952_v30, %v3049_v25  ;;  %v629_v28 = vmul.f32 %v2955_v31, %v3052_v53 }
  0xca   : > { %v3098_v42 = vadd.f32 %v614_v4, %v3000_v11  ;;  %v3101_v29 = vadd.f32 %v622_v9, %v3003_v47  ;;  %v630_v44 = vmul.f32 %v2967_v36, %v3059_v55  ;;  %v3106_v10 = vadd.f32 %v627_v58, %v3008_v12 }
  0xcb   : > { %v3109_v45 = vadd.f32 %v628_v40, %v3011_v21  ;;  %v3112_v33 = vadd.f32 %v629_v28, %v3014_v48  ;;  %v635_v34 = vmax.f32 %v2925_v6, %v3046_v51  ;;  %v636_v11 = vmax.f32 %v2936_v15, %v3049_v25 }
  0xcc   : > { %v3119_v47 = vadd.f32 %v630_v44, %v3021_v22  ;;  %v637_v35 = vmax.f32 %v2945_v27, %v3052_v53  ;;  %v638_v12 = vmax.f32 %v2958_v32, %v3059_v55  ;;  %v639_v21 = vmul.f32 %v3070_v62, %v3070_v62 }
  0xcd   : > { %v640_v48 = vmul.f32 %v3080_v5, %v3080_v5  ;;  %v641_v37 = vmul.f32 %v3088_v38, %v3088_v38  ;;  %v642_v39 = vmul.f32 %v3098_v42, %v3098_v42  ;;  %v643_v22 = vmul.f32 %v3075_v0, %v3075_v0 }
  0xce   : > { %v644_v41 = vmul.f32 %v3085_v14, %v3085_v14  ;;  %v645_v43 = vmul.f32 %v3091_v18, %v3091_v18  ;;  %v646_v19 = vmul.f32 %v3101_v29, %v3101_v29  ;;  %v651_v46 = vmul.f32 %v3106_v10, %v3106_v10 }
  0xcf   : > { %v647_v20 = vadd.f32 %v643_v22, %v639_v21  ;;  %v652_v50 = vmul.f32 %v3109_v45, %v3109_v45  ;;  %v653_v13 = vmul.f32 %v3112_v33, %v3112_v33  ;;  %v654_v23 = vmul.f32 %v3119_v47, %v3119_v47 }
  0xd0   : > { %v648_v24 = vadd.f32 %v644_v41, %v640_v48  ;;  %v649_v52 = vadd.f32 %v645_v43, %v641_v37  ;;  %v650_v26 = vadd.f32 %v646_v19, %v642_v39 }
  0xd1   : > { %v655_v54 = vadd.f32 %v651_v46, %v647_v20 }
  0xd2   : > { %v656_v56 = vadd.f32 %v652_v50, %v648_v24  ;;  %v657_v57 = vadd.f32 %v653_v13, %v649_v52  ;;  %v658_v58 = vadd.f32 %v654_v23, %v650_v26 }
  0xd3   : > { %2290 = vrsqrt.f32 %v655_v54  ;;  %vm661_vm0 = vcmp.eq.f32.partialorder %v655_v54, inf  ;;  %vm663_vm1 = vcmp.eq.f32.partialorder %v655_v54, 0.0  ;;  %v664_v63 = vand.u32 2147483648, %v655_v54 }
  0xd4   : > { %2292 = vrsqrt.f32 %v656_v56  ;;  %vm668_vm2 = vcmp.eq.f32.partialorder %v656_v56, inf  ;;  %vm670_vm3 = vcmp.eq.f32.partialorder %v656_v56, 0.0  ;;  %v671_v40 = vand.u32 2147483648, %v656_v56 }
  0xd5   : > { %2294 = vrsqrt.f32 %v657_v57  ;;  %vm675_vm4 = vcmp.eq.f32.partialorder %v657_v57, inf  ;;  %vm677_vm5 = vcmp.eq.f32.partialorder %v657_v57, 0.0  ;;  %v678_v21 = vand.u32 2147483648, %v657_v57 }
  0xd6   : > { %2296 = vrsqrt.f32 %v658_v58  ;;  %vm682_vm6 = vcmp.eq.f32.partialorder %v658_v58, inf  ;;  %v685_v22 = vand.u32 2147483648, %v658_v58  ;;  %vm684_vm7 = vcmp.eq.f32.partialorder %v658_v58, 0.0 }
  0xdd   : > { %v2291_v59 = vpop.eup %2290 }
  0xde   : > { %v2293_v4 = vpop.eup %2292  ;;  %v660_v9 = vmul.f32 %v2291_v59, %v655_v54 }
  0xdf   : > { %v2295_v28 = vpop.eup %2294  ;;  %v667_v44 = vmul.f32 %v2293_v4, %v656_v56 }
  0xe0   : > { %v2297_v48 = vpop.eup %2296  ;;  %v662_v37 = vsel %vm661_vm0, %v655_v54, %v660_v9  ;;  %v674_v39 = vmul.f32 %v2295_v28, %v657_v57 }
  0xe1   : > { %v665_v41 = vsel %vm663_vm1, %v664_v63, %v662_v37  ;;  %v669_v43 = vsel %vm668_vm2, %v656_v56, %v667_v44  ;;  %v681_v19 = vmul.f32 %v2297_v48, %v658_v58 }
  0xe2   : > { %v672_v46 = vsel %vm670_vm3, %v671_v40, %v669_v43  ;;  %v676_v20 = vsel %vm675_vm4, %v657_v57, %v674_v39  ;;  %v687_v50 = vsub.f32 %v665_v41, %v2903_v49 }
  0xe3   : > { %v679_v13 = vsel %vm677_vm5, %v678_v21, %v676_v20  ;;  %v683_v23 = vsel %vm682_vm6, %v658_v58, %v681_v19  ;;  %v688_v24 = vsub.f32 %v672_v46, %v2903_v49 }
  0xe4   : > { %v686_v52 = vsel %vm684_vm7, %v685_v22, %v683_v23  ;;  %v689_v26 = vsub.f32 %v679_v13, %v2903_v49  ;;  %v691_v59 = vmul.f32 %v687_v50, %v2906_v60  ;;  %v699_v54 = vmul.f32 %v2909_v61, %v687_v50 }
  0xe5   : > { %v690_v63 = vsub.f32 %v686_v52, %v2903_v49  ;;  %v692_v4 = vmul.f32 %v688_v24, %v2914_v1  ;;  %v700_v56 = vmul.f32 %v2917_v2, %v688_v24  ;;  %v707_v57 = vmul.f32 %v2920_v3, %v687_v50 }
  0xe6   : > { %v693_v9 = vmul.f32 %v689_v26, %v2928_v7  ;;  %v3162_v58 = vadd.f32 %v691_v59, %v3070_v62  ;;  %v701_v40 = vmul.f32 %v2931_v8, %v689_v26  ;;  %v3166_v28 = vadd.f32 %v699_v54, %v3075_v0 }
  0xe7   : > { %v694_v44 = vmul.f32 %v690_v63, %v2939_v16  ;;  %v3170_v21 = vadd.f32 %v692_v4, %v3080_v5  ;;  %v702_v48 = vmul.f32 %v2942_v17, %v690_v63  ;;  %v3174_v37 = vadd.f32 %v700_v56, %v3085_v14 }
  0xe8   : > { %v3177_v39 = vadd.f32 %v693_v9, %v3088_v38  ;;  %v3180_v62 = vadd.f32 %v701_v40, %v3091_v18  ;;  %v708_v22 = vmul.f32 %v2952_v30, %v688_v24  ;;  %v709_v0 = vmul.f32 %v2955_v31, %v689_v26 }
  0xe9   : > { %v3185_v41 = vadd.f32 %v694_v44, %v3098_v42  ;;  %v3188_v5 = vadd.f32 %v702_v48, %v3101_v29  ;;  %v710_v43 = vmul.f32 %v2967_v36, %v690_v63  ;;  %v3192_v14 = vadd.f32 %v707_v57, %v3106_v10 }
  0xea   : > { %v3195_v38 = vadd.f32 %v708_v22, %v3109_v45  ;;  %v3198_v18 = vadd.f32 %v709_v0, %v3112_v33  ;;  %v3203_v19 = vmax.f32 %v635_v34, %v687_v50  ;;  %v3208_v42 = vmax.f32 %v636_v11, %v688_v24 }
  0xeb   : > { %v3211_v29 = vadd.f32 %v710_v43, %v3119_v47  ;;  %v3216_v10 = vmax.f32 %v637_v35, %v689_v26  ;;  %v3221_v45 = vmax.f32 %v638_v12, %v690_v63  ;;  %v719_v6 = vmul.f32 %v3162_v58, %v3162_v58 }
  0xec   : > { %v720_v15 = vmul.f32 %v3170_v21, %v3170_v21  ;;  %v721_v51 = vmul.f32 %v3177_v39, %v3177_v39  ;;  %v722_v25 = vmul.f32 %v3185_v41, %v3185_v41  ;;  %v723_v27 = vmul.f32 %v3166_v28, %v3166_v28 }
  0xed   : > { %v724_v32 = vmul.f32 %v3174_v37, %v3174_v37  ;;  %v725_v53 = vmul.f32 %v3180_v62, %v3180_v62  ;;  %v726_v55 = vmul.f32 %v3188_v5, %v3188_v5  ;;  %v731_v33 = vmul.f32 %v3192_v14, %v3192_v14 }
  0xee   : > { %v727_v34 = vadd.f32 %v723_v27, %v719_v6  ;;  %v732_v11 = vmul.f32 %v3195_v38, %v3195_v38  ;;  %v733_v47 = vmul.f32 %v3198_v18, %v3198_v18  ;;  %v734_v35 = vmul.f32 %v3211_v29, %v3211_v29 }
  0xef   : > { %v728_v12 = vadd.f32 %v724_v32, %v720_v15  ;;  %v729_v46 = vadd.f32 %v725_v53, %v721_v51  ;;  %v730_v20 = vadd.f32 %v726_v55, %v722_v25 }
  0xf0   : > { %v735_v50 = vadd.f32 %v731_v33, %v727_v34 }
  0xf1   : > { %v736_v13 = vadd.f32 %v732_v11, %v728_v12  ;;  %v737_v23 = vadd.f32 %v733_v47, %v729_v46  ;;  %v738_v24 = vadd.f32 %v734_v35, %v730_v20 }
  0xf2   : > { %2298 = vrsqrt.f32 %v735_v50  ;;  %vm741_vm8 = vcmp.eq.f32.partialorder %v735_v50, inf  ;;  %vm743_vm9 = vcmp.eq.f32.partialorder %v735_v50, 0.0  ;;  %v744_v26 = vand.u32 2147483648, %v735_v50 }
  0xf3   : > { %2300 = vrsqrt.f32 %v736_v13  ;;  %vm748_vm10 = vcmp.eq.f32.partialorder %v736_v13, inf  ;;  %vm750_vm11 = vcmp.eq.f32.partialorder %v736_v13, 0.0  ;;  %v751_v63 = vand.u32 2147483648, %v736_v13 }
  0xf4   : > { %2302 = vrsqrt.f32 %v737_v23  ;;  %vm755_vm12 = vcmp.eq.f32.partialorder %v737_v23, inf  ;;  %vm757_vm13 = vcmp.eq.f32.partialorder %v737_v23, 0.0  ;;  %v758_v57 = vand.u32 2147483648, %v737_v23 }
  0xf5   : > { %2304 = vrsqrt.f32 %v738_v24  ;;  %vm762_vm14 = vcmp.eq.f32.partialorder %v738_v24, inf  ;;  %v765_v48 = vand.u32 2147483648, %v738_v24  ;;  %vm764_vm15 = vcmp.eq.f32.partialorder %v738_v24, 0.0 }
  0xfc   : > { %v2299_v52 = vpop.eup %2298 }
  0xfd   : > { %v2301_v59 = vpop.eup %2300  ;;  %v740_v54 = vmul.f32 %v2299_v52, %v735_v50 }
  0xfe   : > { %v2303_v4 = vpop.eup %2302  ;;  %v747_v56 = vmul.f32 %v2301_v59, %v736_v13 }
  0xff   : > { %v2305_v9 = vpop.eup %2304  ;;  %v742_v40 = vsel %vm741_vm8, %v735_v50, %v740_v54  ;;  %v754_v44 = vmul.f32 %v2303_v4, %v737_v23 }
 0x100   : > { %v745_v22 = vsel %vm743_vm9, %v744_v26, %v742_v40  ;;  %v749_v0 = vsel %vm748_vm10, %v736_v13, %v747_v56  ;;  %v761_v43 = vmul.f32 %v2305_v9, %v738_v24 }
 0x101   : > { %v752_v6 = vsel %vm750_vm11, %v751_v63, %v749_v0  ;;  %v756_v15 = vsel %vm755_vm12, %v737_v23, %v754_v44  ;;  %v3250_v51 = vsub.f32 %v745_v22, %v2903_v49 }
 0x102   : > { %v759_v25 = vsel %vm757_vm13, %v758_v57, %v756_v15  ;;  %v763_v27 = vsel %vm762_vm14, %v738_v24, %v761_v43  ;;  %v3253_v32 = vsub.f32 %v752_v6, %v2903_v49 }
 0x103   : > { %v766_v53 = vsel %vm764_vm15, %v765_v48, %v763_v27  ;;  %v3256_v55 = vsub.f32 %v759_v25, %v2903_v49  ;;  %v771_v33 = vmul.f32 %v3250_v51, %v2906_v60  ;;  %v779_v34 = vmul.f32 %v2909_v61, %v3250_v51 }
 0x104   : > { %v3263_v11 = vsub.f32 %v766_v53, %v2903_v49  ;;  %v772_v47 = vmul.f32 %v3253_v32, %v2914_v1  ;;  %v780_v35 = vmul.f32 %v2917_v2, %v3253_v32  ;;  %v787_v12 = vmul.f32 %v2920_v3, %v3250_v51 }
 0x105   : > { %v773_v46 = vmul.f32 %v3256_v55, %v2928_v7  ;;  %v3274_v20 = vadd.f32 %v771_v33, %v3162_v58  ;;  %v781_v50 = vmul.f32 %v2931_v8, %v3256_v55  ;;  %v3279_v13 = vadd.f32 %v779_v34, %v3166_v28 }
 0x106   : > { %v774_v23 = vmul.f32 %v3263_v11, %v2939_v16  ;;  %v3284_v24 = vadd.f32 %v772_v47, %v3170_v21  ;;  %v782_v52 = vmul.f32 %v2942_v17, %v3263_v11  ;;  %v3289_v26 = vadd.f32 %v780_v35, %v3174_v37 }
 0x107   : > { %v3292_v58 = vadd.f32 %v773_v46, %v3177_v39  ;;  %v3295_v59 = vadd.f32 %v781_v50, %v3180_v62  ;;  %v788_v28 = vmul.f32 %v2952_v30, %v3253_v32  ;;  %v789_v54 = vmul.f32 %v2955_v31, %v3256_v55 }
 0x108   : > { %v3302_v21 = vadd.f32 %v774_v23, %v3185_v41  ;;  %v3305_v63 = vadd.f32 %v782_v52, %v3188_v5  ;;  %v790_v37 = vmul.f32 %v2967_v36, %v3263_v11  ;;  %v3310_v39 = vadd.f32 %v787_v12, %v3192_v14 }
 0x109   : > { %v3313_v62 = vadd.f32 %v788_v28, %v3195_v38  ;;  %v3316_v4 = vadd.f32 %v789_v54, %v3198_v18  ;;  %v795_v56 = vmax.f32 %v3203_v19, %v3250_v51  ;;  %v796_v41 = vmax.f32 %v3208_v42, %v3253_v32 }
 0x10a   : > { %v3323_v5 = vadd.f32 %v790_v37, %v3211_v29  ;;  %v797_v57 = vmax.f32 %v3216_v10, %v3256_v55  ;;  %v798_v14 = vmax.f32 %v3221_v45, %v3263_v11  ;;  %v799_v38 = vmul.f32 %v3274_v20, %v3274_v20 }
 0x10b   : > { %v800_v18 = vmul.f32 %v3284_v24, %v3284_v24  ;;  %v801_v9 = vmul.f32 %v3292_v58, %v3292_v58  ;;  %v802_v40 = vmul.f32 %v3302_v21, %v3302_v21  ;;  %v803_v29 = vmul.f32 %v3279_v13, %v3279_v13 }
 0x10c   : > { %v804_v44 = vmul.f32 %v3289_v26, %v3289_v26  ;;  %v805_v48 = vmul.f32 %v3295_v59, %v3295_v59  ;;  %v806_v22 = vmul.f32 %v3305_v63, %v3305_v63  ;;  %v811_v0 = vmul.f32 %v3310_v39, %v3310_v39 }
 0x10d   : > { %v807_v43 = vadd.f32 %v803_v29, %v799_v38  ;;  %v812_v6 = vmul.f32 %v3313_v62, %v3313_v62  ;;  %v813_v15 = vmul.f32 %v3316_v4, %v3316_v4  ;;  %v814_v25 = vmul.f32 %v3323_v5, %v3323_v5 }
 0x10e   : > { %v808_v27 = vadd.f32 %v804_v44, %v800_v18  ;;  %v809_v53 = vadd.f32 %v805_v48, %v801_v9  ;;  %v810_v33 = vadd.f32 %v806_v22, %v802_v40 }
 0x10f   : > { %v815_v34 = vadd.f32 %v811_v0, %v807_v43 }
 0x110   : > { %v816_v47 = vadd.f32 %v812_v6, %v808_v27  ;;  %v817_v35 = vadd.f32 %v813_v15, %v809_v53  ;;  %v818_v12 = vadd.f32 %v814_v25, %v810_v33 }
 0x111   : > { %2306 = vrsqrt.f32 %v815_v34  ;;  %vm821_vm0 = vcmp.eq.f32.partialorder %v815_v34, inf  ;;  %vm823_vm1 = vcmp.eq.f32.partialorder %v815_v34, 0.0  ;;  %v824_v50 = vand.u32 2147483648, %v815_v34 }
 0x112   : > { %2308 = vrsqrt.f32 %v816_v47  ;;  %vm828_vm2 = vcmp.eq.f32.partialorder %v816_v47, inf  ;;  %vm830_vm3 = vcmp.eq.f32.partialorder %v816_v47, 0.0  ;;  %v831_v28 = vand.u32 2147483648, %v816_v47 }
 0x113   : > { %2310 = vrsqrt.f32 %v817_v35  ;;  %vm835_vm4 = vcmp.eq.f32.partialorder %v817_v35, inf  ;;  %vm837_vm5 = vcmp.eq.f32.partialorder %v817_v35, 0.0  ;;  %v838_v38 = vand.u32 2147483648, %v817_v35 }
 0x114   : > { %2312 = vrsqrt.f32 %v818_v12  ;;  %vm842_vm6 = vcmp.eq.f32.partialorder %v818_v12, inf  ;;  %v845_v29 = vand.u32 2147483648, %v818_v12  ;;  %vm844_vm7 = vcmp.eq.f32.partialorder %v818_v12, 0.0 }
 0x11b   : > { %v2307_v46 = vpop.eup %2306 }
 0x11c   : > { %v2309_v23 = vpop.eup %2308  ;;  %v820_v52 = vmul.f32 %v2307_v46, %v815_v34 }
 0x11d   : > { %v2311_v54 = vpop.eup %2310  ;;  %v827_v37 = vmul.f32 %v2309_v23, %v816_v47 }
 0x11e   : > { %v2313_v18 = vpop.eup %2312  ;;  %v822_v9 = vsel %vm821_vm0, %v815_v34, %v820_v52  ;;  %v834_v40 = vmul.f32 %v2311_v54, %v817_v35 }
 0x11f   : > { %v825_v44 = vsel %vm823_vm1, %v824_v50, %v822_v9  ;;  %v829_v48 = vsel %vm828_vm2, %v816_v47, %v827_v37  ;;  %v841_v22 = vmul.f32 %v2313_v18, %v818_v12 }
 0x120   : > { %v832_v0 = vsel %vm830_vm3, %v831_v28, %v829_v48  ;;  %v836_v43 = vsel %vm835_vm4, %v817_v35, %v834_v40  ;;  %v847_v6 = vsub.f32 %v825_v44, %v2903_v49 }
 0x121   : > { %v839_v15 = vsel %vm837_vm5, %v838_v38, %v836_v43  ;;  %v843_v25 = vsel %vm842_vm6, %v818_v12, %v841_v22  ;;  %v848_v27 = vsub.f32 %v832_v0, %v2903_v49 }
 0x122   : > { %v846_v53 = vsel %vm844_vm7, %v845_v29, %v843_v25  ;;  %v849_v33 = vsub.f32 %v839_v15, %v2903_v49  ;;  %v851_v46 = vmul.f32 %v847_v6, %v2906_v60  ;;  %v859_v34 = vmul.f32 %v2909_v61, %v847_v6 }
 0x123   : > { %v850_v50 = vsub.f32 %v846_v53, %v2903_v49  ;;  %v852_v23 = vmul.f32 %v848_v27, %v2914_v1  ;;  %v860_v47 = vmul.f32 %v2917_v2, %v848_v27  ;;  %v867_v35 = vmul.f32 %v2920_v3, %v847_v6 }
 0x124   : > { %v853_v52 = vmul.f32 %v849_v33, %v2928_v7  ;;  %v3366_v12 = vadd.f32 %v851_v46, %v3274_v20  ;;  %v861_v28 = vmul.f32 %v2931_v8, %v849_v33  ;;  %v3370_v54 = vadd.f32 %v859_v34, %v3279_v13 }
 0x125   : > { %v854_v37 = vmul.f32 %v850_v50, %v2939_v16  ;;  %v3374_v38 = vadd.f32 %v852_v23, %v3284_v24  ;;  %v862_v18 = vmul.f32 %v2942_v17, %v850_v50  ;;  %v3378_v9 = vadd.f32 %v860_v47, %v3289_v26 }
 0x126   : > { %v3381_v40 = vadd.f32 %v853_v52, %v3292_v58  ;;  %v3384_v20 = vadd.f32 %v861_v28, %v3295_v59  ;;  %v868_v29 = vmul.f32 %v2952_v30, %v848_v27  ;;  %v869_v13 = vmul.f32 %v2955_v31, %v849_v33 }
 0x127   : > { %v3389_v44 = vadd.f32 %v854_v37, %v3302_v21  ;;  %v3392_v24 = vadd.f32 %v862_v18, %v3305_v63  ;;  %v870_v48 = vmul.f32 %v2967_v36, %v850_v50  ;;  %v3396_v26 = vadd.f32 %v867_v35, %v3310_v39 }
 0x128   : > { %v3399_v58 = vadd.f32 %v868_v29, %v3313_v62  ;;  %v3402_v59 = vadd.f32 %v869_v13, %v3316_v4  ;;  %v3407_v22 = vmax.f32 %v795_v56, %v847_v6  ;;  %v3412_v21 = vmax.f32 %v796_v41, %v848_v27 }
 0x129   : > { %v3415_v63 = vadd.f32 %v870_v48, %v3323_v5  ;;  %v3420_v39 = vmax.f32 %v797_v57, %v849_v33  ;;  %v3425_v62 = vmax.f32 %v798_v14, %v850_v50  ;;  %v879_v19 = vmul.f32 %v3366_v12, %v3366_v12 }
 0x12a   : > { %v880_v42 = vmul.f32 %v3374_v38, %v3374_v38  ;;  %v881_v51 = vmul.f32 %v3381_v40, %v3381_v40  ;;  %v882_v32 = vmul.f32 %v3389_v44, %v3389_v44  ;;  %v883_v10 = vmul.f32 %v3370_v54, %v3370_v54 }
 0x12b   : > { %v884_v45 = vmul.f32 %v3378_v9, %v3378_v9  ;;  %v885_v55 = vmul.f32 %v3384_v20, %v3384_v20  ;;  %v886_v11 = vmul.f32 %v3392_v24, %v3392_v24  ;;  %v891_v4 = vmul.f32 %v3396_v26, %v3396_v26 }
 0x12c   : > { %v887_v56 = vadd.f32 %v883_v10, %v879_v19  ;;  %v892_v41 = vmul.f32 %v3399_v58, %v3399_v58  ;;  %v893_v5 = vmul.f32 %v3402_v59, %v3402_v59  ;;  %v894_v57 = vmul.f32 %v3415_v63, %v3415_v63 }
 0x12d   : > { %v888_v14 = vadd.f32 %v884_v45, %v880_v42  ;;  %v889_v0 = vadd.f32 %v885_v55, %v881_v51  ;;  %v890_v43 = vadd.f32 %v886_v11, %v882_v32 }
 0x12e   : > { %v895_v6 = vadd.f32 %v891_v4, %v887_v56 }
 0x12f   : > { %v896_v15 = vadd.f32 %v892_v41, %v888_v14  ;;  %v897_v25 = vadd.f32 %v893_v5, %v889_v0  ;;  %v898_v27 = vadd.f32 %v894_v57, %v890_v43 }
 0x130   : > { %2314 = vrsqrt.f32 %v895_v6  ;;  %vm901_vm8 = vcmp.eq.f32.partialorder %v895_v6, inf  ;;  %vm903_vm9 = vcmp.eq.f32.partialorder %v895_v6, 0.0  ;;  %v904_v33 = vand.u32 2147483648, %v895_v6 }
 0x131   : > { %2316 = vrsqrt.f32 %v896_v15  ;;  %vm908_vm10 = vcmp.eq.f32.partialorder %v896_v15, inf  ;;  %vm910_vm11 = vcmp.eq.f32.partialorder %v896_v15, 0.0  ;;  %v911_v50 = vand.u32 2147483648, %v896_v15 }
 0x132   : > { %2318 = vrsqrt.f32 %v897_v25  ;;  %vm915_vm12 = vcmp.eq.f32.partialorder %v897_v25, inf  ;;  %vm917_vm13 = vcmp.eq.f32.partialorder %v897_v25, 0.0  ;;  %v918_v35 = vand.u32 2147483648, %v897_v25 }
 0x133   : > { %2320 = vrsqrt.f32 %v898_v27  ;;  %vm922_vm14 = vcmp.eq.f32.partialorder %v898_v27, inf  ;;  %v925_v18 = vand.u32 2147483648, %v898_v27  ;;  %vm924_vm15 = vcmp.eq.f32.partialorder %v898_v27, 0.0 }
 0x13a   : > { %v2315_v53 = vpop.eup %2314 }
 0x13b   : > { %v2317_v46 = vpop.eup %2316  ;;  %v900_v34 = vmul.f32 %v2315_v53, %v895_v6 }
 0x13c   : > { %v2319_v23 = vpop.eup %2318  ;;  %v907_v47 = vmul.f32 %v2317_v46, %v896_v15 }
 0x13d   : > { %v2321_v52 = vpop.eup %2320  ;;  %v902_v28 = vsel %vm901_vm8, %v895_v6, %v900_v34  ;;  %v914_v37 = vmul.f32 %v2319_v23, %v897_v25 }
 0x13e   : > { %v905_v29 = vsel %vm903_vm9, %v904_v33, %v902_v28  ;;  %v909_v13 = vsel %vm908_vm10, %v896_v15, %v907_v47  ;;  %v921_v48 = vmul.f32 %v2321_v52, %v898_v27 }
 0x13f   : > { %v912_v19 = vsel %vm910_vm11, %v911_v50, %v909_v13  ;;  %v916_v42 = vsel %vm915_vm12, %v897_v25, %v914_v37  ;;  %v3454_v51 = vsub.f32 %v905_v29, %v2903_v49 }
 0x140   : > { %v919_v32 = vsel %vm917_vm13, %v918_v35, %v916_v42  ;;  %v923_v10 = vsel %vm922_vm14, %v898_v27, %v921_v48  ;;  %v3457_v45 = vsub.f32 %v912_v19, %v2903_v49 }
 0x141   : > { %v926_v55 = vsel %vm924_vm15, %v925_v18, %v923_v10  ;;  %v3460_v11 = vsub.f32 %v919_v32, %v2903_v49  ;;  %v931_v4 = vmul.f32 %v3454_v51, %v2906_v60  ;;  %v939_v56 = vmul.f32 %v2909_v61, %v3454_v51 }
 0x142   : > { %v3467_v41 = vsub.f32 %v926_v55, %v2903_v49  ;;  %v932_v5 = vmul.f32 %v3457_v45, %v2914_v1  ;;  %v940_v57 = vmul.f32 %v2917_v2, %v3457_v45  ;;  %v947_v14 = vmul.f32 %v2920_v3, %v3454_v51 }
 0x143   : > { %v933_v0 = vmul.f32 %v3460_v11, %v2928_v7  ;;  %v3478_v60 = vadd.f32 %v931_v4, %v3366_v12  ;;  %v941_v61 = vmul.f32 %v2931_v8, %v3460_v11  ;;  %v3483_v43 = vadd.f32 %v939_v56, %v3370_v54 }
 0x144   : > { %v934_v1 = vmul.f32 %v3467_v41, %v2939_v16  ;;  %v3488_v2 = vadd.f32 %v932_v5, %v3374_v38  ;;  %v942_v3 = vmul.f32 %v2942_v17, %v3467_v41  ;;  %v3493_v7 = vadd.f32 %v940_v57, %v3378_v9 }
 0x145   : > { %v3496_v12 = vadd.f32 %v933_v0, %v3381_v40  ;;  %v3499_v8 = vadd.f32 %v941_v61, %v3384_v20  ;;  %v948_v54 = vmul.f32 %v2952_v30, %v3457_v45  ;;  %v949_v16 = vmul.f32 %v2955_v31, %v3460_v11 }
 0x146   : > { %v3506_v38 = vadd.f32 %v934_v1, %v3389_v44  ;;  %v3509_v17 = vadd.f32 %v942_v3, %v3392_v24  ;;  %v950_v9 = vmul.f32 %v2967_v36, %v3467_v41  ;;  %v3514_v40 = vadd.f32 %v947_v14, %v3396_v26 }
 0x147   : > { %v3517_v20 = vadd.f32 %v948_v54, %v3399_v58  ;;  %v3520_v30 = vadd.f32 %v949_v16, %v3402_v59  ;;  %v955_v31 = vmax.f32 %v3407_v22, %v3454_v51  ;;  %v956_v44 = vmax.f32 %v3412_v21, %v3457_v45 }
 0x148   : > { %v3527_v24 = vadd.f32 %v950_v9, %v3415_v63  ;;  %v957_v36 = vmax.f32 %v3420_v39, %v3460_v11  ;;  %v958_v26 = vmax.f32 %v3425_v62, %v3467_v41  ;;  %v959_v58 = vmul.f32 %v3478_v60, %v3478_v60 }
 0x149   : > { %v960_v59 = vmul.f32 %v3488_v2, %v3488_v2  ;;  %v961_v6 = vmul.f32 %v3496_v12, %v3496_v12  ;;  %v962_v15 = vmul.f32 %v3506_v38, %v3506_v38  ;;  %v963_v63 = vmul.f32 %v3483_v43, %v3483_v43 }
 0x14a   : > { %v964_v25 = vmul.f32 %v3493_v7, %v3493_v7  ;;  %v965_v27 = vmul.f32 %v3499_v8, %v3499_v8  ;;  %v966_v53 = vmul.f32 %v3509_v17, %v3509_v17  ;;  %v971_v33 = vmul.f32 %v3514_v40, %v3514_v40 }
 0x14b   : > { %v967_v46 = vadd.f32 %v963_v63, %v959_v58  ;;  %v972_v34 = vmul.f32 %v3517_v20, %v3517_v20  ;;  %v973_v50 = vmul.f32 %v3520_v30, %v3520_v30  ;;  %v974_v23 = vmul.f32 %v3527_v24, %v3527_v24  ;;  %v3563_v63 = vld [vmem:[%s2786_s15] sm:$0xff] }
 0x14c   : > { %v968_v47 = vadd.f32 %v964_v25, %v960_v59  ;;  %v969_v35 = vadd.f32 %v965_v27, %v961_v6  ;;  %v970_v52 = vadd.f32 %v966_v53, %v962_v15  ;;  %v3567_v27 = vld [vmem:[%s2786_s15 + $0x20] sm:$0xff] }
 0x14d   : > { %v975_v28 = vadd.f32 %v971_v33, %v967_v46  ;;  %v3572_v46 = vld [vmem:[%s2786_s15 + $0x8] sm:$0xff] }
 0x14e   : > { %v976_v37 = vadd.f32 %v972_v34, %v968_v47  ;;  %v977_v18 = vadd.f32 %v973_v50, %v969_v35  ;;  %v978_v29 = vadd.f32 %v974_v23, %v970_v52  ;;  %v3576_v50 = vld [vmem:[%s2786_s15 + $0x28] sm:$0xff]  ;;  %v3580_v47 = vld [vmem:[%s2786_s15 + $0x40] sm:$0xff]  ;;  %v3584_v52 = vld [vmem:[%s2786_s15 + $0x10] sm:$0xff] }
 0x14f   : > { %2322 = vrsqrt.f32 %v975_v28  ;;  %vm981_vm0 = vcmp.eq.f32.partialorder %v975_v28, inf  ;;  %vm983_vm1 = vcmp.eq.f32.partialorder %v975_v28, 0.0  ;;  %v984_v48 = vand.u32 2147483648, %v975_v28 }
 0x150   : > { %2324 = vrsqrt.f32 %v976_v37  ;;  %vm988_vm2 = vcmp.eq.f32.partialorder %v976_v37, inf  ;;  %vm990_vm3 = vcmp.eq.f32.partialorder %v976_v37, 0.0  ;;  %v991_v32 = vand.u32 2147483648, %v976_v37 }
 0x151   : > { %2326 = vrsqrt.f32 %v977_v18  ;;  %vm995_vm4 = vcmp.eq.f32.partialorder %v977_v18, inf  ;;  %vm997_vm5 = vcmp.eq.f32.partialorder %v977_v18, 0.0  ;;  %v998_v4 = vand.u32 2147483648, %v977_v18 }
 0x152   : > { %2328 = vrsqrt.f32 %v978_v29  ;;  %vm1002_vm6 = vcmp.eq.f32.partialorder %v978_v29, inf  ;;  %v1005_v14 = vand.u32 2147483648, %v978_v29  ;;  %vm1004_vm7 = vcmp.eq.f32.partialorder %v978_v29, 0.0 }
 0x159   : > { %v2323_v13 = vpop.eup %2322 }
 0x15a   : > { %v2325_v19 = vpop.eup %2324  ;;  %v980_v42 = vmul.f32 %v2323_v13, %v975_v28 }
 0x15b   : > { %v2327_v10 = vpop.eup %2326  ;;  %v987_v55 = vmul.f32 %v2325_v19, %v976_v37 }
 0x15c   : > { %v2329_v56 = vpop.eup %2328  ;;  %v982_v5 = vsel %vm981_vm0, %v975_v28, %v980_v42  ;;  %v994_v57 = vmul.f32 %v2327_v10, %v977_v18 }
 0x15d   : > { %v985_v0 = vsel %vm983_vm1, %v984_v48, %v982_v5  ;;  %v989_v61 = vsel %vm988_vm2, %v976_v37, %v987_v55  ;;  %v1001_v1 = vmul.f32 %v2329_v56, %v978_v29  ;;  %v3598_v48 = vld [vmem:[%s2786_s15 + $0x18] sm:$0xff]  ;;  %v3622_v5 = vld [vmem:[%s2786_s15 + $0x50] sm:$0xff] }
 0x15e   : > { %v992_v3 = vsel %vm990_vm3, %v991_v32, %v989_v61  ;;  %v996_v54 = vsel %vm995_vm4, %v977_v18, %v994_v57  ;;  %v1007_v16 = vsub.f32 %v985_v0, %v2903_v49  ;;  %v3591_v18 = vld [vmem:[%s2786_s15 + $0x30] sm:$0xff]  ;;  %v3605_v32 = vld [vmem:[%s2786_s15 + $0x38] sm:$0xff] }
 0x15f   : > { %v999_v9 = vsel %vm997_vm5, %v998_v4, %v996_v54  ;;  %v1003_v58 = vsel %vm1002_vm6, %v978_v29, %v1001_v1  ;;  %v1008_v59 = vsub.f32 %v992_v3, %v2903_v49  ;;  %v3618_v4 = vld [vmem:[%s2786_s15 + $0x48] sm:$0xff] }
 0x160   : > { %v1006_v6 = vsel %vm1004_vm7, %v1005_v14, %v1003_v58  ;;  %v1009_v15 = vsub.f32 %v999_v9, %v2903_v49  ;;  %v1011_v25 = vmul.f32 %v3563_v63, %v1007_v16  ;;  %v1019_v53 = vmul.f32 %v3567_v27, %v1007_v16  ;;  %v3632_v14 = vld [vmem:[%s2786_s15 + $0x58] sm:$0xff] }
 0x161   : > { %v1010_v33 = vsub.f32 %v1006_v6, %v2903_v49  ;;  %v1012_v34 = vmul.f32 %v3572_v46, %v1008_v59  ;;  %v1020_v23 = vmul.f32 %v3576_v50, %v1008_v59  ;;  %v1027_v35 = vmul.f32 %v3580_v47, %v1007_v16 }
 0x162   : > { %v1013_v28 = vmul.f32 %v3584_v52, %v1009_v15  ;;  %v3588_v37 = vadd.f32 %v1011_v25, %v3478_v60  ;;  %v1021_v29 = vmul.f32 %v3591_v18, %v1009_v15  ;;  %v3595_v13 = vadd.f32 %v1019_v53, %v3483_v43 }
 0x163   : > { %v1014_v19 = vmul.f32 %v3598_v48, %v1010_v33  ;;  %v3602_v42 = vadd.f32 %v1012_v34, %v3488_v2  ;;  %v1022_v60 = vmul.f32 %v3605_v32, %v1010_v33  ;;  %v3609_v10 = vadd.f32 %v1020_v23, %v3493_v7 }
 0x164   : > { %v3612_v55 = vadd.f32 %v1013_v28, %v3496_v12  ;;  %v3615_v43 = vadd.f32 %v1021_v29, %v3499_v8  ;;  %v1028_v56 = vmul.f32 %v3618_v4, %v1008_v59  ;;  %v1029_v2 = vmul.f32 %v3622_v5, %v1009_v15 }
 0x165   : > { %v3626_v57 = vadd.f32 %v1014_v19, %v3506_v38  ;;  %v3629_v7 = vadd.f32 %v1022_v60, %v3509_v17  ;;  %v1030_v12 = vmul.f32 %v3632_v14, %v1010_v33  ;;  %v3636_v8 = vadd.f32 %v1027_v35, %v3514_v40 }
 0x166   : > { %v3639_v0 = vadd.f32 %v1028_v56, %v3517_v20  ;;  %v3642_v61 = vadd.f32 %v1029_v2, %v3520_v30  ;;  %v3647_v38 = vmax.f32 %v955_v31, %v1007_v16  ;;  %v3652_v17 = vmax.f32 %v956_v44, %v1008_v59 }
 0x167   : > { %v3655_v1 = vadd.f32 %v1030_v12, %v3527_v24  ;;  %v3660_v40 = vmax.f32 %v957_v36, %v1009_v15  ;;  %v3665_v20 = vmax.f32 %v958_v26, %v1010_v33  ;;  %v1039_v22 = vmul.f32 %v3588_v37, %v3588_v37 }
 0x168   : > { %v1040_v21 = vmul.f32 %v3602_v42, %v3602_v42  ;;  %v1041_v51 = vmul.f32 %v3612_v55, %v3612_v55  ;;  %v1042_v45 = vmul.f32 %v3626_v57, %v3626_v57  ;;  %v1043_v39 = vmul.f32 %v3595_v13, %v3595_v13 }
 0x169   : > { %v1044_v62 = vmul.f32 %v3609_v10, %v3609_v10  ;;  %v1045_v11 = vmul.f32 %v3615_v43, %v3615_v43  ;;  %v1046_v41 = vmul.f32 %v3629_v7, %v3629_v7  ;;  %v1051_v30 = vmul.f32 %v3636_v8, %v3636_v8 }
 0x16a   : > { %v1047_v31 = vadd.f32 %v1043_v39, %v1039_v22  ;;  %v1052_v44 = vmul.f32 %v3639_v0, %v3639_v0  ;;  %v1053_v24 = vmul.f32 %v3642_v61, %v3642_v61  ;;  %v1054_v36 = vmul.f32 %v3655_v1, %v3655_v1 }
 0x16b   : > { %v1048_v26 = vadd.f32 %v1044_v62, %v1040_v21  ;;  %v1049_v3 = vadd.f32 %v1045_v11, %v1041_v51  ;;  %v1050_v54 = vadd.f32 %v1046_v41, %v1042_v45 }
 0x16c   : > { %v1055_v16 = vadd.f32 %v1051_v30, %v1047_v31 }
 0x16d   : > { %v1056_v9 = vadd.f32 %v1052_v44, %v1048_v26  ;;  %v1057_v58 = vadd.f32 %v1053_v24, %v1049_v3  ;;  %v1058_v59 = vadd.f32 %v1054_v36, %v1050_v54 }
 0x16e   : > { %2330 = vrsqrt.f32 %v1055_v16  ;;  %vm1061_vm8 = vcmp.eq.f32.partialorder %v1055_v16, inf  ;;  %vm1063_vm9 = vcmp.eq.f32.partialorder %v1055_v16, 0.0  ;;  %v1064_v15 = vand.u32 2147483648, %v1055_v16 }
 0x16f   : > { %2332 = vrsqrt.f32 %v1056_v9  ;;  %vm1068_vm10 = vcmp.eq.f32.partialorder %v1056_v9, inf  ;;  %vm1070_vm11 = vcmp.eq.f32.partialorder %v1056_v9, 0.0  ;;  %v1071_v33 = vand.u32 2147483648, %v1056_v9 }
 0x170   : > { %2334 = vrsqrt.f32 %v1057_v58  ;;  %vm1075_vm12 = vcmp.eq.f32.partialorder %v1057_v58, inf  ;;  %vm1077_vm13 = vcmp.eq.f32.partialorder %v1057_v58, 0.0  ;;  %v1078_v35 = vand.u32 2147483648, %v1057_v58 }
 0x171   : > { %2336 = vrsqrt.f32 %v1058_v59  ;;  %vm1082_vm14 = vcmp.eq.f32.partialorder %v1058_v59, inf  ;;  %v1085_v60 = vand.u32 2147483648, %v1058_v59  ;;  %vm1084_vm15 = vcmp.eq.f32.partialorder %v1058_v59, 0.0 }
 0x178   : > { %v2331_v6 = vpop.eup %2330 }
 0x179   : > { %v2333_v25 = vpop.eup %2332  ;;  %v1060_v53 = vmul.f32 %v2331_v6, %v1055_v16 }
 0x17a   : > { %v2335_v34 = vpop.eup %2334  ;;  %v1067_v23 = vmul.f32 %v2333_v25, %v1056_v9 }
 0x17b   : > { %v2337_v28 = vpop.eup %2336  ;;  %v1062_v29 = vsel %vm1061_vm8, %v1055_v16, %v1060_v53  ;;  %v1074_v19 = vmul.f32 %v2335_v34, %v1057_v58 }
 0x17c   : > { %v1065_v56 = vsel %vm1063_vm9, %v1064_v15, %v1062_v29  ;;  %v1069_v2 = vsel %vm1068_vm10, %v1056_v9, %v1067_v23  ;;  %v1081_v12 = vmul.f32 %v2337_v28, %v1058_v59 }
 0x17d   : > { %v1072_v22 = vsel %vm1070_vm11, %v1071_v33, %v1069_v2  ;;  %v1076_v21 = vsel %vm1075_vm12, %v1057_v58, %v1074_v19  ;;  %v3694_v51 = vsub.f32 %v1065_v56, %v2903_v49 }
 0x17e   : > { %v1079_v45 = vsel %vm1077_vm13, %v1078_v35, %v1076_v21  ;;  %v1083_v39 = vsel %vm1082_vm14, %v1058_v59, %v1081_v12  ;;  %v3697_v62 = vsub.f32 %v1072_v22, %v2903_v49 }
 0x17f   : > { %v1086_v11 = vsel %vm1084_vm15, %v1085_v60, %v1083_v39  ;;  %v3700_v41 = vsub.f32 %v1079_v45, %v2903_v49  ;;  %v1091_v30 = vmul.f32 %v3563_v63, %v3694_v51  ;;  %v1099_v31 = vmul.f32 %v3567_v27, %v3694_v51 }
 0x180   : > { %v3707_v44 = vsub.f32 %v1086_v11, %v2903_v49  ;;  %v1092_v24 = vmul.f32 %v3572_v46, %v3697_v62  ;;  %v1100_v36 = vmul.f32 %v3576_v50, %v3697_v62  ;;  %v1107_v26 = vmul.f32 %v3580_v47, %v3694_v51 }
 0x181   : > { %v1093_v3 = vmul.f32 %v3584_v52, %v3700_v41  ;;  %v3718_v54 = vadd.f32 %v1091_v30, %v3588_v37  ;;  %v1101_v16 = vmul.f32 %v3591_v18, %v3700_v41  ;;  %v3723_v9 = vadd.f32 %v1099_v31, %v3595_v13 }
 0x182   : > { %v1094_v58 = vmul.f32 %v3598_v48, %v3707_v44  ;;  %v3728_v59 = vadd.f32 %v1092_v24, %v3602_v42  ;;  %v1102_v6 = vmul.f32 %v3605_v32, %v3707_v44  ;;  %v3733_v15 = vadd.f32 %v1100_v36, %v3609_v10 }
 0x183   : > { %v3736_v37 = vadd.f32 %v1093_v3, %v3612_v55  ;;  %v3739_v25 = vadd.f32 %v1101_v16, %v3615_v43  ;;  %v1108_v13 = vmul.f32 %v3618_v4, %v3697_v62  ;;  %v1109_v53 = vmul.f32 %v3622_v5, %v3700_v41 }
 0x184   : > { %v3746_v42 = vadd.f32 %v1094_v58, %v3626_v57  ;;  %v3749_v33 = vadd.f32 %v1102_v6, %v3629_v7  ;;  %v1110_v10 = vmul.f32 %v3632_v14, %v3707_v44  ;;  %v3754_v55 = vadd.f32 %v1107_v26, %v3636_v8 }
 0x185   : > { %v3757_v43 = vadd.f32 %v1108_v13, %v3639_v0  ;;  %v3760_v34 = vadd.f32 %v1109_v53, %v3642_v61  ;;  %v1115_v23 = vmax.f32 %v3647_v38, %v3694_v51  ;;  %v1116_v57 = vmax.f32 %v3652_v17, %v3697_v62 }
 0x186   : > { %v3767_v7 = vadd.f32 %v1110_v10, %v3655_v1  ;;  %v1117_v35 = vmax.f32 %v3660_v40, %v3700_v41  ;;  %v1118_v8 = vmax.f32 %v3665_v20, %v3707_v44  ;;  %v1119_v0 = vmul.f32 %v3718_v54, %v3718_v54 }
 0x187   : > { %v1120_v61 = vmul.f32 %v3728_v59, %v3728_v59  ;;  %v1121_v28 = vmul.f32 %v3736_v37, %v3736_v37  ;;  %v1122_v29 = vmul.f32 %v3746_v42, %v3746_v42  ;;  %v1123_v1 = vmul.f32 %v3723_v9, %v3723_v9 }
 0x188   : > { %v1124_v19 = vmul.f32 %v3733_v15, %v3733_v15  ;;  %v1125_v60 = vmul.f32 %v3739_v25, %v3739_v25  ;;  %v1126_v56 = vmul.f32 %v3749_v33, %v3749_v33  ;;  %v1131_v2 = vmul.f32 %v3754_v55, %v3754_v55 }
 0x189   : > { %v1127_v12 = vadd.f32 %v1123_v1, %v1119_v0  ;;  %v1132_v22 = vmul.f32 %v3757_v43, %v3757_v43  ;;  %v1133_v21 = vmul.f32 %v3760_v34, %v3760_v34  ;;  %v1134_v45 = vmul.f32 %v3767_v7, %v3767_v7 }
 0x18a   : > { %v1128_v39 = vadd.f32 %v1124_v19, %v1120_v61  ;;  %v1129_v11 = vadd.f32 %v1125_v60, %v1121_v28  ;;  %v1130_v30 = vadd.f32 %v1126_v56, %v1122_v29 }
 0x18b   : > { %v1135_v31 = vadd.f32 %v1131_v2, %v1127_v12 }
 0x18c   : > { %v1136_v24 = vadd.f32 %v1132_v22, %v1128_v39  ;;  %v1137_v36 = vadd.f32 %v1133_v21, %v1129_v11  ;;  %v1138_v26 = vadd.f32 %v1134_v45, %v1130_v30 }
 0x18d   : > { %2338 = vrsqrt.f32 %v1135_v31  ;;  %vm1141_vm0 = vcmp.eq.f32.partialorder %v1135_v31, inf  ;;  %vm1143_vm1 = vcmp.eq.f32.partialorder %v1135_v31, 0.0  ;;  %v1144_v16 = vand.u32 2147483648, %v1135_v31 }
 0x18e   : > { %2340 = vrsqrt.f32 %v1136_v24  ;;  %vm1148_vm2 = vcmp.eq.f32.partialorder %v1136_v24, inf  ;;  %vm1150_vm3 = vcmp.eq.f32.partialorder %v1136_v24, 0.0  ;;  %v1151_v13 = vand.u32 2147483648, %v1136_v24 }
 0x18f   : > { %2342 = vrsqrt.f32 %v1137_v36  ;;  %vm1155_vm4 = vcmp.eq.f32.partialorder %v1137_v36, inf  ;;  %vm1157_vm5 = vcmp.eq.f32.partialorder %v1137_v36, 0.0  ;;  %v1158_v0 = vand.u32 2147483648, %v1137_v36 }
 0x190   : > { %2344 = vrsqrt.f32 %v1138_v26  ;;  %vm1162_vm6 = vcmp.eq.f32.partialorder %v1138_v26, inf  ;;  %v1165_v1 = vand.u32 2147483648, %v1138_v26  ;;  %vm1164_vm7 = vcmp.eq.f32.partialorder %v1138_v26, 0.0 }
 0x197   : > { %v2339_v3 = vpop.eup %2338 }
 0x198   : > { %v2341_v58 = vpop.eup %2340  ;;  %v1140_v6 = vmul.f32 %v2339_v3, %v1135_v31 }
 0x199   : > { %v2343_v53 = vpop.eup %2342  ;;  %v1147_v10 = vmul.f32 %v2341_v58, %v1136_v24 }
 0x19a   : > { %v2345_v61 = vpop.eup %2344  ;;  %v1142_v28 = vsel %vm1141_vm0, %v1135_v31, %v1140_v6  ;;  %v1154_v29 = vmul.f32 %v2343_v53, %v1137_v36 }
 0x19b   : > { %v1145_v19 = vsel %vm1143_vm1, %v1144_v16, %v1142_v28  ;;  %v1149_v60 = vsel %vm1148_vm2, %v1136_v24, %v1147_v10  ;;  %v1161_v56 = vmul.f32 %v2345_v61, %v1138_v26 }
 0x19c   : > { %v1152_v2 = vsel %vm1150_vm3, %v1151_v13, %v1149_v60  ;;  %v1156_v12 = vsel %vm1155_vm4, %v1137_v36, %v1154_v29  ;;  %v1167_v22 = vsub.f32 %v1145_v19, %v2903_v49 }
 0x19d   : > { %v1159_v21 = vsel %vm1157_vm5, %v1158_v0, %v1156_v12  ;;  %v1163_v45 = vsel %vm1162_vm6, %v1138_v26, %v1161_v56  ;;  %v1168_v39 = vsub.f32 %v1152_v2, %v2903_v49 }
 0x19e   : > { %v1166_v11 = vsel %vm1164_vm7, %v1165_v1, %v1163_v45  ;;  %v1169_v30 = vsub.f32 %v1159_v21, %v2903_v49  ;;  %v1171_v3 = vmul.f32 %v3563_v63, %v1167_v22  ;;  %v1179_v31 = vmul.f32 %v3567_v27, %v1167_v22 }
 0x19f   : > { %v1170_v16 = vsub.f32 %v1166_v11, %v2903_v49  ;;  %v1172_v58 = vmul.f32 %v3572_v46, %v1168_v39  ;;  %v1180_v24 = vmul.f32 %v3576_v50, %v1168_v39  ;;  %v1187_v36 = vmul.f32 %v3580_v47, %v1167_v22 }
 0x1a0   : > { %v1173_v6 = vmul.f32 %v3584_v52, %v1169_v30  ;;  %v3810_v26 = vadd.f32 %v1171_v3, %v3718_v54  ;;  %v1181_v13 = vmul.f32 %v3591_v18, %v1169_v30  ;;  %v3814_v53 = vadd.f32 %v1179_v31, %v3723_v9 }
 0x1a1   : > { %v1174_v10 = vmul.f32 %v3598_v48, %v1170_v16  ;;  %v3818_v0 = vadd.f32 %v1172_v58, %v3728_v59  ;;  %v1182_v61 = vmul.f32 %v3605_v32, %v1170_v16  ;;  %v3822_v28 = vadd.f32 %v1180_v24, %v3733_v15 }
 0x1a2   : > { %v3825_v29 = vadd.f32 %v1173_v6, %v3736_v37  ;;  %v3828_v54 = vadd.f32 %v1181_v13, %v3739_v25  ;;  %v1188_v1 = vmul.f32 %v3618_v4, %v1168_v39  ;;  %v1189_v9 = vmul.f32 %v3622_v5, %v1169_v30 }
 0x1a3   : > { %v3833_v19 = vadd.f32 %v1174_v10, %v3746_v42  ;;  %v3836_v59 = vadd.f32 %v1182_v61, %v3749_v33  ;;  %v1190_v60 = vmul.f32 %v3632_v14, %v1170_v16  ;;  %v3840_v15 = vadd.f32 %v1187_v36, %v3754_v55 }
 0x1a4   : > { %v3843_v37 = vadd.f32 %v1188_v1, %v3757_v43  ;;  %v3846_v25 = vadd.f32 %v1189_v9, %v3760_v34  ;;  %v3851_v56 = vmax.f32 %v1115_v23, %v1167_v22  ;;  %v3856_v42 = vmax.f32 %v1116_v57, %v1168_v39 }
 0x1a5   : > { %v3859_v33 = vadd.f32 %v1190_v60, %v3767_v7  ;;  %v3864_v55 = vmax.f32 %v1117_v35, %v1169_v30  ;;  %v3869_v43 = vmax.f32 %v1118_v8, %v1170_v16  ;;  %v1199_v38 = vmul.f32 %v3810_v26, %v3810_v26 }
 0x1a6   : > { %v1200_v17 = vmul.f32 %v3818_v0, %v3818_v0  ;;  %v1201_v51 = vmul.f32 %v3825_v29, %v3825_v29  ;;  %v1202_v62 = vmul.f32 %v3833_v19, %v3833_v19  ;;  %v1203_v40 = vmul.f32 %v3814_v53, %v3814_v53 }
 0x1a7   : > { %v1204_v20 = vmul.f32 %v3822_v28, %v3822_v28  ;;  %v1205_v41 = vmul.f32 %v3828_v54, %v3828_v54  ;;  %v1206_v44 = vmul.f32 %v3836_v59, %v3836_v59  ;;  %v1211_v34 = vmul.f32 %v3840_v15, %v3840_v15 }
 0x1a8   : > { %v1207_v23 = vadd.f32 %v1203_v40, %v1199_v38  ;;  %v1212_v57 = vmul.f32 %v3843_v37, %v3843_v37  ;;  %v1213_v7 = vmul.f32 %v3846_v25, %v3846_v25  ;;  %v1214_v35 = vmul.f32 %v3859_v33, %v3859_v33 }
 0x1a9   : > { %v1208_v8 = vadd.f32 %v1204_v20, %v1200_v17  ;;  %v1209_v2 = vadd.f32 %v1205_v41, %v1201_v51  ;;  %v1210_v12 = vadd.f32 %v1206_v44, %v1202_v62 }
 0x1aa   : > { %v1215_v22 = vadd.f32 %v1211_v34, %v1207_v23 }
 0x1ab   : > { %v1216_v21 = vadd.f32 %v1212_v57, %v1208_v8  ;;  %v1217_v45 = vadd.f32 %v1213_v7, %v1209_v2  ;;  %v1218_v39 = vadd.f32 %v1214_v35, %v1210_v12 }
 0x1ac   : > { %2346 = vrsqrt.f32 %v1215_v22  ;;  %vm1221_vm8 = vcmp.eq.f32.partialorder %v1215_v22, inf  ;;  %vm1223_vm9 = vcmp.eq.f32.partialorder %v1215_v22, 0.0  ;;  %v1224_v30 = vand.u32 2147483648, %v1215_v22 }
 0x1ad   : > { %2348 = vrsqrt.f32 %v1216_v21  ;;  %vm1228_vm10 = vcmp.eq.f32.partialorder %v1216_v21, inf  ;;  %vm1230_vm11 = vcmp.eq.f32.partialorder %v1216_v21, 0.0  ;;  %v1231_v16 = vand.u32 2147483648, %v1216_v21 }
 0x1ae   : > { %2350 = vrsqrt.f32 %v1217_v45  ;;  %vm1235_vm12 = vcmp.eq.f32.partialorder %v1217_v45, inf  ;;  %vm1237_vm13 = vcmp.eq.f32.partialorder %v1217_v45, 0.0  ;;  %v1238_v36 = vand.u32 2147483648, %v1217_v45 }
 0x1af   : > { %2352 = vrsqrt.f32 %v1218_v39  ;;  %vm1242_vm14 = vcmp.eq.f32.partialorder %v1218_v39, inf  ;;  %v1245_v61 = vand.u32 2147483648, %v1218_v39  ;;  %vm1244_vm15 = vcmp.eq.f32.partialorder %v1218_v39, 0.0 }
 0x1b6   : > { %v2347_v11 = vpop.eup %2346 }
 0x1b7   : > { %v2349_v3 = vpop.eup %2348  ;;  %v1220_v31 = vmul.f32 %v2347_v11, %v1215_v22 }
 0x1b8   : > { %v2351_v58 = vpop.eup %2350  ;;  %v1227_v24 = vmul.f32 %v2349_v3, %v1216_v21 }
 0x1b9   : > { %v2353_v6 = vpop.eup %2352  ;;  %v1222_v13 = vsel %vm1221_vm8, %v1215_v22, %v1220_v31  ;;  %v1234_v10 = vmul.f32 %v2351_v58, %v1217_v45 }
 0x1ba   : > { %v1225_v1 = vsel %vm1223_vm9, %v1224_v30, %v1222_v13  ;;  %v1229_v9 = vsel %vm1228_vm10, %v1216_v21, %v1227_v24  ;;  %v1241_v60 = vmul.f32 %v2353_v6, %v1218_v39 }
 0x1bb   : > { %v1232_v38 = vsel %vm1230_vm11, %v1231_v16, %v1229_v9  ;;  %v1236_v17 = vsel %vm1235_vm12, %v1217_v45, %v1234_v10  ;;  %v3898_v51 = vsub.f32 %v1225_v1, %v2903_v49 }
 0x1bc   : > { %v1239_v62 = vsel %vm1237_vm13, %v1238_v36, %v1236_v17  ;;  %v1243_v40 = vsel %vm1242_vm14, %v1218_v39, %v1241_v60  ;;  %v3901_v20 = vsub.f32 %v1232_v38, %v2903_v49 }
 0x1bd   : > { %v1246_v41 = vsel %vm1244_vm15, %v1245_v61, %v1243_v40  ;;  %v3904_v44 = vsub.f32 %v1239_v62, %v2903_v49  ;;  %v1251_v34 = vmul.f32 %v3563_v63, %v3898_v51  ;;  %v1259_v23 = vmul.f32 %v3567_v27, %v3898_v51 }
 0x1be   : > { %v3911_v57 = vsub.f32 %v1246_v41, %v2903_v49  ;;  %v1252_v7 = vmul.f32 %v3572_v46, %v3901_v20  ;;  %v1260_v35 = vmul.f32 %v3576_v50, %v3901_v20  ;;  %v1267_v8 = vmul.f32 %v3580_v47, %v3898_v51 }
 0x1bf   : > { %v1253_v2 = vmul.f32 %v3584_v52, %v3904_v44  ;;  %v3922_v12 = vadd.f32 %v1251_v34, %v3810_v26  ;;  %v1261_v22 = vmul.f32 %v3591_v18, %v3904_v44  ;;  %v3927_v21 = vadd.f32 %v1259_v23, %v3814_v53 }
 0x1c0   : > { %v1254_v45 = vmul.f32 %v3598_v48, %v3911_v57  ;;  %v3932_v39 = vadd.f32 %v1252_v7, %v3818_v0  ;;  %v1262_v11 = vmul.f32 %v3605_v32, %v3911_v57  ;;  %v3937_v30 = vadd.f32 %v1260_v35, %v3822_v28 }
 0x1c1   : > { %v3940_v26 = vadd.f32 %v1253_v2, %v3825_v29  ;;  %v3943_v3 = vadd.f32 %v1261_v22, %v3828_v54  ;;  %v1268_v53 = vmul.f32 %v3618_v4, %v3901_v20  ;;  %v1269_v31 = vmul.f32 %v3622_v5, %v3904_v44 }
 0x1c2   : > { %v3950_v0 = vadd.f32 %v1254_v45, %v3833_v19  ;;  %v3953_v16 = vadd.f32 %v1262_v11, %v3836_v59  ;;  %v1270_v28 = vmul.f32 %v3632_v14, %v3911_v57  ;;  %v3958_v29 = vadd.f32 %v1267_v8, %v3840_v15 }
 0x1c3   : > { %v3961_v54 = vadd.f32 %v1268_v53, %v3843_v37  ;;  %v3964_v58 = vadd.f32 %v1269_v31, %v3846_v25  ;;  %v1275_v24 = vmax.f32 %v3851_v56, %v3898_v51  ;;  %v1276_v19 = vmax.f32 %v3856_v42, %v3901_v20 }
 0x1c4   : > { %v3971_v59 = vadd.f32 %v1270_v28, %v3859_v33  ;;  %v1277_v36 = vmax.f32 %v3864_v55, %v3904_v44  ;;  %v1278_v15 = vmax.f32 %v3869_v43, %v3911_v57  ;;  %v1279_v37 = vmul.f32 %v3922_v12, %v3922_v12 }
 0x1c5   : > { %v1280_v25 = vmul.f32 %v3932_v39, %v3932_v39  ;;  %v1281_v6 = vmul.f32 %v3940_v26, %v3940_v26  ;;  %v1282_v13 = vmul.f32 %v3950_v0, %v3950_v0  ;;  %v1283_v33 = vmul.f32 %v3927_v21, %v3927_v21 }
 0x1c6   : > { %v1284_v10 = vmul.f32 %v3937_v30, %v3937_v30  ;;  %v1285_v61 = vmul.f32 %v3943_v3, %v3943_v3  ;;  %v1286_v1 = vmul.f32 %v3953_v16, %v3953_v16  ;;  %v1291_v9 = vmul.f32 %v3958_v29, %v3958_v29 }
 0x1c7   : > { %v1287_v60 = vadd.f32 %v1283_v33, %v1279_v37  ;;  %v1292_v38 = vmul.f32 %v3961_v54, %v3961_v54  ;;  %v1293_v17 = vmul.f32 %v3964_v58, %v3964_v58  ;;  %v1294_v62 = vmul.f32 %v3971_v59, %v3971_v59 }
 0x1c8   : > { %v1288_v40 = vadd.f32 %v1284_v10, %v1280_v25  ;;  %v1289_v41 = vadd.f32 %v1285_v61, %v1281_v6  ;;  %v1290_v34 = vadd.f32 %v1286_v1, %v1282_v13 }
 0x1c9   : > { %v1295_v23 = vadd.f32 %v1291_v9, %v1287_v60 }
 0x1ca   : > { %v1296_v7 = vadd.f32 %v1292_v38, %v1288_v40  ;;  %v1297_v35 = vadd.f32 %v1293_v17, %v1289_v41  ;;  %v1298_v8 = vadd.f32 %v1294_v62, %v1290_v34 }
 0x1cb   : > { %2354 = vrsqrt.f32 %v1295_v23  ;;  %vm1301_vm0 = vcmp.eq.f32.partialorder %v1295_v23, inf  ;;  %vm1303_vm1 = vcmp.eq.f32.partialorder %v1295_v23, 0.0  ;;  %v1304_v22 = vand.u32 2147483648, %v1295_v23 }
 0x1cc   : > { %2356 = vrsqrt.f32 %v1296_v7  ;;  %vm1308_vm2 = vcmp.eq.f32.partialorder %v1296_v7, inf  ;;  %vm1310_vm3 = vcmp.eq.f32.partialorder %v1296_v7, 0.0  ;;  %v1311_v53 = vand.u32 2147483648, %v1296_v7 }
 0x1cd   : > { %2358 = vrsqrt.f32 %v1297_v35  ;;  %vm1315_vm4 = vcmp.eq.f32.partialorder %v1297_v35, inf  ;;  %vm1317_vm5 = vcmp.eq.f32.partialorder %v1297_v35, 0.0  ;;  %v1318_v37 = vand.u32 2147483648, %v1297_v35 }
 0x1ce   : > { %2360 = vrsqrt.f32 %v1298_v8  ;;  %vm1322_vm6 = vcmp.eq.f32.partialorder %v1298_v8, inf  ;;  %v1325_v33 = vand.u32 2147483648, %v1298_v8  ;;  %vm1324_vm7 = vcmp.eq.f32.partialorder %v1298_v8, 0.0 }
 0x1d5   : > { %v2355_v2 = vpop.eup %2354 }
 0x1d6   : > { %v2357_v45 = vpop.eup %2356  ;;  %v1300_v11 = vmul.f32 %v2355_v2, %v1295_v23 }
 0x1d7   : > { %v2359_v31 = vpop.eup %2358  ;;  %v1307_v28 = vmul.f32 %v2357_v45, %v1296_v7 }
 0x1d8   : > { %v2361_v25 = vpop.eup %2360  ;;  %v1302_v6 = vsel %vm1301_vm0, %v1295_v23, %v1300_v11  ;;  %v1314_v13 = vmul.f32 %v2359_v31, %v1297_v35 }
 0x1d9   : > { %v1305_v10 = vsel %vm1303_vm1, %v1304_v22, %v1302_v6  ;;  %v1309_v61 = vsel %vm1308_vm2, %v1296_v7, %v1307_v28  ;;  %v1321_v1 = vmul.f32 %v2361_v25, %v1298_v8 }
 0x1da   : > { %v1312_v9 = vsel %vm1310_vm3, %v1311_v53, %v1309_v61  ;;  %v1316_v60 = vsel %vm1315_vm4, %v1297_v35, %v1314_v13  ;;  %v1327_v38 = vsub.f32 %v1305_v10, %v2903_v49 }
 0x1db   : > { %v1319_v17 = vsel %vm1317_vm5, %v1318_v37, %v1316_v60  ;;  %v1323_v62 = vsel %vm1322_vm6, %v1298_v8, %v1321_v1  ;;  %v1328_v40 = vsub.f32 %v1312_v9, %v2903_v49 }
 0x1dc   : > { %v1326_v41 = vsel %vm1324_vm7, %v1325_v33, %v1323_v62  ;;  %v1329_v34 = vsub.f32 %v1319_v17, %v2903_v49  ;;  %v1331_v2 = vmul.f32 %v3563_v63, %v1327_v38  ;;  %v1339_v23 = vmul.f32 %v3567_v27, %v1327_v38 }
 0x1dd   : > { %v1330_v22 = vsub.f32 %v1326_v41, %v2903_v49  ;;  %v1332_v45 = vmul.f32 %v3572_v46, %v1328_v40  ;;  %v1340_v7 = vmul.f32 %v3576_v50, %v1328_v40  ;;  %v1347_v35 = vmul.f32 %v3580_v47, %v1327_v38 }
 0x1de   : > { %v1333_v11 = vmul.f32 %v3584_v52, %v1329_v34  ;;  %v4014_v8 = vadd.f32 %v1331_v2, %v3922_v12  ;;  %v1341_v53 = vmul.f32 %v3591_v18, %v1329_v34  ;;  %v4018_v31 = vadd.f32 %v1339_v23, %v3927_v21 }
 0x1df   : > { %v1334_v28 = vmul.f32 %v3598_v48, %v1330_v22  ;;  %v4022_v37 = vadd.f32 %v1332_v45, %v3932_v39  ;;  %v1342_v25 = vmul.f32 %v3605_v32, %v1330_v22  ;;  %v4026_v6 = vadd.f32 %v1340_v7, %v3937_v30 }
 0x1e0   : > { %v4029_v13 = vadd.f32 %v1333_v11, %v3940_v26  ;;  %v4032_v12 = vadd.f32 %v1341_v53, %v3943_v3  ;;  %v1348_v33 = vmul.f32 %v3618_v4, %v1328_v40  ;;  %v1349_v21 = vmul.f32 %v3622_v5, %v1329_v34 }
 0x1e1   : > { %v4037_v10 = vadd.f32 %v1334_v28, %v3950_v0  ;;  %v4040_v39 = vadd.f32 %v1342_v25, %v3953_v16  ;;  %v1350_v61 = vmul.f32 %v3632_v14, %v1330_v22  ;;  %v4044_v30 = vadd.f32 %v1347_v35, %v3958_v29 }
 0x1e2   : > { %v4047_v26 = vadd.f32 %v1348_v33, %v3961_v54  ;;  %v4050_v3 = vadd.f32 %v1349_v21, %v3964_v58  ;;  %v4055_v1 = vmax.f32 %v1275_v24, %v1327_v38  ;;  %v4060_v0 = vmax.f32 %v1276_v19, %v1328_v40 }
 0x1e3   : > { %v4063_v16 = vadd.f32 %v1350_v61, %v3971_v59  ;;  %v4068_v29 = vmax.f32 %v1277_v36, %v1329_v34  ;;  %v4073_v54 = vmax.f32 %v1278_v15, %v1330_v22  ;;  %v1359_v56 = vmul.f32 %v4014_v8, %v4014_v8 }
 0x1e4   : > { %v1360_v42 = vmul.f32 %v4022_v37, %v4022_v37  ;;  %v1361_v51 = vmul.f32 %v4029_v13, %v4029_v13  ;;  %v1362_v20 = vmul.f32 %v4037_v10, %v4037_v10  ;;  %v1363_v55 = vmul.f32 %v4018_v31, %v4018_v31 }
 0x1e5   : > { %v1364_v43 = vmul.f32 %v4026_v6, %v4026_v6  ;;  %v1365_v44 = vmul.f32 %v4032_v12, %v4032_v12  ;;  %v1366_v57 = vmul.f32 %v4040_v39, %v4040_v39  ;;  %v1371_v58 = vmul.f32 %v4044_v30, %v4044_v30 }
 0x1e6   : > { %v1367_v24 = vadd.f32 %v1363_v55, %v1359_v56  ;;  %v1372_v19 = vmul.f32 %v4047_v26, %v4047_v26  ;;  %v1373_v59 = vmul.f32 %v4050_v3, %v4050_v3  ;;  %v1374_v36 = vmul.f32 %v4063_v16, %v4063_v16 }
 0x1e7   : > { %v1368_v15 = vadd.f32 %v1364_v43, %v1360_v42  ;;  %v1369_v9 = vadd.f32 %v1365_v44, %v1361_v51  ;;  %v1370_v60 = vadd.f32 %v1366_v57, %v1362_v20 }
 0x1e8   : > { %v1375_v38 = vadd.f32 %v1371_v58, %v1367_v24 }
 0x1e9   : > { %v1376_v17 = vadd.f32 %v1372_v19, %v1368_v15  ;;  %v1377_v62 = vadd.f32 %v1373_v59, %v1369_v9  ;;  %v1378_v40 = vadd.f32 %v1374_v36, %v1370_v60 }
 0x1ea   : > { %2362 = vrsqrt.f32 %v1375_v38  ;;  %vm1381_vm8 = vcmp.eq.f32.partialorder %v1375_v38, inf  ;;  %vm1383_vm9 = vcmp.eq.f32.partialorder %v1375_v38, 0.0  ;;  %v1384_v34 = vand.u32 2147483648, %v1375_v38 }
 0x1eb   : > { %2364 = vrsqrt.f32 %v1376_v17  ;;  %vm1388_vm10 = vcmp.eq.f32.partialorder %v1376_v17, inf  ;;  %vm1390_vm11 = vcmp.eq.f32.partialorder %v1376_v17, 0.0  ;;  %v1391_v22 = vand.u32 2147483648, %v1376_v17 }
 0x1ec   : > { %2366 = vrsqrt.f32 %v1377_v62  ;;  %vm1395_vm12 = vcmp.eq.f32.partialorder %v1377_v62, inf  ;;  %vm1397_vm13 = vcmp.eq.f32.partialorder %v1377_v62, 0.0  ;;  %v1398_v35 = vand.u32 2147483648, %v1377_v62 }
 0x1ed   : > { %2368 = vrsqrt.f32 %v1378_v40  ;;  %vm1402_vm14 = vcmp.eq.f32.partialorder %v1378_v40, inf  ;;  %v1405_v25 = vand.u32 2147483648, %v1378_v40  ;;  %vm1404_vm15 = vcmp.eq.f32.partialorder %v1378_v40, 0.0 }
 0x1f4   : > { %v2363_v41 = vpop.eup %2362 }
 0x1f5   : > { %v2365_v2 = vpop.eup %2364  ;;  %v1380_v23 = vmul.f32 %v2363_v41, %v1375_v38 }
 0x1f6   : > { %v2367_v45 = vpop.eup %2366  ;;  %v1387_v7 = vmul.f32 %v2365_v2, %v1376_v17 }
 0x1f7   : > { %v2369_v11 = vpop.eup %2368  ;;  %v1382_v53 = vsel %vm1381_vm8, %v1375_v38, %v1380_v23  ;;  %v1394_v28 = vmul.f32 %v2367_v45, %v1377_v62 }
 0x1f8   : > { %v1385_v33 = vsel %vm1383_vm9, %v1384_v34, %v1382_v53  ;;  %v1389_v21 = vsel %vm1388_vm10, %v1376_v17, %v1387_v7  ;;  %v1401_v61 = vmul.f32 %v2369_v11, %v1378_v40 }
 0x1f9   : > { %v1392_v56 = vsel %vm1390_vm11, %v1391_v22, %v1389_v21  ;;  %v1396_v42 = vsel %vm1395_vm12, %v1377_v62, %v1394_v28  ;;  %v4102_v51 = vsub.f32 %v1385_v33, %v2903_v49 }
 0x1fa   : > { %v1399_v20 = vsel %vm1397_vm13, %v1398_v35, %v1396_v42  ;;  %v1403_v55 = vsel %vm1402_vm14, %v1378_v40, %v1401_v61  ;;  %v4105_v43 = vsub.f32 %v1392_v56, %v2903_v49 }
 0x1fb   : > { %v1406_v44 = vsel %vm1404_vm15, %v1405_v25, %v1403_v55  ;;  %v4108_v57 = vsub.f32 %v1399_v20, %v2903_v49  ;;  %v1411_v58 = vmul.f32 %v3563_v63, %v4102_v51  ;;  %v1419_v24 = vmul.f32 %v3567_v27, %v4102_v51 }
 0x1fc   : > { %v4115_v19 = vsub.f32 %v1406_v44, %v2903_v49  ;;  %v1412_v59 = vmul.f32 %v3572_v46, %v4105_v43  ;;  %v1420_v36 = vmul.f32 %v3576_v50, %v4105_v43  ;;  %v1427_v15 = vmul.f32 %v3580_v47, %v4102_v51 }
 0x1fd   : > { %v1413_v9 = vmul.f32 %v3584_v52, %v4108_v57  ;;  %v4126_v60 = vadd.f32 %v1411_v58, %v4014_v8  ;;  %v1421_v38 = vmul.f32 %v3591_v18, %v4108_v57  ;;  %v4131_v17 = vadd.f32 %v1419_v24, %v4018_v31 }
 0x1fe   : > { %v1414_v62 = vmul.f32 %v3598_v48, %v4115_v19  ;;  %v4136_v40 = vadd.f32 %v1412_v59, %v4022_v37  ;;  %v1422_v41 = vmul.f32 %v3605_v32, %v4115_v19  ;;  %v4141_v34 = vadd.f32 %v1420_v36, %v4026_v6 }
 0x1ff   : > { %v4144_v8 = vadd.f32 %v1413_v9, %v4029_v13  ;;  %v4147_v2 = vadd.f32 %v1421_v38, %v4032_v12  ;;  %v1428_v31 = vmul.f32 %v3618_v4, %v4105_v43  ;;  %v1429_v23 = vmul.f32 %v3622_v5, %v4108_v57 }
 0x200   : > { %v4154_v37 = vadd.f32 %v1414_v62, %v4037_v10  ;;  %v4157_v22 = vadd.f32 %v1422_v41, %v4040_v39  ;;  %v1430_v6 = vmul.f32 %v3632_v14, %v4115_v19  ;;  %v4162_v13 = vadd.f32 %v1427_v15, %v4044_v30 }
 0x201   : > { %v4165_v12 = vadd.f32 %v1428_v31, %v4047_v26  ;;  %v4168_v45 = vadd.f32 %v1429_v23, %v4050_v3  ;;  %v1435_v7 = vmax.f32 %v4055_v1, %v4102_v51  ;;  %v1436_v10 = vmax.f32 %v4060_v0, %v4105_v43 }
 0x202   : > { %v4175_v39 = vadd.f32 %v1430_v6, %v4063_v16  ;;  %v1437_v35 = vmax.f32 %v4068_v29, %v4108_v57  ;;  %v1438_v30 = vmax.f32 %v4073_v54, %v4115_v19  ;;  %v1439_v26 = vmul.f32 %v4126_v60, %v4126_v60 }
 0x203   : > { %v1440_v3 = vmul.f32 %v4136_v40, %v4136_v40  ;;  %v1441_v11 = vmul.f32 %v4144_v8, %v4144_v8  ;;  %v1442_v53 = vmul.f32 %v4154_v37, %v4154_v37  ;;  %v1443_v16 = vmul.f32 %v4131_v17, %v4131_v17 }
 0x204   : > { %v1444_v28 = vmul.f32 %v4141_v34, %v4141_v34  ;;  %v1445_v25 = vmul.f32 %v4147_v2, %v4147_v2  ;;  %v1446_v33 = vmul.f32 %v4157_v22, %v4157_v22  ;;  %v1451_v21 = vmul.f32 %v4162_v13, %v4162_v13 }
 0x205   : > { %v1447_v61 = vadd.f32 %v1443_v16, %v1439_v26  ;;  %v1452_v56 = vmul.f32 %v4165_v12, %v4165_v12  ;;  %v1453_v42 = vmul.f32 %v4168_v45, %v4168_v45  ;;  %v1454_v20 = vmul.f32 %v4175_v39, %v4175_v39 }
 0x206   : > { %v1448_v55 = vadd.f32 %v1444_v28, %v1440_v3  ;;  %v1449_v44 = vadd.f32 %v1445_v25, %v1441_v11  ;;  %v1450_v58 = vadd.f32 %v1446_v33, %v1442_v53 }
 0x207   : > { %v1455_v24 = vadd.f32 %v1451_v21, %v1447_v61 }
 0x208   : > { %v1456_v59 = vadd.f32 %v1452_v56, %v1448_v55  ;;  %v1457_v36 = vadd.f32 %v1453_v42, %v1449_v44  ;;  %v1458_v15 = vadd.f32 %v1454_v20, %v1450_v58 }
 0x209   : > { %2370 = vrsqrt.f32 %v1455_v24  ;;  %vm1461_vm0 = vcmp.eq.f32.partialorder %v1455_v24, inf  ;;  %vm1463_vm1 = vcmp.eq.f32.partialorder %v1455_v24, 0.0  ;;  %v1464_v38 = vand.u32 2147483648, %v1455_v24 }
 0x20a   : > { %2372 = vrsqrt.f32 %v1456_v59  ;;  %vm1468_vm2 = vcmp.eq.f32.partialorder %v1456_v59, inf  ;;  %vm1470_vm3 = vcmp.eq.f32.partialorder %v1456_v59, 0.0  ;;  %v1471_v31 = vand.u32 2147483648, %v1456_v59 }
 0x20b   : > { %2374 = vrsqrt.f32 %v1457_v36  ;;  %vm1475_vm4 = vcmp.eq.f32.partialorder %v1457_v36, inf  ;;  %vm1477_vm5 = vcmp.eq.f32.partialorder %v1457_v36, 0.0  ;;  %v1478_v26 = vand.u32 2147483648, %v1457_v36 }
 0x20c   : > { %2376 = vrsqrt.f32 %v1458_v15  ;;  %vm1482_vm6 = vcmp.eq.f32.partialorder %v1458_v15, inf  ;;  %v1485_v16 = vand.u32 2147483648, %v1458_v15  ;;  %vm1484_vm7 = vcmp.eq.f32.partialorder %v1458_v15, 0.0 }
 0x213   : > { %v2371_v9 = vpop.eup %2370 }
 0x214   : > { %v2373_v62 = vpop.eup %2372  ;;  %v1460_v41 = vmul.f32 %v2371_v9, %v1455_v24 }
 0x215   : > { %v2375_v23 = vpop.eup %2374  ;;  %v1467_v6 = vmul.f32 %v2373_v62, %v1456_v59 }
 0x216   : > { %v2377_v3 = vpop.eup %2376  ;;  %v1462_v11 = vsel %vm1461_vm0, %v1455_v24, %v1460_v41  ;;  %v1474_v53 = vmul.f32 %v2375_v23, %v1457_v36 }
 0x217   : > { %v1465_v28 = vsel %vm1463_vm1, %v1464_v38, %v1462_v11  ;;  %v1469_v25 = vsel %vm1468_vm2, %v1456_v59, %v1467_v6  ;;  %v1481_v33 = vmul.f32 %v2377_v3, %v1458_v15 }
 0x218   : > { %v1472_v21 = vsel %vm1470_vm3, %v1471_v31, %v1469_v25  ;;  %v1476_v61 = vsel %vm1475_vm4, %v1457_v36, %v1474_v53  ;;  %v1487_v56 = vsub.f32 %v1465_v28, %v2903_v49 }
 0x219   : > { %v1479_v42 = vsel %vm1477_vm5, %v1478_v26, %v1476_v61  ;;  %v1483_v20 = vsel %vm1482_vm6, %v1458_v15, %v1481_v33  ;;  %v1488_v55 = vsub.f32 %v1472_v21, %v2903_v49 }
 0x21a   : > { %v1486_v44 = vsel %vm1484_vm7, %v1485_v16, %v1483_v20  ;;  %v1489_v58 = vsub.f32 %v1479_v42, %v2903_v49  ;;  %v1491_v9 = vmul.f32 %v3563_v63, %v1487_v56  ;;  %v1499_v24 = vmul.f32 %v3567_v27, %v1487_v56 }
 0x21b   : > { %v1490_v38 = vsub.f32 %v1486_v44, %v2903_v49  ;;  %v1492_v62 = vmul.f32 %v3572_v46, %v1488_v55  ;;  %v1500_v59 = vmul.f32 %v3576_v50, %v1488_v55  ;;  %v1507_v36 = vmul.f32 %v3580_v47, %v1487_v56 }
 0x21c   : > { %v1493_v41 = vmul.f32 %v3584_v52, %v1489_v58  ;;  %v4218_v15 = vadd.f32 %v1491_v9, %v4126_v60  ;;  %v1501_v31 = vmul.f32 %v3591_v18, %v1489_v58  ;;  %v4222_v23 = vadd.f32 %v1499_v24, %v4131_v17 }
 0x21d   : > { %v1494_v63 = vmul.f32 %v3598_v48, %v1490_v38  ;;  %v4226_v27 = vadd.f32 %v1492_v62, %v4136_v40  ;;  %v1502_v46 = vmul.f32 %v3605_v32, %v1490_v38  ;;  %v4230_v50 = vadd.f32 %v1500_v59, %v4141_v34 }
 0x21e   : > { %v4233_v47 = vadd.f32 %v1493_v41, %v4144_v8  ;;  %v4236_v52 = vadd.f32 %v1501_v31, %v4147_v2  ;;  %v1508_v18 = vmul.f32 %v3618_v4, %v1488_v55  ;;  %v1509_v60 = vmul.f32 %v3622_v5, %v1489_v58 }
 0x21f   : > { %v4241_v48 = vadd.f32 %v1494_v63, %v4154_v37  ;;  %v4244_v17 = vadd.f32 %v1502_v46, %v4157_v22  ;;  %v1510_v32 = vmul.f32 %v3632_v14, %v1490_v38  ;;  %v4248_v40 = vadd.f32 %v1507_v36, %v4162_v13  ;;  %v4315_v46 = vld [vmem:[%s2786_s15] sm:$0xff] }
 0x220   : > { %v4251_v34 = vadd.f32 %v1508_v18, %v4165_v12  ;;  %v4254_v8 = vadd.f32 %v1509_v60, %v4168_v45  ;;  %v4259_v4 = vmax.f32 %v1435_v7, %v1487_v56  ;;  %v4264_v5 = vmax.f32 %v1436_v10, %v1488_v55  ;;  %v4320_v60 = vld [vmem:[%s2786_s15 + $0x20] sm:$0xff] }
 0x221   : > { %v4267_v14 = vadd.f32 %v1510_v32, %v4175_v39  ;;  %v4272_v2 = vmax.f32 %v1437_v35, %v1489_v58  ;;  %v4277_v37 = vmax.f32 %v1438_v30, %v1490_v38  ;;  %v1519_v1 = vmul.f32 %v4218_v15, %v4218_v15 }
 0x222   : > { %v1520_v0 = vmul.f32 %v4226_v27, %v4226_v27  ;;  %v1521_v51 = vmul.f32 %v4233_v47, %v4233_v47  ;;  %v1522_v43 = vmul.f32 %v4241_v48, %v4241_v48  ;;  %v1523_v29 = vmul.f32 %v4222_v23, %v4222_v23 }
 0x223   : > { %v1524_v54 = vmul.f32 %v4230_v50, %v4230_v50  ;;  %v1525_v57 = vmul.f32 %v4236_v52, %v4236_v52  ;;  %v1526_v19 = vmul.f32 %v4244_v17, %v4244_v17  ;;  %v1531_v22 = vmul.f32 %v4248_v40, %v4248_v40 }
 0x224   : > { %v1527_v13 = vadd.f32 %v1523_v29, %v1519_v1  ;;  %v1532_v12 = vmul.f32 %v4251_v34, %v4251_v34  ;;  %v1533_v45 = vmul.f32 %v4254_v8, %v4254_v8  ;;  %v1534_v7 = vmul.f32 %v4267_v14, %v4267_v14 }
 0x225   : > { %v1528_v10 = vadd.f32 %v1524_v54, %v1520_v0  ;;  %v1529_v39 = vadd.f32 %v1525_v57, %v1521_v51  ;;  %v1530_v35 = vadd.f32 %v1526_v19, %v1522_v43  ;;  %v4328_v0 = vld [vmem:[%s2786_s15 + $0x8] sm:$0xff]  ;;  %v4338_v54 = vld [vmem:[%s2786_s15 + $0x40] sm:$0xff]  ;;  %v4343_v19 = vld [vmem:[%s2786_s15 + $0x10] sm:$0xff] }
 0x226   : > { %v1535_v30 = vadd.f32 %v1531_v22, %v1527_v13  ;;  %v4333_v43 = vld [vmem:[%s2786_s15 + $0x28] sm:$0xff] }
 0x227   : > { %v1536_v6 = vadd.f32 %v1532_v12, %v1528_v10  ;;  %v1537_v26 = vadd.f32 %v1533_v45, %v1529_v39  ;;  %v1538_v3 = vadd.f32 %v1534_v7, %v1530_v35  ;;  %v4351_v12 = vld [vmem:[%s2786_s15 + $0x30] sm:$0xff]  ;;  %v4359_v10 = vld [vmem:[%s2786_s15 + $0x18] sm:$0xff] }
 0x228   : > { %2378 = vrsqrt.f32 %v1535_v30  ;;  %vm1541_vm8 = vcmp.eq.f32.partialorder %v1535_v30, inf  ;;  %vm1543_vm9 = vcmp.eq.f32.partialorder %v1535_v30, 0.0  ;;  %v1544_v53 = vand.u32 2147483648, %v1535_v30 }
 0x229   : > { %2380 = vrsqrt.f32 %v1536_v6  ;;  %vm1548_vm10 = vcmp.eq.f32.partialorder %v1536_v6, inf  ;;  %vm1550_vm11 = vcmp.eq.f32.partialorder %v1536_v6, 0.0  ;;  %v1551_v25 = vand.u32 2147483648, %v1536_v6 }
 0x22a   : > { %2382 = vrsqrt.f32 %v1537_v26  ;;  %vm1555_vm12 = vcmp.eq.f32.partialorder %v1537_v26, inf  ;;  %vm1557_vm13 = vcmp.eq.f32.partialorder %v1537_v26, 0.0  ;;  %v1558_v61 = vand.u32 2147483648, %v1537_v26 }
 0x22b   : > { %2384 = vrsqrt.f32 %v1538_v3  ;;  %vm1562_vm14 = vcmp.eq.f32.partialorder %v1538_v3, inf  ;;  %v1565_v55 = vand.u32 2147483648, %v1538_v3  ;;  %vm1564_vm15 = vcmp.eq.f32.partialorder %v1538_v3, 0.0 }
 0x232   : > { %v2379_v11 = vpop.eup %2378 }
 0x233   : > { %v2381_v16 = vpop.eup %2380  ;;  %v1540_v28 = vmul.f32 %v2379_v11, %v1535_v30  ;;  %v4386_v11 = vld [vmem:[%s2786_s15 + $0x50] sm:$0xff] }
 0x234   : > { %v2383_v33 = vpop.eup %2382  ;;  %v1547_v21 = vmul.f32 %v2381_v16, %v1536_v6 }
 0x235   : > { %v2385_v56 = vpop.eup %2384  ;;  %v1542_v42 = vsel %vm1541_vm8, %v1535_v30, %v1540_v28  ;;  %v1554_v20 = vmul.f32 %v2383_v33, %v1537_v26  ;;  %v4367_v30 = vld [vmem:[%s2786_s15 + $0x38] sm:$0xff] }
 0x236   : > { %v1545_v44 = vsel %vm1543_vm9, %v1544_v53, %v1542_v42  ;;  %v1549_v58 = vsel %vm1548_vm10, %v1536_v6, %v1547_v21  ;;  %v1561_v9 = vmul.f32 %v2385_v56, %v1538_v3 }
 0x237   : > { %v1552_v24 = vsel %vm1550_vm11, %v1551_v25, %v1549_v58  ;;  %v1556_v38 = vsel %vm1555_vm12, %v1537_v26, %v1554_v20  ;;  %v4306_v62 = vsub.f32 %v1545_v44, %v2903_v49 }
 0x238   : > { %v1559_v59 = vsel %vm1557_vm13, %v1558_v61, %v1556_v38  ;;  %v1563_v36 = vsel %vm1562_vm14, %v1538_v3, %v1561_v9  ;;  %v4309_v41 = vsub.f32 %v1552_v24, %v2903_v49  ;;  %v4381_v3 = vld [vmem:[%s2786_s15 + $0x48] sm:$0xff] }
 0x239   : > { %v1566_v31 = vsel %vm1564_vm15, %v1565_v55, %v1563_v36  ;;  %v4312_v63 = vsub.f32 %v1559_v59, %v2903_v49  ;;  %v1571_v18 = vmul.f32 %v4315_v46, %v4306_v62  ;;  %v1579_v32 = vmul.f32 %v4320_v60, %v4306_v62 }
 0x23a   : > { %v4325_v1 = vsub.f32 %v1566_v31, %v2903_v49  ;;  %v1572_v51 = vmul.f32 %v4328_v0, %v4309_v41  ;;  %v1580_v29 = vmul.f32 %v4333_v43, %v4309_v41  ;;  %v1587_v57 = vmul.f32 %v4338_v54, %v4306_v62 }
 0x23b   : > { %v1573_v22 = vmul.f32 %v4343_v19, %v4312_v63  ;;  %v4348_v13 = vadd.f32 %v1571_v18, %v4218_v15  ;;  %v1581_v45 = vmul.f32 %v4351_v12, %v4312_v63  ;;  %v4356_v7 = vadd.f32 %v1579_v32, %v4222_v23 }
 0x23c   : > { %v1574_v39 = vmul.f32 %v4359_v10, %v4325_v1  ;;  %v4364_v35 = vadd.f32 %v1572_v51, %v4226_v27  ;;  %v1582_v15 = vmul.f32 %v4367_v30, %v4325_v1  ;;  %v4372_v6 = vadd.f32 %v1580_v29, %v4230_v50 }
 0x23d   : > { %v4375_v26 = vadd.f32 %v1573_v22, %v4233_v47  ;;  %v4378_v23 = vadd.f32 %v1581_v45, %v4236_v52  ;;  %v1588_v27 = vmul.f32 %v4381_v3, %v4309_v41  ;;  %v1589_v53 = vmul.f32 %v4386_v11, %v4312_v63  ;;  %v4397_v47 = vld [vmem:[%s2786_s15 + $0x58] sm:$0xff] }
 0x23e   : > { %v4391_v16 = vadd.f32 %v1574_v39, %v4241_v48  ;;  %v4394_v50 = vadd.f32 %v1582_v15, %v4244_v17  ;;  %v1590_v52 = vmul.f32 %v4397_v47, %v4325_v1  ;;  %v4402_v28 = vadd.f32 %v1587_v57, %v4248_v40 }
 0x23f   : > { %v4405_v25 = vadd.f32 %v1588_v27, %v4251_v34  ;;  %v4408_v33 = vadd.f32 %v1589_v53, %v4254_v8  ;;  %v1599_v34 = vmul.f32 %v4348_v13, %v4348_v13  ;;  %v1600_v8 = vmul.f32 %v4364_v35, %v4364_v35 }
 0x240   : > { %v4415_v21 = vadd.f32 %v1590_v52, %v4267_v14  ;;  %v1601_v56 = vmul.f32 %v4375_v26, %v4375_v26  ;;  %v1602_v42 = vmul.f32 %v4391_v16, %v4391_v16  ;;  %v1603_v14 = vmul.f32 %v4356_v7, %v4356_v7 }
 0x241   : > { %v1604_v20 = vmul.f32 %v4372_v6, %v4372_v6  ;;  %v1605_v55 = vmul.f32 %v4378_v23, %v4378_v23  ;;  %v1606_v44 = vmul.f32 %v4394_v50, %v4394_v50  ;;  %v1611_v58 = vmul.f32 %v4402_v28, %v4402_v28 }
 0x242   : > { %v1607_v9 = vadd.f32 %v1603_v14, %v1599_v34  ;;  %v1612_v24 = vmul.f32 %v4405_v25, %v4405_v25  ;;  %v1613_v38 = vmul.f32 %v4408_v33, %v4408_v33  ;;  %v1614_v59 = vmul.f32 %v4415_v21, %v4415_v21 }
 0x243   : > { %v1608_v36 = vadd.f32 %v1604_v20, %v1600_v8  ;;  %v1609_v31 = vadd.f32 %v1605_v55, %v1601_v56  ;;  %v1610_v18 = vadd.f32 %v1606_v44, %v1602_v42 }
 0x244   : > { %v1615_v32 = vadd.f32 %v1611_v58, %v1607_v9 }
 0x245   : > { %v1616_v51 = vadd.f32 %v1612_v24, %v1608_v36  ;;  %v1617_v29 = vadd.f32 %v1613_v38, %v1609_v31  ;;  %v1618_v57 = vadd.f32 %v1614_v59, %v1610_v18 }
 0x246   : > { %2386 = vrsqrt.f32 %v1615_v32  ;;  %vm1621_vm0 = vcmp.eq.f32.partialorder %v1615_v32, inf  ;;  %vm1623_vm1 = vcmp.eq.f32.partialorder %v1615_v32, 0.0  ;;  %v1624_v45 = vand.u32 2147483648, %v1615_v32 }
 0x247   : > { %2388 = vrsqrt.f32 %v1616_v51  ;;  %vm1628_vm2 = vcmp.eq.f32.partialorder %v1616_v51, inf  ;;  %vm1630_vm3 = vcmp.eq.f32.partialorder %v1616_v51, 0.0  ;;  %v1631_v27 = vand.u32 2147483648, %v1616_v51 }
 0x248   : > { %2390 = vrsqrt.f32 %v1617_v29  ;;  %vm1635_vm4 = vcmp.eq.f32.partialorder %v1617_v29, inf  ;;  %vm1637_vm5 = vcmp.eq.f32.partialorder %v1617_v29, 0.0  ;;  %v1638_v34 = vand.u32 2147483648, %v1617_v29 }
 0x249   : > { %2392 = vrsqrt.f32 %v1618_v57  ;;  %vm1642_vm6 = vcmp.eq.f32.partialorder %v1618_v57, inf  ;;  %v1645_v14 = vand.u32 2147483648, %v1618_v57  ;;  %vm1644_vm7 = vcmp.eq.f32.partialorder %v1618_v57, 0.0 }
 0x250   : > { %v2387_v22 = vpop.eup %2386 }
 0x251   : > { %v2389_v39 = vpop.eup %2388  ;;  %v1620_v15 = vmul.f32 %v2387_v22, %v1615_v32 }
 0x252   : > { %v2391_v53 = vpop.eup %2390  ;;  %v1627_v52 = vmul.f32 %v2389_v39, %v1616_v51 }
 0x253   : > { %v2393_v8 = vpop.eup %2392  ;;  %v1622_v56 = vsel %vm1621_vm0, %v1615_v32, %v1620_v15  ;;  %v1634_v42 = vmul.f32 %v2391_v53, %v1617_v29 }
 0x254   : > { %v1625_v20 = vsel %vm1623_vm1, %v1624_v45, %v1622_v56  ;;  %v1629_v55 = vsel %vm1628_vm2, %v1616_v51, %v1627_v52  ;;  %v1641_v44 = vmul.f32 %v2393_v8, %v1618_v57 }
 0x255   : > { %v1632_v58 = vsel %vm1630_vm3, %v1631_v27, %v1629_v55  ;;  %v1636_v9 = vsel %vm1635_vm4, %v1617_v29, %v1634_v42  ;;  %v4448_v24 = vsub.f32 %v1625_v20, %v2903_v49 }
 0x256   : > { %v1639_v38 = vsel %vm1637_vm5, %v1638_v34, %v1636_v9  ;;  %v1643_v59 = vsel %vm1642_vm6, %v1618_v57, %v1641_v44  ;;  %v4451_v36 = vsub.f32 %v1632_v58, %v2903_v49 }
 0x257   : > { %v1646_v31 = vsel %vm1644_vm7, %v1645_v14, %v1643_v59  ;;  %v4454_v18 = vsub.f32 %v1639_v38, %v2903_v49  ;;  %v1651_v32 = vmul.f32 %v4315_v46, %v4448_v24  ;;  %v1659_v51 = vmul.f32 %v4320_v60, %v4448_v24 }
 0x258   : > { %v4461_v29 = vsub.f32 %v1646_v31, %v2903_v49  ;;  %v1652_v22 = vmul.f32 %v4328_v0, %v4451_v36  ;;  %v1660_v57 = vmul.f32 %v4333_v43, %v4451_v36  ;;  %v1667_v45 = vmul.f32 %v4338_v54, %v4448_v24 }
 0x259   : > { %v1653_v39 = vmul.f32 %v4343_v19, %v4454_v18  ;;  %v4472_v15 = vadd.f32 %v1651_v32, %v4348_v13  ;;  %v1661_v27 = vmul.f32 %v4351_v12, %v4454_v18  ;;  %v4477_v53 = vadd.f32 %v1659_v51, %v4356_v7 }
 0x25a   : > { %v1654_v52 = vmul.f32 %v4359_v10, %v4461_v29  ;;  %v4482_v34 = vadd.f32 %v1652_v22, %v4364_v35  ;;  %v1662_v8 = vmul.f32 %v4367_v30, %v4461_v29  ;;  %v4487_v56 = vadd.f32 %v1660_v57, %v4372_v6 }
 0x25b   : > { %v4490_v13 = vadd.f32 %v1653_v39, %v4375_v26  ;;  %v4493_v42 = vadd.f32 %v1661_v27, %v4378_v23  ;;  %v1668_v7 = vmul.f32 %v4381_v3, %v4451_v36  ;;  %v1669_v14 = vmul.f32 %v4386_v11, %v4454_v18 }
 0x25c   : > { %v4500_v35 = vadd.f32 %v1654_v52, %v4391_v16  ;;  %v4503_v20 = vadd.f32 %v1662_v8, %v4394_v50  ;;  %v1670_v6 = vmul.f32 %v4397_v47, %v4461_v29  ;;  %v4508_v26 = vadd.f32 %v1667_v45, %v4402_v28 }
 0x25d   : > { %v4511_v23 = vadd.f32 %v1668_v7, %v4405_v25  ;;  %v4514_v55 = vadd.f32 %v1669_v14, %v4408_v33  ;;  %v1679_v16 = vmul.f32 %v4472_v15, %v4472_v15  ;;  %v1680_v50 = vmul.f32 %v4482_v34, %v4482_v34 }
 0x25e   : > { %v4517_v44 = vadd.f32 %v1670_v6, %v4415_v21  ;;  %v1681_v58 = vmul.f32 %v4490_v13, %v4490_v13  ;;  %v1682_v28 = vmul.f32 %v4500_v35, %v4500_v35  ;;  %v1683_v25 = vmul.f32 %v4477_v53, %v4477_v53 }
 0x25f   : > { %v1684_v33 = vmul.f32 %v4487_v56, %v4487_v56  ;;  %v1685_v21 = vmul.f32 %v4493_v42, %v4493_v42  ;;  %v1686_v9 = vmul.f32 %v4503_v20, %v4503_v20  ;;  %v1691_v38 = vmul.f32 %v4508_v26, %v4508_v26 }
 0x260   : > { %v1687_v59 = vadd.f32 %v1683_v25, %v1679_v16  ;;  %v1692_v31 = vmul.f32 %v4511_v23, %v4511_v23  ;;  %v1693_v32 = vmul.f32 %v4514_v55, %v4514_v55  ;;  %v1694_v51 = vmul.f32 %v4517_v44, %v4517_v44 }
 0x261   : > { %v1688_v22 = vadd.f32 %v1684_v33, %v1680_v50  ;;  %v1689_v57 = vadd.f32 %v1685_v21, %v1681_v58  ;;  %v1690_v45 = vadd.f32 %v1686_v9, %v1682_v28  ;;  %v4548_v7 = vstv %s2798_s21 }
 0x262   : > { %v1695_v39 = vadd.f32 %v1691_v38, %v1687_v59  ;;  %v4551_v14 = vstv %s2800_s9  ;;  %v4554_v6 = vstv %s2802_s2  ;;  %v4556_v16 = vstv %s422_s24 }
 0x263   : > { %v1696_v27 = vadd.f32 %v1692_v31, %v1688_v22  ;;  %v1697_v52 = vadd.f32 %v1693_v32, %v1689_v57  ;;  %v1698_v8 = vadd.f32 %v1694_v51, %v1690_v45  ;;  %4928 = vst [vmem:[#allocation33_spill] sm:$0xff] %v4556_v16  ;;  %v4559_v50 = vstv %s2806_s27 }
 0x264   : > { %2394 = vrsqrt.f32 %v1695_v39  ;;  %v4562_v58 = vstv %s2808_s13  ;;  %v4565_v28 = vstv %s2812_s17  ;;  %v4567_v25 = vstv %s429_s25 }
 0x265   : > { %2396 = vrsqrt.f32 %v1696_v27  ;;  %4929 = vst [vmem:[#allocation34_spill] sm:$0xff] %v4562_v58  ;;  %4930 = vst [vmem:[#allocation35_spill] sm:$0xff] %v4565_v28  ;;  %vm1701_vm8 = vcmp.eq.f32.partialorder %v1695_v39, inf  ;;  %vm1703_vm9 = vcmp.eq.f32.partialorder %v1695_v39, 0.0  ;;  %v1704_v21 = vand.u32 2147483648, %v1695_v39 }
 0x266   : > { %2398 = vrsqrt.f32 %v1697_v52  ;;  %4931 = vst [vmem:[#allocation36_spill] sm:$0xff] %v4567_v25  ;;  %v4570_v9 = vstv %s2816_s18  ;;  %vm1708_vm10 = vcmp.eq.f32.partialorder %v1696_v27, inf  ;;  %vm1710_vm11 = vcmp.eq.f32.partialorder %v1696_v27, 0.0 }
 0x267   : > { %2400 = vrsqrt.f32 %v1698_v8  ;;  %4932 = vst [vmem:[#allocation37_spill] sm:$0xff] %v4570_v9  ;;  %v1711_v31 = vand.u32 2147483648, %v1696_v27  ;;  %vm1715_vm12 = vcmp.eq.f32.partialorder %v1697_v52, inf  ;;  %vm1717_vm13 = vcmp.eq.f32.partialorder %v1697_v52, 0.0 }
 0x268   : > { %v1718_v22 = vand.u32 2147483648, %v1697_v52  ;;  %vm1722_vm14 = vcmp.eq.f32.partialorder %v1698_v8, inf  ;;  %v1725_v61 = vand.u32 2147483648, %v1698_v8  ;;  %vm1724_vm15 = vcmp.eq.f32.partialorder %v1698_v8, 0.0 }
 0x269   : > { %v4581_v28 = vstv %s2822_s20 }
 0x26e   : > { %v2395_v33 = vpop.eup %2394 }
 0x26f   : > { %v2397_v38 = vpop.eup %2396  ;;  %v1700_v59 = vmul.f32 %v2395_v33, %v1695_v39 }
 0x270   : > { %v2399_v32 = vpop.eup %2398  ;;  %v1707_v51 = vmul.f32 %v2397_v38, %v1696_v27 }
 0x271   : > { %v2401_v57 = vpop.eup %2400  ;;  %v1702_v45 = vsel %vm1701_vm8, %v1695_v39, %v1700_v59  ;;  %v1714_v40 = vmul.f32 %v2399_v32, %v1697_v52  ;;  %v4588_v32 = vstv %s2835_s22 }
 0x272   : > { %v1705_v17 = vsel %vm1703_vm9, %v1704_v21, %v1702_v45  ;;  %v1709_v33 = vsel %vm1708_vm10, %v1696_v27, %v1707_v51  ;;  %v1721_v48 = vmul.f32 %v2401_v57, %v1698_v8  ;;  %v4595_v27 = vstv %s436_s7 }
 0x273   : > { %v1712_v25 = vsel %vm1710_vm11, %v1711_v31, %v1709_v33  ;;  %v1716_v38 = vsel %vm1715_vm12, %v1697_v52, %v1714_v40  ;;  %v4578_v9 = vsub.f32 %v1705_v17, %v2903_v49  ;;  %v4933_v17 = vmax.f32 %v4259_v4, %v4306_v62 }
 0x274   : > { %v1719_v16 = vsel %vm1717_vm13, %v1718_v22, %v1716_v38  ;;  %v1723_v58 = vsel %vm1722_vm14, %v1698_v8, %v1721_v48  ;;  %v4585_v59 = vsub.f32 %v1712_v25, %v2903_v49 }
 0x275   : > { %v1726_v39 = vsel %vm1724_vm15, %v1725_v61, %v1723_v58  ;;  %v4591_v21 = vsub.f32 %v1719_v16, %v2903_v49  ;;  %v1731_v40 = vmul.f32 %v4315_v46, %v4578_v9  ;;  %v4601_v52 = vmax.f32 %v4933_v17, %v4448_v24 }
 0x276   : > { %v4604_v48 = vsub.f32 %v1726_v39, %v2903_v49  ;;  %v1732_v61 = vmul.f32 %v4328_v0, %v4585_v59  ;;  %v1739_v8 = vmul.f32 %v4320_v60, %v4578_v9  ;;  %v1740_v16 = vmul.f32 %v4333_v43, %v4585_v59 }
 0x277   : > { %v1733_v46 = vmul.f32 %v4343_v19, %v4591_v21  ;;  %v1741_v4 = vmul.f32 %v4351_v12, %v4591_v21  ;;  %v1747_v62 = vmul.f32 %v4338_v54, %v4578_v9  ;;  %v4934_v49 = vmax.f32 %v4264_v5, %v4309_v41 }
 0x278   : > { %v1734_v60 = vmul.f32 %v4359_v10, %v4604_v48  ;;  %v4627_v19 = vadd.f32 %v1731_v40, %v4472_v15  ;;  %v1742_v43 = vmul.f32 %v4367_v30, %v4604_v48  ;;  %v4632_v12 = vadd.f32 %v1732_v61, %v4482_v34 }
 0x279   : > { %v4622_v0 = vmax.f32 %v4934_v49, %v4451_v36  ;;  %v4635_v54 = vadd.f32 %v1733_v46, %v4490_v13  ;;  %v1748_v5 = vmul.f32 %v4381_v3, %v4585_v59  ;;  %v1749_v41 = vmul.f32 %v4386_v11, %v4591_v21 }
 0x27a   : > { %v4935_v10 = vmax.f32 %v4272_v2, %v4312_v63  ;;  %v4648_v30 = vadd.f32 %v1734_v60, %v4500_v35  ;;  %v4651_v36 = vadd.f32 %v1739_v8, %v4477_v53  ;;  %v1750_v15 = vmul.f32 %v4397_v47, %v4604_v48 }
 0x27b   : > { %v4656_v3 = vadd.f32 %v1740_v16, %v4487_v56  ;;  %v4659_v11 = vadd.f32 %v1741_v4, %v4493_v42  ;;  %v4662_v34 = vadd.f32 %v1742_v43, %v4503_v20  ;;  %v4665_v2 = vadd.f32 %v1747_v62, %v4508_v26  ;;  %v4938_v16 = vld [vmem:[#allocation33_spill] sm:$0xff] }
 0x27c   : > { %v4645_v24 = vmax.f32 %v4935_v10, %v4454_v18  ;;  %v4668_v63 = vadd.f32 %v1748_v5, %v4511_v23  ;;  %v4671_v18 = vadd.f32 %v1749_v41, %v4514_v55  ;;  %v4674_v47 = vadd.f32 %v1750_v15, %v4517_v44 }
 0x27d   : > { %v1764_v53 = vmul.f32 %v4548_v7, %v4627_v19  ;;  %v4936_v56 = vmax.f32 %v4277_v37, %v4325_v1  ;;  %v1755_v42 = vmax.f32 %v4601_v52, %v4578_v9  ;;  %v1765_v35 = vmul.f32 %v4548_v7, %v4632_v12 }
 0x27e   : > { %v1766_v20 = vmul.f32 %v4548_v7, %v4635_v54  ;;  %v1756_v26 = vmax.f32 %v4622_v0, %v4585_v59  ;;  %v1757_v23 = vmax.f32 %v4645_v24, %v4591_v21  ;;  %v1767_v37 = vmul.f32 %v4548_v7, %v4648_v30 }
 0x27f   : > { %v4682_v13 = vmax.f32 %v4936_v56, %v4461_v29  ;;  %v1769_v1 = vmul.f32 %v4551_v14, %v4651_v36  ;;  %v1770_v29 = vmul.f32 %v4551_v14, %v4656_v3  ;;  %v1771_v55 = vmul.f32 %v4551_v14, %v4659_v11 }
 0x280   : > { %v1772_v44 = vmul.f32 %v4551_v14, %v4662_v34  ;;  %v1778_v58 = vmul.f32 %v4554_v6, %v4665_v2  ;;  %v1779_v31 = vmul.f32 %v4554_v6, %v4668_v63  ;;  %v1780_v7 = vmul.f32 %v4554_v6, %v4671_v18 }
 0x281   : > { %v1773_v25 = vadd.f32 %v1769_v1, %v1764_v53  ;;  %v1781_v51 = vmul.f32 %v4554_v6, %v4674_v47  ;;  %v1774_v22 = vadd.f32 %v1770_v29, %v1765_v35  ;;  %v1775_v57 = vadd.f32 %v1771_v55, %v1766_v20  ;;  %v4937_v6 = vld [vmem:[#allocation34_spill] sm:$0xff]  ;;  %v4939_v1 = vld [vmem:[#allocation35_spill] sm:$0xff] }
 0x282   : > { %v1776_v45 = vadd.f32 %v1772_v44, %v1767_v37  ;;  %v1816_v33 = vmul.f32 %v4559_v50, %v4627_v19  ;;  %v1817_v38 = vmul.f32 %v4559_v50, %v4632_v12  ;;  %v1818_v39 = vmul.f32 %v4559_v50, %v4635_v54 }
 0x283   : > { %v1782_v14 = vadd.f32 %v1778_v58, %v1773_v25  ;;  %v1819_v40 = vmul.f32 %v4559_v50, %v4648_v30  ;;  %v1783_v17 = vadd.f32 %v1779_v31, %v1774_v22  ;;  %v1784_v61 = vadd.f32 %v1780_v7, %v1775_v57  ;;  %v4940_v31 = vld [vmem:[#allocation37_spill] sm:$0xff] }
 0x284   : > { %v1785_v8 = vadd.f32 %v1781_v51, %v1776_v45  ;;  %v1821_v46 = vmul.f32 %v4937_v6, %v4651_v36  ;;  %v1822_v62 = vmul.f32 %v4937_v6, %v4656_v3  ;;  %v1823_v49 = vmul.f32 %v4937_v6, %v4659_v11 }
 0x285   : > { %v1787_v4 = vadd.f32 %v4938_v16, %v1782_v14  ;;  %v1824_v60 = vmul.f32 %v4937_v6, %v4662_v34  ;;  %v1788_v43 = vadd.f32 %v4938_v16, %v1783_v17  ;;  %v1789_v50 = vadd.f32 %v4938_v16, %v1784_v61 }
 0x286   : > { %v1790_v5 = vadd.f32 %v4938_v16, %v1785_v8  ;;  %v1825_v41 = vadd.f32 %v1821_v46, %v1816_v33  ;;  %v1826_v15 = vadd.f32 %v1822_v62, %v1817_v38  ;;  %v1827_v53 = vadd.f32 %v1823_v49, %v1818_v39  ;;  %v4941_v33 = vld [vmem:[#allocation36_spill] sm:$0xff] }
 0x287   : > { %v1791_v10 = vmul.f32 0.5, %v1787_v4  ;;  %v1828_v56 = vadd.f32 %v1824_v60, %v1819_v40  ;;  %v1792_v35 = vmul.f32 0.5, %v1788_v43  ;;  %v1793_v20 = vmul.f32 0.5, %v1789_v50 }
 0x288   : > { %v1794_v37 = vmul.f32 0.5, %v1790_v5  ;;  %v1830_v29 = vmul.f32 %v4939_v1, %v4665_v2  ;;  %v1831_v55 = vmul.f32 %v4939_v1, %v4668_v63  ;;  %v1832_v44 = vmul.f32 %v4939_v1, %v4671_v18 }
 0x289   : > { %2402 = vtanh.f32 %v1791_v10  ;;  %v1833_v58 = vmul.f32 %v4939_v1, %v4674_v47  ;;  %v1869_v7 = vmul.f32 %v4940_v31, %v4627_v19  ;;  %v1870_v51 = vmul.f32 %v4940_v31, %v4632_v12 }
 0x28a   : > { %2404 = vtanh.f32 %v1792_v35  ;;  %v1834_v25 = vadd.f32 %v1830_v29, %v1825_v41  ;;  %v1835_v22 = vadd.f32 %v1831_v55, %v1826_v15  ;;  %v1836_v57 = vadd.f32 %v1832_v44, %v1827_v53 }
 0x28b   : > { %2406 = vtanh.f32 %v1793_v20  ;;  %v1837_v45 = vadd.f32 %v1833_v58, %v1828_v56  ;;  %v1871_v38 = vmul.f32 %v4940_v31, %v4635_v54  ;;  %v1872_v39 = vmul.f32 %v4940_v31, %v4648_v30 }
 0x28c   : > { %2408 = vtanh.f32 %v1794_v37  ;;  %v1839_v14 = vadd.f32 %v4941_v33, %v1834_v25  ;;  %v1840_v40 = vadd.f32 %v4941_v33, %v1835_v22  ;;  %v1841_v19 = vadd.f32 %v4941_v33, %v1836_v57 }
 0x28d   : > { %v1842_v17 = vadd.f32 %v4941_v33, %v1837_v45  ;;  %v1874_v12 = vmul.f32 %v4581_v28, %v4651_v36  ;;  %v1875_v8 = vmul.f32 %v4581_v28, %v4656_v3  ;;  %v1876_v6 = vmul.f32 %v4581_v28, %v4659_v11 }
 0x28e   : > { %v1843_v61 = vmul.f32 0.5, %v1839_v14  ;;  %v1877_v54 = vmul.f32 %v4581_v28, %v4662_v34  ;;  %v1844_v30 = vmul.f32 0.5, %v1840_v40  ;;  %v1845_v46 = vmul.f32 0.5, %v1841_v19 }
 0x28f   : > { %v1846_v16 = vmul.f32 0.5, %v1842_v17  ;;  %v1878_v4 = vadd.f32 %v1874_v12, %v1869_v7  ;;  %v1879_v62 = vadd.f32 %v1875_v8, %v1870_v51  ;;  %v1880_v49 = vadd.f32 %v1876_v6, %v1871_v38 }
 0x290   : > { %2410 = vtanh.f32 %v1843_v61  ;;  %v1881_v60 = vadd.f32 %v1877_v54, %v1872_v39  ;;  %v1883_v36 = vmul.f32 %v4588_v32, %v4665_v2  ;;  %v1884_v3 = vmul.f32 %v4588_v32, %v4668_v63 }
 0x291   : > { %2412 = vtanh.f32 %v1844_v30  ;;  %v1885_v11 = vmul.f32 %v4588_v32, %v4671_v18  ;;  %v1758_v28 = vmax.f32 %v4682_v13, %v4604_v48  ;;  %vm4771_vm0 = vcmp.lt.f32.partialorder %v1755_v42, 10.0 }
 0x292   : > { %2414 = vtanh.f32 %v1845_v46  ;;  %v1886_v2 = vmul.f32 %v4588_v32, %v4674_v47  ;;  %v1887_v63 = vadd.f32 %v1883_v36, %v1878_v4  ;;  %v1888_v50 = vadd.f32 %v1884_v3, %v1879_v62 }
 0x293   : > { %v2403_v43 = vpop.eup %2402  ;;  %2416 = vtanh.f32 %v1846_v16  ;;  %v1889_v5 = vadd.f32 %v1885_v11, %v1880_v49  ;;  %vm4780_vm1 = vcmp.lt.f32.partialorder %v1756_v26, 10.0  ;;  %vm4787_vm2 = vcmp.lt.f32.partialorder %v1757_v23, 10.0 }
 0x294   : > { %v2405_v18 = vpop.eup %2404  ;;  %v1799_v32 = vmul.f32 0.5, %v2403_v43  ;;  %v1890_v52 = vadd.f32 %v1886_v2, %v1881_v60  ;;  %v1892_v42 = vadd.f32 %v4595_v27, %v1887_v63  ;;  %v1893_v41 = vadd.f32 %v4595_v27, %v1888_v50 }
 0x295   : > { %v2407_v47 = vpop.eup %2406  ;;  %v1800_v13 = vmul.f32 0.5, %v2405_v18  ;;  %v1894_v59 = vadd.f32 %v4595_v27, %v1889_v5  ;;  %vm4794_vm3 = vcmp.lt.f32.partialorder %v1758_v28, 10.0 }
 0x296   : > { %v2409_v0 = vpop.eup %2408  ;;  %v1801_v21 = vmul.f32 0.5, %v2407_v47  ;;  %v1803_v24 = vadd.f32 0.5, %v1799_v32  ;;  %v1895_v23 = vadd.f32 %v4595_v27, %v1890_v52  ;;  %v1896_v53 = vmul.f32 0.5, %v1892_v42 }
 0x297   : > { %v1802_v10 = vmul.f32 0.5, %v2409_v0  ;;  %v1804_v15 = vadd.f32 0.5, %v1800_v13  ;;  %v1897_v56 = vmul.f32 0.5, %v1893_v41  ;;  %v1898_v37 = vmul.f32 0.5, %v1894_v59 }
 0x298   : > { %v1805_v35 = vadd.f32 0.5, %v1801_v21  ;;  %v1807_v20 = vsel %vm4771_vm0, %v1803_v24, 0.0  ;;  %v1899_v1 = vmul.f32 0.5, %v1895_v23  ;;  %2418 = vtanh.f32 %v1896_v53 }
 0x299   : > { %v1806_v29 = vadd.f32 0.5, %v1802_v10  ;;  %v1808_v55 = vsel %vm4780_vm1, %v1804_v15, 0.0  ;;  %1811 = vst [vmem:[%s4804_s26] sm:$0xff] %v1807_v20  ;;  %2420 = vtanh.f32 %v1897_v56 }
 0x29a   : > { %v2411_v27 = vpop.eup %2410  ;;  %v1809_v44 = vsel %vm4787_vm2, %v1805_v35, 0.0  ;;  %1812 = vst [vmem:[%s4804_s26 + $0x8] sm:$0xff] %v1808_v55  ;;  %2422 = vtanh.f32 %v1898_v37 }
 0x29b   : > { %v2413_v58 = vpop.eup %2412  ;;  %v1810_v25 = vsel %vm4794_vm3, %v1806_v29, 0.0  ;;  %1813 = vst [vmem:[%s4804_s26 + $0x10] sm:$0xff] %v1809_v44  ;;  %v1851_v31 = vmul.f32 0.5, %v2411_v27  ;;  %2424 = vtanh.f32 %v1899_v1 }
 0x29c   : > { %v2415_v7 = vpop.eup %2414  ;;  %1814 = vst [vmem:[%s4804_s26 + $0x18] sm:$0xff] %v1810_v25  ;;  %v1852_v51 = vmul.f32 0.5, %v2413_v58 }
 0x29d   : > { %v2417_v22 = vpop.eup %2416  ;;  %v1853_v57 = vmul.f32 0.5, %v2415_v7  ;;  %v1855_v45 = vadd.f32 0.5, %v1851_v31 }
 0x29e   : > { %v1854_v33 = vmul.f32 0.5, %v2417_v22  ;;  %v1856_v14 = vadd.f32 0.5, %v1852_v51 }
 0x29f   : > { %v1857_v38 = vadd.f32 0.5, %v1853_v57  ;;  %v1859_v39 = vsel %vm4771_vm0, %v1855_v45, 0.0 }
 0x2a0   : > { %v1858_v40 = vadd.f32 0.5, %v1854_v33  ;;  %v1860_v19 = vsel %vm4780_vm1, %v1856_v14, 0.0  ;;  %2143 = vst [vmem:[%s4804_s26 + $0x20] sm:$0xff] %v1859_v39 }
 0x2a1   : > { %v1861_v17 = vsel %vm4787_vm2, %v1857_v38, 0.0  ;;  %2144 = vst [vmem:[%s4804_s26 + $0x28] sm:$0xff] %v1860_v19 }
 0x2a2   : > { %v1862_v12 = vsel %vm4794_vm3, %v1858_v40, 0.0  ;;  %2145 = vst [vmem:[%s4804_s26 + $0x30] sm:$0xff] %v1861_v17  ;;  %v2419_v61 = vpop.eup %2418 }
 0x2a3   : > { %2146 = vst [vmem:[%s4804_s26 + $0x38] sm:$0xff] %v1862_v12  ;;  %v2421_v8 = vpop.eup %2420  ;;  %v1904_v6 = vmul.f32 0.5, %v2419_v61 }
 0x2a4   : > { %v2423_v54 = vpop.eup %2422  ;;  %v1905_v30 = vmul.f32 0.5, %v2421_v8 }
 0x2a5   : > { %v2425_v46 = vpop.eup %2424  ;;  %v1906_v16 = vmul.f32 0.5, %v2423_v54  ;;  %v1908_v4 = vadd.f32 0.5, %v1904_v6 }
 0x2a6   : > { %v1907_v62 = vmul.f32 0.5, %v2425_v46  ;;  %v1909_v49 = vadd.f32 0.5, %v1905_v30 }
 0x2a7   : > { %v1910_v60 = vadd.f32 0.5, %v1906_v16  ;;  %v1912_v36 = vsel %vm4771_vm0, %v1908_v4, 0.0 }
 0x2a8   : > { %v1911_v3 = vadd.f32 0.5, %v1907_v62  ;;  %v1913_v11 = vsel %vm4780_vm1, %v1909_v49, 0.0  ;;  %2147 = vst [vmem:[%s4804_s26 + $0x40] sm:$0xff] %v1912_v36 }
 0x2a9   : > { %v1914_v28 = vsel %vm4787_vm2, %v1910_v60, 0.0  ;;  %2148 = vst [vmem:[%s4804_s26 + $0x48] sm:$0xff] %v1913_v11 }
 0x2aa   : > { %v1915_v2 = vsel %vm4794_vm3, %v1911_v3, 0.0  ;;  %2149 = vst [vmem:[%s4804_s26 + $0x50] sm:$0xff] %v1914_v28 }
 0x2ab   : > { %2150 = vst [vmem:[%s4804_s26 + $0x58] sm:$0xff] %v1915_v2 }
 0x2ac   : > { %s2157_s8 = sshll.u32 %s2628_s1, 9  ;;  %s1951_s15 = sshll.u32 %s4804_s26, 4  ;;  %s1952_s15 = int_to_ptr.vmem [resolvable:$true] %s1951_s15 }
 0x2ad   : > { %s1934_s29 = scalar_lea.hbm %s4882_s6, %s2157_s8  ;;  %s2562_s21 = smov 512  }
 0x2ae   : > { %p4950_p8 = scmp.ne.s32.totalorder %s4911_s10, 0  ;;  %s2563_s3 = smov 1024  }
 0x2af   : > { %s2564_s9 = smov 4   ;;  %s2565_s2 = smov 128  }
 0x2b0   : > { %2191 = sst [smem:[#allocation19]] (%p4950_p8), %s2562_s21  ;;  %s2566_s1 = smov 8  }
 0x2b1   : > { %2192 = sst [smem:[#allocation19 + $0x1]] (%p4950_p8), %s2563_s3  ;;  %s2567_s27 = smov [#allocation18]  }
 0x2b2   : > { %2193 = sst [smem:[#allocation19 + $0x2]] (%p4950_p8), %s2564_s9  ;;  %s2568_s13 = smov 0  }
 0x2b3   : > { %2194 = sst [smem:[#allocation19 + $0x3]] (%p4950_p8), %s2565_s2 }
 0x2b4   : > { %2195 = sst [smem:[#allocation19 + $0x4]] (%p4950_p8), %s2565_s2 }
 0x2b5   : > { %2196 = sst [smem:[#allocation19 + $0x5]] (%p4950_p8), %s2566_s1 }
 0x2b6   : > { %2197 = dma.general (%p4950_p8), %s1952_s15, 1536, %s1934_s29, %s1922_s11, %s2567_s27, [#allocation19], %s2568_s13, 0  }
 0x2b7 PF: > { %s4951_s17 = sld [smem:[#allocation32_spill]]  ;;  %s1979_s20 = sand.u32 1, %s2533_s23  }
 0x2b8   : > { %s1980_s22 = scalar_lea.sflag [#allocation5], %s1979_s20 }
 0x2bd   : > { %p4953_p12 = scmp.ne.s32.totalorder %s4951_s17, 0 }
 0x2bf   : > { %p2210_p11 = pnand %p2102_p13, %p4953_p12 }
 0x2c1   : > { %2528 = dma.done.wait (!%p2210_p11), %s1980_s22, 1536  }
 0x2c2   : > { %2530 = vsyncadd (!%p2210_p11), %s1980_s22, 4294965760  ;;  %s4954_s26 = sld [smem:[#allocation30_spill]]  ;;  %s4955_s23 = sld [smem:[#allocation27_spill]] }
 0x2c3   : > { %s4956_s24 = sld [smem:[#allocation28_spill]]  ;;  %s4957_s25 = sld [smem:[#allocation31_spill]] }
 0x2c8   : > { %p25_p9 = scmp.ge.s32.totalorder %s4954_s26, 4  }
 0x2ca   :  { %27 = sbr.rel (!%p25_p9) target bundleno = 16 (0x10), region = 136 }
 0x2d1   :  { %1985 = vsyncpa [#allocation4], 1 }
 0x2d2   :  { %1987 = vsyncpa [#allocation4 + $0x1], 1 }
 0x2d3   :  { %1988 = vsyncpa [#allocation12], 1 }
 0x2d4   :  { %1990 = vsyncpa [#allocation12 + $0x1], 1 }
 0x2d5   :  { %1991 = vsyncpa [#allocation5], 1 }
 0x2d6   :  { %1993 = vsyncpa [#allocation5 + $0x1], 1 }
 0x2d7   :  { %1994 = vsyncpa [#allocation6], 1 }
 0x2d8   :  { %1996 = vsyncpa [#allocation6 + $0x1], 1 }
 0x2d9   :  { %1997 = vsyncpa [#allocation8], 1 }

</bundles_post_ra>
